<compile_context>
chip_gen: v7x
topology: tpu7x:2x2x1
jax: 0.10.0
libtpu: 0.0.40
codegen_flags: <defaults>
</compile_context>

<pallas_src>
import functools

import jax
import jax.numpy as jnp
from jax import lax
from jax.experimental import pallas as pl
from jax.experimental.pallas import tpu as pltpu


def _round_up(x, m):
    return (x + m - 1) // m * m


def bottleneck_kernel(x_ref, w1_ref, s1_ref, b1_ref,
                      w2_ref, s2_ref, b2_ref,
                      w3_ref, s3_ref, b3_ref,
                      out_ref, pad_ref, col_ref,
                      *, W, base):
    # x_ref:   (HW, Cp)       bf16  (Cp = inplanes padded to mult of 128)
    # w1_ref:  (Cp, Pp)       bf16  (Pp = planes padded to mult of 128)
    # w2_ref:  (9*Pp, Pp)     bf16  (row = (dy*3 + dx)*Pp + cin)
    # w3_ref:  (Pp, Cp)       bf16
    # s*/b*:   (1, Pp)/(1, Cp) f32 folded BN scale/bias
    # out_ref: (HW, Cp)       bf16
    # pad_ref: (pad_rows, Pp) bf16 height-padded flattened conv1 output
    # col_ref: (HW, 3*Pp)     bf16 per-dy im2col slab (reused for dy=0,1,2)
    HW = x_ref.shape[0]
    Pp = w1_ref.shape[1]
    pad_rows = pad_ref.shape[0]
    K3 = 3 * Pp

    # --- conv1 (1x1) + BN1 + ReLU (bf16 MXU, f32 accumulation/epilogue) -----
    t1 = jnp.dot(x_ref[...], w1_ref[...],
                 preferred_element_type=jnp.float32)             # (HW, Pp) f32
    t1 = jnp.maximum(t1 * s1_ref[...] + b1_ref[...], 0.0)

    # --- height-padded flattened buffer for the 3x3 conv --------------------
    # Image pixel (h, w) lives at flat row base + h*W + w; rows [0, base) and
    # [base+HW, pad_rows) stay zero (top/bottom SAME padding).  Only the small
    # border regions are re-zeroed each step (interior is fully overwritten).
    pad_ref[0:base, :] = jnp.zeros((base, Pp), jnp.bfloat16)
    pad_ref[base + HW:pad_rows, :] = jnp.zeros((pad_rows - base - HW, Pp),
                                               jnp.bfloat16)
    pad_ref[base:base + HW, :] = t1.astype(jnp.bfloat16)

    # Width-edge masks: flat-window wrap into the neighbouring image row is
    # killed for dx=0 at w==0 and for dx=2 at w==W-1.
    w_pos = lax.broadcasted_iota(jnp.int32, (HW, 1), 0) % W
    not_left = w_pos >= 1
    not_right = w_pos <= (W - 2)

    # --- conv2 (3x3) as three K=3*Pp matmuls (per-dy im2col slab) -----------
    acc = None
    for dy in range(3):
        for dx in range(3):
            off = base - W - 1 + dy * W + dx                     # static >= 0
            win = pad_ref[off:off + HW, :]                       # (HW, Pp) bf16
            if dx == 0:
                win = jnp.where(not_left, win, jnp.zeros_like(win))
            elif dx == 2:
                win = jnp.where(not_right, win, jnp.zeros_like(win))
            col_ref[:, dx * Pp:(dx + 1) * Pp] = win              # lane-aligned
        part = jnp.dot(col_ref[...], w2_ref[dy * K3:(dy + 1) * K3, :],
                       preferred_element_type=jnp.float32)       # (HW, Pp) f32
        acc = part if acc is None else acc + part
    t2 = jnp.maximum(acc * s2_ref[...] + b2_ref[...], 0.0)

    # --- conv3 (1x1) + BN3, residual add (downsample=None), final ReLU ------
    t3 = jnp.dot(t2.astype(jnp.bfloat16), w3_ref[...],
                 preferred_element_type=jnp.float32)             # (HW, Cp) f32
    t3 = t3 * s3_ref[...] + b3_ref[...]
    identity = x_ref[...].astype(jnp.float32)                    # re-read x
    out_ref[...] = jnp.maximum(t3 + identity, 0.0).astype(jnp.bfloat16)


def _const_spec(shape):
    """BlockSpec for a grid-invariant operand; single-buffered when supported."""
    idx = lambda n: (0,) * len(shape)
    if hasattr(pl, "Buffered"):
        try:
            return pl.BlockSpec(shape, idx, pipeline_mode=pl.Buffered(1))
        except TypeError:
            pass
    return pl.BlockSpec(shape, idx)


def _vmem_limit_bytes():
    """Generation-aware VMEM limit: ~96 MiB on 128-MiB chips, 48 MiB otherwise."""
    cap = 64 * 1024 * 1024
    try:
        info = pltpu.get_tpu_info()
        cap = getattr(info, "vmem_capacity_bytes", cap)
    except Exception:
        pass
    if cap >= 120 * 1024 * 1024:
        return 96 * 1024 * 1024
    return 48 * 1024 * 1024


def bottleneck_forward_flat(x_flat, kp, H, W):
    """Core entry point: x_flat is (N, H*W, Cp) channels-last bf16 (Cp mult of 128)."""
    N, HW, Cp = x_flat.shape
    Pp = kp["w1"].shape[1]
    assert HW == H * W
    assert W >= 2
    assert x_flat.dtype == jnp.bfloat16
    base = _round_up(W + 1, 8)                       # >= W + 1 zero rows on top
    pad_rows = _round_up(base + HW + W + 1, 8)       # >= W + 1 zero rows below

    kernel = functools.partial(bottleneck_kernel, W=W, base=base)

    return pl.pallas_call(
        kernel,
        out_shape=jax.ShapeDtypeStruct((N, HW, Cp), jnp.bfloat16),
        grid_spec=pltpu.PrefetchScalarGridSpec(
            num_scalar_prefetch=0,
            grid=(N,),
            in_specs=[
                pl.BlockSpec((None, HW, Cp), lambda n: (n, 0, 0)),
                _const_spec((Cp, Pp)),
                _const_spec((1, Pp)),
                _const_spec((1, Pp)),
                _const_spec((9 * Pp, Pp)),
                _const_spec((1, Pp)),
                _const_spec((1, Pp)),
                _const_spec((Pp, Cp)),
                _const_spec((1, Cp)),
                _const_spec((1, Cp)),
            ],
            out_specs=pl.BlockSpec((None, HW, Cp), lambda n: (n, 0, 0)),
            scratch_shapes=[
                pltpu.VMEM((pad_rows, Pp), jnp.bfloat16),    # padded conv1 out
                pltpu.VMEM((HW, 3 * Pp), jnp.bfloat16),      # per-dy im2col slab
            ],
        ),
        compiler_params=pltpu.CompilerParams(
            dimension_semantics=("parallel",),
            vmem_limit_bytes=_vmem_limit_bytes(),
        ),
    )(x_flat,
      kp["w1"], kp["s1"], kp["b1"],
      kp["w2"], kp["s2"], kp["b2"],
      kp["w3"], kp["s3"], kp["b3"])


def pack_params(p, inplanes, planes):
    """Pad channels to 128-lane multiples, fold into im2col layout, cast to bf16."""
    Cp = _round_up(inplanes, 128)
    Pp = _round_up(planes, 128)
    Cout = 4 * planes
    assert inplanes == Cout, "downsample=None requires inplanes == planes * 4"

    w1 = jnp.zeros((Cp, Pp), jnp.float32).at[:inplanes, :planes].set(p["w1"])
    w2 = jnp.zeros((3, 3, Pp, Pp), jnp.float32).at[:, :, :planes, :planes].set(p["w2"])
    w2 = w2.reshape(9 * Pp, Pp)                      # row = (dy*3+dx)*Pp + cin
    w3 = jnp.zeros((Pp, Cp), jnp.float32).at[:planes, :Cout].set(p["w3"])

    def padvec(v, n):
        return jnp.zeros((1, n), jnp.float32).at[0, :v.shape[0]].set(v)

    return dict(
        w1=w1.astype(jnp.bfloat16), w2=w2.astype(jnp.bfloat16),
        w3=w3.astype(jnp.bfloat16),
        s1=padvec(p["s1"], Pp), b1=padvec(p["b1"], Pp),
        s2=padvec(p["s2"], Pp), b2=padvec(p["b2"], Pp),
        s3=padvec(p["s3"], Cp), b3=padvec(p["b3"], Cp))


def bottleneck_forward_nchw(x_nchw, params):
    """NCHW wrapper for parity with the PyTorch module; a real channels-last
    pipeline should call bottleneck_forward_flat directly (no transposes)."""
    N, Cin, H, W = x_nchw.shape
    planes = params["w1"].shape[1]
    Cout = 4 * planes
    assert Cin == Cout, "downsample=None requires inplanes == planes * expansion"
    Cp = _round_up(Cin, 128)

    x_flat = jnp.transpose(x_nchw, (0, 2, 3, 1)).reshape(N, H * W, Cin)
    if Cp != Cin:
        x_flat = jnp.pad(x_flat, ((0, 0), (0, 0), (0, Cp - Cin)))
    kp = pack_params(params, Cin, planes)

    out = bottleneck_forward_flat(x_flat.astype(jnp.bfloat16), kp, H, W)
    out = out[..., :Cout].reshape(N, H, W, Cout).astype(jnp.float32)
    return jnp.transpose(out, (0, 3, 1, 2))


def make_params(key, inplanes, planes):
    """Deterministic synthetic weights + folded (inference-mode) BatchNorm."""
    ks = jax.random.split(key, 15)
    expansion = 4
    eps = 1e-5

    def fold_bn(kg, kb, km, kv, c):
        gamma = 1.0 + 0.1 * jax.random.normal(kg, (c,), jnp.float32)
        beta = 0.1 * jax.random.normal(kb, (c,), jnp.float32)
        mean = 0.1 * jax.random.normal(km, (c,), jnp.float32)
        var = jnp.abs(jax.random.normal(kv, (c,), jnp.float32)) + 0.5
        scale = gamma / jnp.sqrt(var + eps)
        bias = beta - mean * scale
        return scale, bias

    # conv weights stored channels-last: w1 (Cin,P), w2 (kh,kw,Cin,Cout), w3 (P,4P)
    w1 = 0.1 * jax.random.normal(ks[0], (inplanes, planes), jnp.float32)
    w2 = 0.1 * jax.random.normal(ks[1], (3, 3, planes, planes), jnp.float32)
    w3 = 0.1 * jax.random.normal(ks[2], (planes, planes * expansion), jnp.float32)
    s1, b1 = fold_bn(ks[3], ks[4], ks[5], ks[6], planes)
    s2, b2 = fold_bn(ks[7], ks[8], ks[9], ks[10], planes)
    s3, b3 = fold_bn(ks[11], ks[12], ks[13], ks[14], planes * expansion)
    return dict(w1=w1, w2=w2, w3=w3, s1=s1, b1=b1, s2=s2, b2=b2, s3=s3, b3=b3)


def reference_forward(x_nchw, p):
    """Pure-JAX NCHW f32 reference matching the PyTorch Bottleneck forward."""
    def bn(y, s, b):
        return y * s.reshape(1, -1, 1, 1) + b.reshape(1, -1, 1, 1)

    dn = ("NCHW", "OIHW", "NCHW")
    w1 = jnp.transpose(p["w1"], (1, 0))[:, :, None, None]
    w2 = jnp.transpose(p["w2"], (3, 2, 0, 1))
    w3 = jnp.transpose(p["w3"], (1, 0))[:, :, None, None]

    y = lax.conv_general_dilated(x_nchw, w1, (1, 1), "VALID", dimension_numbers=dn)
    y = jax.nn.relu(bn(y, p["s1"], p["b1"]))
    y = lax.conv_general_dilated(y, w2, (1, 1), ((1, 1), (1, 1)), dimension_numbers=dn)
    y = jax.nn.relu(bn(y, p["s2"], p["b2"]))
    y = lax.conv_general_dilated(y, w3, (1, 1), "VALID", dimension_numbers=dn)
    y = bn(y, p["s3"], p["b3"])
    return jax.nn.relu(y + x_nchw)


# TODO(synk): stride>1 / dilation>1 / 'caffe' style / downsample module / DCN
#             conv2 / plugins / torch.utils.checkpoint variants not implemented
#             (defaults only).

if __name__ == "__main__":
    N, planes, H, W = 2, 4, 16, 16
    inplanes = planes * 4            # identity residual (downsample=None)

    key = jax.random.PRNGKey(0)
    kx, kp = jax.random.split(key)
    x = jax.random.normal(kx, (N, inplanes, H, W), jnp.float32)
    params = make_params(kp, inplanes, planes)

    out = jax.block_until_ready(bottleneck_forward_nchw(x, params))
    ref = reference_forward(x, params)

    assert out.shape == (N, inplanes, H, W)
    # bf16 activations + bf16 MXU matmuls (f32 accumulation) -> loosened tolerance
    assert jnp.allclose(out, ref, atol=5e-2, rtol=5e-2), \
        float(jnp.max(jnp.abs(out - ref)))

    print("KERNEL_OK")
</pallas_src>

<mosaic_0001>
module attributes {stable_mosaic.version = 11 : i64} {
  func.func @bottleneck_kernel(%arg0: i32, %arg1: memref<1x256x128xbf16, #tpu.memory_space<vmem>>, %arg2: memref<128x128xbf16, #tpu.memory_space<vmem>>, %arg3: memref<1x128xf32, #tpu.memory_space<vmem>>, %arg4: memref<1x128xf32, #tpu.memory_space<vmem>>, %arg5: memref<1152x128xbf16, #tpu.memory_space<vmem>>, %arg6: memref<1x128xf32, #tpu.memory_space<vmem>>, %arg7: memref<1x128xf32, #tpu.memory_space<vmem>>, %arg8: memref<128x128xbf16, #tpu.memory_space<vmem>>, %arg9: memref<1x128xf32, #tpu.memory_space<vmem>>, %arg10: memref<1x128xf32, #tpu.memory_space<vmem>>, %arg11: memref<1x256x128xbf16, #tpu.memory_space<vmem>>, %arg12: memref<304x128xbf16, #tpu.memory_space<vmem>>, %arg13: memref<256x384xbf16, #tpu.memory_space<vmem>>) attributes {dimension_semantics = [#tpu.dimension_semantics<parallel>], iteration_bounds = array<i64: 2>, scalar_prefetch = 0 : i64, scratch_operands = 2 : i64, tpu.core_type = #tpu.core_type<tc>, window_params = [{transform_indices = @transform_0, window_bounds = array<i64: 1, 256, 128>}, {pipeline_mode = #tpu.pipeline_mode<synchronous>, transform_indices = @transform_1, window_bounds = array<i64: 128, 128>}, {pipeline_mode = #tpu.pipeline_mode<synchronous>, transform_indices = @transform_2, window_bounds = array<i64: 1, 128>}, {pipeline_mode = #tpu.pipeline_mode<synchronous>, transform_indices = @transform_3, window_bounds = array<i64: 1, 128>}, {pipeline_mode = #tpu.pipeline_mode<synchronous>, transform_indices = @transform_4, window_bounds = array<i64: 1152, 128>}, {pipeline_mode = #tpu.pipeline_mode<synchronous>, transform_indices = @transform_5, window_bounds = array<i64: 1, 128>}, {pipeline_mode = #tpu.pipeline_mode<synchronous>, transform_indices = @transform_6, window_bounds = array<i64: 1, 128>}, {pipeline_mode = #tpu.pipeline_mode<synchronous>, transform_indices = @transform_7, window_bounds = array<i64: 128, 128>}, {pipeline_mode = #tpu.pipeline_mode<synchronous>, transform_indices = @transform_8, window_bounds = array<i64: 1, 128>}, {pipeline_mode = #tpu.pipeline_mode<synchronous>, transform_indices = @transform_9, window_bounds = array<i64: 1, 128>}, {transform_indices = @transform_10, window_bounds = array<i64: 1, 256, 128>}]} {
    %c0 = arith.constant 0 : index
    %c0_0 = arith.constant 0 : index
    %c0_1 = arith.constant 0 : index
    %0 = vector.load %arg1[%c0, %c0_0, %c0_1] : memref<1x256x128xbf16, #tpu.memory_space<vmem>>, vector<1x256x128xbf16>
    %1 = vector.shape_cast %0 : vector<1x256x128xbf16> to vector<256x128xbf16>
    %c0_2 = arith.constant 0 : index
    %c0_3 = arith.constant 0 : index
    %2 = vector.load %arg2[%c0_2, %c0_3] : memref<128x128xbf16, #tpu.memory_space<vmem>>, vector<128x128xbf16>
    %cst = arith.constant dense<0.000000e+00> : vector<256x128xf32>
    %3 = tpu.matmul %1, %2, %cst {dimension_numbers = #tpu.dot_dimension_numbers<[1], [0], [0], [1], [0, 0, 1, 1], [], []>} : vector<256x128xbf16>, vector<128x128xbf16>, vector<256x128xf32> -> vector<256x128xf32>
    %c0_4 = arith.constant 0 : index
    %c0_5 = arith.constant 0 : index
    %4 = vector.load %arg3[%c0_4, %c0_5] : memref<1x128xf32, #tpu.memory_space<vmem>>, vector<1x128xf32>
    %5 = vector.broadcast %4 : vector<1x128xf32> to vector<256x128xf32>
    %6 = arith.mulf %3, %5 : vector<256x128xf32>
    %c0_6 = arith.constant 0 : index
    %c0_7 = arith.constant 0 : index
    %7 = vector.load %arg4[%c0_6, %c0_7] : memref<1x128xf32, #tpu.memory_space<vmem>>, vector<1x128xf32>
    %8 = vector.broadcast %7 : vector<1x128xf32> to vector<256x128xf32>
    %9 = arith.addf %6, %8 : vector<256x128xf32>
    %cst_8 = arith.constant 0.000000e+00 : f32
    %10 = vector.broadcast %cst_8 : f32 to vector<256x128xf32>
    %11 = arith.maximumf %9, %10 : vector<256x128xf32>
    %cst_9 = arith.constant 0.000000e+00 : bf16
    %12 = vector.broadcast %cst_9 : bf16 to vector<24x128xbf16>
    %c0_10 = arith.constant 0 : index
    %c0_11 = arith.constant 0 : index
    %13 = vector.load %arg12[%c0_10, %c0_11] : memref<304x128xbf16, #tpu.memory_space<vmem>>, vector<24x128xbf16>
    tpu.vector_store %arg12[%c0_10, %c0_11], %12 {strides = array<i32>} : memref<304x128xbf16, #tpu.memory_space<vmem>>, vector<24x128xbf16>,
    %cst_12 = arith.constant 0.000000e+00 : bf16
    %14 = vector.broadcast %cst_12 : bf16 to vector<24x128xbf16>
    %c280 = arith.constant 280 : index
    %c0_13 = arith.constant 0 : index
    %15 = vector.load %arg12[%c280, %c0_13] : memref<304x128xbf16, #tpu.memory_space<vmem>>, vector<24x128xbf16>
    tpu.vector_store %arg12[%c280, %c0_13], %14 {strides = array<i32>} : memref<304x128xbf16, #tpu.memory_space<vmem>>, vector<24x128xbf16>,
    %16 = arith.truncf %11 : vector<256x128xf32> to vector<256x128xbf16>
    %c24 = arith.constant 24 : index
    %c0_14 = arith.constant 0 : index
    %17 = vector.load %arg12[%c24, %c0_14] : memref<304x128xbf16, #tpu.memory_space<vmem>>, vector<256x128xbf16>
    tpu.vector_store %arg12[%c24, %c0_14], %16 {strides = array<i32>} : memref<304x128xbf16, #tpu.memory_space<vmem>>, vector<256x128xbf16>,
    %18 = tpu.iota {dimensions = array<i32: 0>} : vector<256x1xi32>
    %c16_i32 = arith.constant 16 : i32
    %c0_i32 = arith.constant 0 : i32
    %19 = arith.cmpi eq, %c16_i32, %c0_i32 : i32
    %c1_i32 = arith.constant 1 : i32
    %20 = arith.select %19, %c1_i32, %c16_i32 : i32
    %21 = vector.broadcast %20 : i32 to vector<256x1xi32>
    %22 = arith.remsi %18, %21 : vector<256x1xi32>
    %c0_i32_15 = arith.constant 0 : i32
    %23 = vector.broadcast %c0_i32_15 : i32 to vector<256x1xi32>
    %24 = arith.cmpi ne, %22, %23 : vector<256x1xi32>
    %c0_i32_16 = arith.constant 0 : i32
    %25 = vector.broadcast %c0_i32_16 : i32 to vector<256x1xi32>
    %26 = arith.cmpi slt, %22, %25 : vector<256x1xi32>
    %c0_i32_17 = arith.constant 0 : i32
    %27 = arith.cmpi slt, %20, %c0_i32_17 : i32
    %28 = vector.broadcast %27 : i1 to vector<256x1xi1>
    %29 = vector.broadcast %28 : vector<256x1xi1> to vector<256x1xi1>
    %30 = arith.xori %26, %29 : vector<256x1xi1>
    %31 = arith.andi %30, %24 : vector<256x1xi1>
    %32 = vector.broadcast %20 : i32 to vector<256x1xi32>
    %33 = arith.addi %22, %32 : vector<256x1xi32>
    %34 = arith.select %31, %33, %22 : vector<256x1xi1>, vector<256x1xi32>
    %c1_i32_18 = arith.constant 1 : i32
    %35 = vector.broadcast %c1_i32_18 : i32 to vector<256x1xi32>
    %36 = arith.cmpi sge, %34, %35 : vector<256x1xi32>
    %c14_i32 = arith.constant 14 : i32
    %37 = vector.broadcast %c14_i32 : i32 to vector<256x1xi32>
    %38 = arith.cmpi sle, %34, %37 : vector<256x1xi32>
    %c7 = arith.constant 7 : index
    %c0_19 = arith.constant 0 : index
    %39 = vector.load %arg12[%c7, %c0_19] : memref<304x128xbf16, #tpu.memory_space<vmem>>, vector<256x128xbf16>
    %cst_20 = arith.constant 0.000000e+00 : bf16
    %40 = vector.broadcast %cst_20 : bf16 to vector<256x128xbf16>
    %41 = vector.shape_cast %36 : vector<256x1xi1> to vector<256x1xi1>
    %42 = vector.broadcast %41 : vector<256x1xi1> to vector<256x128xi1>
    %43 = arith.select %42, %39, %40 : vector<256x128xi1>, vector<256x128xbf16>
    %c0_21 = arith.constant 0 : index
    %c0_22 = arith.constant 0 : index
    %44 = vector.load %arg13[%c0_21, %c0_22] : memref<256x384xbf16, #tpu.memory_space<vmem>>, vector<256x128xbf16>
    tpu.vector_store %arg13[%c0_21, %c0_22], %43 {strides = array<i32>} : memref<256x384xbf16, #tpu.memory_space<vmem>>, vector<256x128xbf16>,
    %c8 = arith.constant 8 : index
    %c0_23 = arith.constant 0 : index
    %45 = vector.load %arg12[%c8, %c0_23] : memref<304x128xbf16, #tpu.memory_space<vmem>>, vector<256x128xbf16>
    %c0_24 = arith.constant 0 : index
    %c128 = arith.constant 128 : index
    %46 = vector.load %arg13[%c0_24, %c128] : memref<256x384xbf16, #tpu.memory_space<vmem>>, vector<256x128xbf16>
    tpu.vector_store %arg13[%c0_24, %c128], %45 {strides = array<i32>} : memref<256x384xbf16, #tpu.memory_space<vmem>>, vector<256x128xbf16>,
    %c9 = arith.constant 9 : index
    %c0_25 = arith.constant 0 : index
    %47 = vector.load %arg12[%c9, %c0_25] : memref<304x128xbf16, #tpu.memory_space<vmem>>, vector<256x128xbf16>
    %cst_26 = arith.constant 0.000000e+00 : bf16
    %48 = vector.broadcast %cst_26 : bf16 to vector<256x128xbf16>
    %49 = vector.shape_cast %38 : vector<256x1xi1> to vector<256x1xi1>
    %50 = vector.broadcast %49 : vector<256x1xi1> to vector<256x128xi1>
    %51 = arith.select %50, %47, %48 : vector<256x128xi1>, vector<256x128xbf16>
    %c0_27 = arith.constant 0 : index
    %c256 = arith.constant 256 : index
    %52 = vector.load %arg13[%c0_27, %c256] : memref<256x384xbf16, #tpu.memory_space<vmem>>, vector<256x128xbf16>
    tpu.vector_store %arg13[%c0_27, %c256], %51 {strides = array<i32>} : memref<256x384xbf16, #tpu.memory_space<vmem>>, vector<256x128xbf16>,
    %c0_28 = arith.constant 0 : index
    %c0_29 = arith.constant 0 : index
    %53 = vector.load %arg13[%c0_28, %c0_29] : memref<256x384xbf16, #tpu.memory_space<vmem>>, vector<256x384xbf16>
    %c0_30 = arith.constant 0 : index
    %c0_31 = arith.constant 0 : index
    %54 = vector.load %arg5[%c0_30, %c0_31] : memref<1152x128xbf16, #tpu.memory_space<vmem>>, vector<384x128xbf16>
    %cst_32 = arith.constant dense<0.000000e+00> : vector<256x128xf32>
    %55 = tpu.matmul %53, %54, %cst_32 {dimension_numbers = #tpu.dot_dimension_numbers<[1], [0], [0], [1], [0, 0, 1, 1], [], []>} : vector<256x384xbf16>, vector<384x128xbf16>, vector<256x128xf32> -> vector<256x128xf32>
    %c23 = arith.constant 23 : index
    %c0_33 = arith.constant 0 : index
    %56 = vector.load %arg12[%c23, %c0_33] : memref<304x128xbf16, #tpu.memory_space<vmem>>, vector<256x128xbf16>
    %cst_34 = arith.constant 0.000000e+00 : bf16
    %57 = vector.broadcast %cst_34 : bf16 to vector<256x128xbf16>
    %58 = vector.shape_cast %36 : vector<256x1xi1> to vector<256x1xi1>
    %59 = vector.broadcast %58 : vector<256x1xi1> to vector<256x128xi1>
    %60 = arith.select %59, %56, %57 : vector<256x128xi1>, vector<256x128xbf16>
    %c0_35 = arith.constant 0 : index
    %c0_36 = arith.constant 0 : index
    %61 = vector.load %arg13[%c0_35, %c0_36] : memref<256x384xbf16, #tpu.memory_space<vmem>>, vector<256x128xbf16>
    tpu.vector_store %arg13[%c0_35, %c0_36], %60 {strides = array<i32>} : memref<256x384xbf16, #tpu.memory_space<vmem>>, vector<256x128xbf16>,
    %c24_37 = arith.constant 24 : index
    %c0_38 = arith.constant 0 : index
    %62 = vector.load %arg12[%c24_37, %c0_38] : memref<304x128xbf16, #tpu.memory_space<vmem>>, vector<256x128xbf16>
    %c0_39 = arith.constant 0 : index
    %c128_40 = arith.constant 128 : index
    %63 = vector.load %arg13[%c0_39, %c128_40] : memref<256x384xbf16, #tpu.memory_space<vmem>>, vector<256x128xbf16>
    tpu.vector_store %arg13[%c0_39, %c128_40], %62 {strides = array<i32>} : memref<256x384xbf16, #tpu.memory_space<vmem>>, vector<256x128xbf16>,
    %c25 = arith.constant 25 : index
    %c0_41 = arith.constant 0 : index
    %64 = vector.load %arg12[%c25, %c0_41] : memref<304x128xbf16, #tpu.memory_space<vmem>>, vector<256x128xbf16>
    %cst_42 = arith.constant 0.000000e+00 : bf16
    %65 = vector.broadcast %cst_42 : bf16 to vector<256x128xbf16>
    %66 = vector.shape_cast %38 : vector<256x1xi1> to vector<256x1xi1>
    %67 = vector.broadcast %66 : vector<256x1xi1> to vector<256x128xi1>
    %68 = arith.select %67, %64, %65 : vector<256x128xi1>, vector<256x128xbf16>
    %c0_43 = arith.constant 0 : index
    %c256_44 = arith.constant 256 : index
    %69 = vector.load %arg13[%c0_43, %c256_44] : memref<256x384xbf16, #tpu.memory_space<vmem>>, vector<256x128xbf16>
    tpu.vector_store %arg13[%c0_43, %c256_44], %68 {strides = array<i32>} : memref<256x384xbf16, #tpu.memory_space<vmem>>, vector<256x128xbf16>,
    %c0_45 = arith.constant 0 : index
    %c0_46 = arith.constant 0 : index
    %70 = vector.load %arg13[%c0_45, %c0_46] : memref<256x384xbf16, #tpu.memory_space<vmem>>, vector<256x384xbf16>
    %c384 = arith.constant 384 : index
    %c0_47 = arith.constant 0 : index
    %71 = vector.load %arg5[%c384, %c0_47] : memref<1152x128xbf16, #tpu.memory_space<vmem>>, vector<384x128xbf16>
    %cst_48 = arith.constant dense<0.000000e+00> : vector<256x128xf32>
    %72 = tpu.matmul %70, %71, %cst_48 {dimension_numbers = #tpu.dot_dimension_numbers<[1], [0], [0], [1], [0, 0, 1, 1], [], []>} : vector<256x384xbf16>, vector<384x128xbf16>, vector<256x128xf32> -> vector<256x128xf32>
    %73 = arith.addf %55, %72 : vector<256x128xf32>
    %c39 = arith.constant 39 : index
    %c0_49 = arith.constant 0 : index
    %74 = vector.load %arg12[%c39, %c0_49] : memref<304x128xbf16, #tpu.memory_space<vmem>>, vector<256x128xbf16>
    %cst_50 = arith.constant 0.000000e+00 : bf16
    %75 = vector.broadcast %cst_50 : bf16 to vector<256x128xbf16>
    %76 = vector.shape_cast %36 : vector<256x1xi1> to vector<256x1xi1>
    %77 = vector.broadcast %76 : vector<256x1xi1> to vector<256x128xi1>
    %78 = arith.select %77, %74, %75 : vector<256x128xi1>, vector<256x128xbf16>
    %c0_51 = arith.constant 0 : index
    %c0_52 = arith.constant 0 : index
    %79 = vector.load %arg13[%c0_51, %c0_52] : memref<256x384xbf16, #tpu.memory_space<vmem>>, vector<256x128xbf16>
    tpu.vector_store %arg13[%c0_51, %c0_52], %78 {strides = array<i32>} : memref<256x384xbf16, #tpu.memory_space<vmem>>, vector<256x128xbf16>,
    %c40 = arith.constant 40 : index
    %c0_53 = arith.constant 0 : index
    %80 = vector.load %arg12[%c40, %c0_53] : memref<304x128xbf16, #tpu.memory_space<vmem>>, vector<256x128xbf16>
    %c0_54 = arith.constant 0 : index
    %c128_55 = arith.constant 128 : index
    %81 = vector.load %arg13[%c0_54, %c128_55] : memref<256x384xbf16, #tpu.memory_space<vmem>>, vector<256x128xbf16>
    tpu.vector_store %arg13[%c0_54, %c128_55], %80 {strides = array<i32>} : memref<256x384xbf16, #tpu.memory_space<vmem>>, vector<256x128xbf16>,
    %c41 = arith.constant 41 : index
    %c0_56 = arith.constant 0 : index
    %82 = vector.load %arg12[%c41, %c0_56] : memref<304x128xbf16, #tpu.memory_space<vmem>>, vector<256x128xbf16>
    %cst_57 = arith.constant 0.000000e+00 : bf16
    %83 = vector.broadcast %cst_57 : bf16 to vector<256x128xbf16>
    %84 = vector.shape_cast %38 : vector<256x1xi1> to vector<256x1xi1>
    %85 = vector.broadcast %84 : vector<256x1xi1> to vector<256x128xi1>
    %86 = arith.select %85, %82, %83 : vector<256x128xi1>, vector<256x128xbf16>
    %c0_58 = arith.constant 0 : index
    %c256_59 = arith.constant 256 : index
    %87 = vector.load %arg13[%c0_58, %c256_59] : memref<256x384xbf16, #tpu.memory_space<vmem>>, vector<256x128xbf16>
    tpu.vector_store %arg13[%c0_58, %c256_59], %86 {strides = array<i32>} : memref<256x384xbf16, #tpu.memory_space<vmem>>, vector<256x128xbf16>,
    %c0_60 = arith.constant 0 : index
    %c0_61 = arith.constant 0 : index
    %88 = vector.load %arg13[%c0_60, %c0_61] : memref<256x384xbf16, #tpu.memory_space<vmem>>, vector<256x384xbf16>
    %c768 = arith.constant 768 : index
    %c0_62 = arith.constant 0 : index
    %89 = vector.load %arg5[%c768, %c0_62] : memref<1152x128xbf16, #tpu.memory_space<vmem>>, vector<384x128xbf16>
    %cst_63 = arith.constant dense<0.000000e+00> : vector<256x128xf32>
    %90 = tpu.matmul %88, %89, %cst_63 {dimension_numbers = #tpu.dot_dimension_numbers<[1], [0], [0], [1], [0, 0, 1, 1], [], []>} : vector<256x384xbf16>, vector<384x128xbf16>, vector<256x128xf32> -> vector<256x128xf32>
    %91 = arith.addf %73, %90 : vector<256x128xf32>
    %c0_64 = arith.constant 0 : index
    %c0_65 = arith.constant 0 : index
    %92 = vector.load %arg6[%c0_64, %c0_65] : memref<1x128xf32, #tpu.memory_space<vmem>>, vector<1x128xf32>
    %93 = vector.broadcast %92 : vector<1x128xf32> to vector<256x128xf32>
    %94 = arith.mulf %91, %93 : vector<256x128xf32>
    %c0_66 = arith.constant 0 : index
    %c0_67 = arith.constant 0 : index
    %95 = vector.load %arg7[%c0_66, %c0_67] : memref<1x128xf32, #tpu.memory_space<vmem>>, vector<1x128xf32>
    %96 = vector.broadcast %95 : vector<1x128xf32> to vector<256x128xf32>
    %97 = arith.addf %94, %96 : vector<256x128xf32>
    %cst_68 = arith.constant 0.000000e+00 : f32
    %98 = vector.broadcast %cst_68 : f32 to vector<256x128xf32>
    %99 = arith.maximumf %97, %98 : vector<256x128xf32>
    %100 = arith.truncf %99 : vector<256x128xf32> to vector<256x128xbf16>
    %c0_69 = arith.constant 0 : index
    %c0_70 = arith.constant 0 : index
    %101 = vector.load %arg8[%c0_69, %c0_70] : memref<128x128xbf16, #tpu.memory_space<vmem>>, vector<128x128xbf16>
    %cst_71 = arith.constant dense<0.000000e+00> : vector<256x128xf32>
    %102 = tpu.matmul %100, %101, %cst_71 {dimension_numbers = #tpu.dot_dimension_numbers<[1], [0], [0], [1], [0, 0, 1, 1], [], []>} : vector<256x128xbf16>, vector<128x128xbf16>, vector<256x128xf32> -> vector<256x128xf32>
    %c0_72 = arith.constant 0 : index
    %c0_73 = arith.constant 0 : index
    %103 = vector.load %arg9[%c0_72, %c0_73] : memref<1x128xf32, #tpu.memory_space<vmem>>, vector<1x128xf32>
    %104 = vector.broadcast %103 : vector<1x128xf32> to vector<256x128xf32>
    %105 = arith.mulf %102, %104 : vector<256x128xf32>
    %c0_74 = arith.constant 0 : index
    %c0_75 = arith.constant 0 : index
    %106 = vector.load %arg10[%c0_74, %c0_75] : memref<1x128xf32, #tpu.memory_space<vmem>>, vector<1x128xf32>
    %107 = vector.broadcast %106 : vector<1x128xf32> to vector<256x128xf32>
    %108 = arith.addf %105, %107 : vector<256x128xf32>
    %c0_76 = arith.constant 0 : index
    %c0_77 = arith.constant 0 : index
    %c0_78 = arith.constant 0 : index
    %109 = vector.load %arg1[%c0_76, %c0_77, %c0_78] : memref<1x256x128xbf16, #tpu.memory_space<vmem>>, vector<1x256x128xbf16>
    %110 = vector.shape_cast %109 : vector<1x256x128xbf16> to vector<256x128xbf16>
    %111 = arith.extf %110 : vector<256x128xbf16> to vector<256x128xf32>
    %112 = arith.addf %108, %111 : vector<256x128xf32>
    %cst_79 = arith.constant 0.000000e+00 : f32
    %113 = vector.broadcast %cst_79 : f32 to vector<256x128xf32>
    %114 = arith.maximumf %112, %113 : vector<256x128xf32>
    %115 = arith.truncf %114 : vector<256x128xf32> to vector<256x128xbf16>
    %c0_80 = arith.constant 0 : index
    %c0_81 = arith.constant 0 : index
    %c0_82 = arith.constant 0 : index
    %116 = vector.load %arg11[%c0_80, %c0_81, %c0_82] : memref<1x256x128xbf16, #tpu.memory_space<vmem>>, vector<1x256x128xbf16>
    %117 = vector.shape_cast %116 : vector<1x256x128xbf16> to vector<256x128xbf16>
    %118 = vector.shape_cast %115 : vector<256x128xbf16> to vector<1x256x128xbf16>
    tpu.vector_store %arg11[%c0_80, %c0_81, %c0_82], %118 {strides = array<i32>} : memref<1x256x128xbf16, #tpu.memory_space<vmem>>, vector<1x256x128xbf16>,
    return
  }
  func.func @transform_0(%arg0: i32) -> (i32, i32, i32) {
    %c0_i32 = arith.constant 0 : i32
    %c0_i32_0 = arith.constant 0 : i32
    %c0_i32_1 = arith.constant 0 : i32
    return %arg0, %c0_i32, %c0_i32_0 : i32, i32, i32
  }
  func.func @transform_1(%arg0: i32) -> (i32, i32) {
    %c0_i32 = arith.constant 0 : i32
    %c0_i32_0 = arith.constant 0 : i32
    %c0_i32_1 = arith.constant 0 : i32
    return %c0_i32, %c0_i32_0 : i32, i32
  }
  func.func @transform_2(%arg0: i32) -> (i32, i32) {
    %c0_i32 = arith.constant 0 : i32
    %c0_i32_0 = arith.constant 0 : i32
    %c0_i32_1 = arith.constant 0 : i32
    return %c0_i32, %c0_i32_0 : i32, i32
  }
  func.func @transform_3(%arg0: i32) -> (i32, i32) {
    %c0_i32 = arith.constant 0 : i32
    %c0_i32_0 = arith.constant 0 : i32
    %c0_i32_1 = arith.constant 0 : i32
    return %c0_i32, %c0_i32_0 : i32, i32
  }
  func.func @transform_4(%arg0: i32) -> (i32, i32) {
    %c0_i32 = arith.constant 0 : i32
    %c0_i32_0 = arith.constant 0 : i32
    %c0_i32_1 = arith.constant 0 : i32
    return %c0_i32, %c0_i32_0 : i32, i32
  }
  func.func @transform_5(%arg0: i32) -> (i32, i32) {
    %c0_i32 = arith.constant 0 : i32
    %c0_i32_0 = arith.constant 0 : i32
    %c0_i32_1 = arith.constant 0 : i32
    return %c0_i32, %c0_i32_0 : i32, i32
  }
  func.func @transform_6(%arg0: i32) -> (i32, i32) {
    %c0_i32 = arith.constant 0 : i32
    %c0_i32_0 = arith.constant 0 : i32
    %c0_i32_1 = arith.constant 0 : i32
    return %c0_i32, %c0_i32_0 : i32, i32
  }
  func.func @transform_7(%arg0: i32) -> (i32, i32) {
    %c0_i32 = arith.constant 0 : i32
    %c0_i32_0 = arith.constant 0 : i32
    %c0_i32_1 = arith.constant 0 : i32
    return %c0_i32, %c0_i32_0 : i32, i32
  }
  func.func @transform_8(%arg0: i32) -> (i32, i32) {
    %c0_i32 = arith.constant 0 : i32
    %c0_i32_0 = arith.constant 0 : i32
    %c0_i32_1 = arith.constant 0 : i32
    return %c0_i32, %c0_i32_0 : i32, i32
  }
  func.func @transform_9(%arg0: i32) -> (i32, i32) {
    %c0_i32 = arith.constant 0 : i32
    %c0_i32_0 = arith.constant 0 : i32
    %c0_i32_1 = arith.constant 0 : i32
    return %c0_i32, %c0_i32_0 : i32, i32
  }
  func.func @transform_10(%arg0: i32) -> (i32, i32, i32) {
    %c0_i32 = arith.constant 0 : i32
    %c0_i32_0 = arith.constant 0 : i32
    %c0_i32_1 = arith.constant 0 : i32
    return %arg0, %c0_i32, %c0_i32_0 : i32, i32, i32
  }
}

</mosaic_0001>

<bundles_post_ra>
// kernel: tpu_custom_call.1
= control target key start
LH: loop header
LB: loop body
LE: loop exit
PB: predicated region body
PF: predicated region fallthrough
CT: control target
= control target key end

     0   :  { %s10298_s0 = inlined_call_operand.hbm [shape: bf16[2,256,128], index: 0, kind: input, shape index: {}]   ;;  %s10299_s1 = inlined_call_operand.hbm [shape: bf16[128,128], index: 1, kind: input, shape index: {}]   ;;  %s10300_s2 = inlined_call_operand.vmem [shape: f32[1,128], index: 2, kind: input, shape index: {}]   ;;  %s10301_s3 = inlined_call_operand.vmem [shape: f32[1,128], index: 3, kind: input, shape index: {}]   ;;  %s10302_s4 = inlined_call_operand.hbm [shape: bf16[1152,128], index: 4, kind: input, shape index: {}]   ;;  %s10303_s5 = inlined_call_operand.vmem [shape: f32[1,128], index: 5, kind: input, shape index: {}]   ;;  %s10304_s6 = inlined_call_operand.vmem [shape: f32[1,128], index: 6, kind: input, shape index: {}]   ;;  %s10305_s7 = inlined_call_operand.hbm [shape: bf16[128,128], index: 7, kind: input, shape index: {}]   ;;  %s10306_s8 = inlined_call_operand.vmem [shape: f32[1,128], index: 8, kind: input, shape index: {}]   ;;  %s10307_s9 = inlined_call_operand.vmem [shape: f32[1,128], index: 9, kind: input, shape index: {}]   ;;  %s10308_s10 = inlined_call_operand.hbm [shape: bf16[2,256,128], index: 10, kind: output, shape index: {}]  }
   0x1   :  { %10388 = sst [smem:[#allocation46_spill]] %s10307_s9 }
   0x2   :  { %10389 = sst [smem:[#allocation47_spill]] %s10308_s10 }
   0x3   :  { %15 = vsyncpa [#allocation5], 0 }
   0x4   :  { %17 = vsyncpa [#allocation5 + $0x1], 0 }
   0x5   :  { %18 = vsyncpa [#allocation8], 0 }
   0x6   :  { %19 = vsyncpa [#allocation11], 0 }
   0x7   :  { %20 = vsyncpa [#allocation6], 0 }
   0x8   :  { %22 = vsyncpa [#allocation6 + $0x1], 0  ;;  %s8019_s13 = smov 0   ;;  %s8021_s14 = smov 0  }
   0x9   :  { %s8023_s15 = smov 0   ;;  %s8025_s16 = smov 0  }
   0xa LB: > { %10390 = sst [smem:[#allocation17_spill]] %s7939_s13  ;;  %s8040_s17 = sadd.s32 4294967295, %s7951_s16   ;;  %s7951_s16 = sphi %s8025_s16, %s10657_s16   ;;  %s7947_s15 = sphi %s8023_s15, %s10656_s15   ;;  %s7943_s14 = sphi %s8021_s14, %s10655_s14   ;;  %s7939_s13 = sphi %s8019_s13, %s10654_s13  }
   0xb   : > { %s6301_s18 = sadd.s32 4294967294, %s7951_s16   ;;  %p48_p0 = scmp.ne.s32.totalorder %s7943_s14, %s7939_s13 }
   0xc   : > { %p10309_p1 = scmp.eq.s32.totalorder %s8040_s17, 0  ;;  %p267_p3 = scmp.eq.s32.totalorder %s6301_s18, 1 }
   0xd   : > { %p6302_p5 = scmp.ge.s32.totalorder %s7951_s16, 1  ;;  %p274_p7 = scmp.lt.s32.totalorder %s7951_s16, 3 }
   0xe   : > { %p8049_p4 = por %p10309_p1, %p48_p0  ;;  %p8054_p6 = por %p267_p3, %p48_p0 }
   0xf   : > { %p8059_p8 = pnand %p6302_p5, %p274_p7  ;;  %s7953_s22 = smov [#allocation7]  }
  0x10   : > { %s10391_s19 = scalar_select %p8049_p4, 1, 0 }
  0x11   : > { %s10392_s20 = scalar_select %p8054_p6, 1, 0 }
  0x12   : > { %s10394_s21 = scalar_select %p8059_p8, 1, 0 }
  0x13   : > { %10393 = sst [smem:[#allocation18_spill]] %s10392_s20  ;;  %s286_s23 = sshll.u32 %s7953_s22, 4  ;;  %s8063_s23 = int_to_ptr.vmem [resolvable:$true] %s286_s23 }
  0x14   : > { %p7591_p9 = pneg %p8059_p8  ;;  %s7954_s25 = smov [#allocation9]  }
  0x15   : > { %s305_s26 = sshll.u32 %s7954_s25, 4  ;;  %s7955_s27 = smov [#allocation10]   ;;  %s8074_s26 = int_to_ptr.vmem [resolvable:$true] %s305_s26 }
  0x16   : > { %p8070_p11 = pnand %p7591_p9, %p10309_p1  ;;  %s8076_s28 = sshll.u32 %s7955_s27, 4  ;;  %s325_s28 = int_to_ptr.vmem [resolvable:$true] %s8076_s28 }
  0x17   : > { %s7763_s11 = scalar_lea.hbm %s10299_s1, 1024 }
  0x18   : > { %p7764_p12 = scmp.ne.s32.totalorder %s10299_s1, %s7763_s11  ;;  %p8086_p13 = pneg %p8070_p11 }
  0x19   : > { %p7770_p5 = scmp.lt.u32.totalorder %s7763_s11, %s10299_s1 }
  0x1a   : > { %p7766_p0 = pnand %p8086_p13, %p7764_p12 }
  0x1c   : > { %p7767_p3 = pneg %p7766_p0 }
  0x1e   : > { %p7772_p7 = pnand %p7770_p5, %p7767_p3 }
  0x20   : > { %7775 = shalt.err (!%p7772_p7)
}
  0x21   : > { %s7776_s29 = scalar_lea.vmem %s8063_s23, 1024  ;;  %p7784_p2 = scmp.lt.s32.totalorder %s8063_s23, %s8063_s23 }
  0x22   : > { %p7777_p9 = scmp.ne.s32.totalorder %s8063_s23, %s7776_s29  ;;  %p7785_p6 = scmp.lt.s32.totalorder %s7776_s29, %s7776_s29 }
  0x24   : > { %p7779_p10 = pnand %p7777_p9, %p8086_p13  ;;  %p7786_p12 = por %p7785_p6, %p7784_p2 }
  0x26   : > { %p7780_p1 = pneg %p7779_p10 }
  0x28   : > { %p7787_p0 = pnand %p7786_p12, %p7780_p1 }
  0x2a   : > { %7790 = shalt.err (!%p7787_p0)
}
  0x2b   : > { %s7956_s30 = smov 64   ;;  %s7957_s11 = smov 4  }
  0x2c   : > { %7594 = dma.hbm_to_vmem [thread:$0]  (!%p8070_p11), %s10299_s1, 1024, %s8063_s23, [#allocation8], %s7956_s30, %s7956_s30, %s7957_s11  }
  0x2d   : > { %s7791_s29 = scalar_lea.hbm %s10302_s4, 9216 }
  0x2e   : > { %p7792_p1 = scmp.ne.s32.totalorder %s10302_s4, %s7791_s29  ;;  %p7798_p10 = scmp.lt.u32.totalorder %s7791_s29, %s10302_s4 }
  0x30   : > { %p7794_p2 = pnand %p7792_p1, %p8086_p13 }
  0x32   : > { %p7795_p6 = pneg %p7794_p2 }
  0x34   : > { %p7800_p3 = pnand %p7798_p10, %p7795_p6 }
  0x36   : > { %7803 = shalt.err (!%p7800_p3)
}
  0x37   : > { %s7804_s23 = scalar_lea.vmem %s8074_s26, 9216  ;;  %p7812_p12 = scmp.lt.s32.totalorder %s8074_s26, %s8074_s26 }
  0x38   : > { %p7805_p5 = scmp.ne.s32.totalorder %s8074_s26, %s7804_s23  ;;  %p7813_p0 = scmp.lt.s32.totalorder %s7804_s23, %s7804_s23 }
  0x3a   : > { %p7807_p7 = pnand %p7805_p5, %p8086_p13  ;;  %p7814_p1 = por %p7813_p0, %p7812_p12 }
  0x3c   : > { %p7808_p9 = pneg %p7807_p7 }
  0x3e   : > { %p7815_p2 = pnand %p7814_p1, %p7808_p9 }
  0x40   : > { %7818 = shalt.err (!%p7815_p2)
}
  0x41   : > { %7597 = dma.hbm_to_vmem [thread:$0]  (!%p8070_p11), %s10302_s4, 9216, %s8074_s26, [#allocation8], %s7956_s30, %s7956_s30, %s7957_s11  }
  0x42   : > { %s7819_s12 = scalar_lea.hbm %s10305_s7, 1024 }
  0x43   : > { %p7820_p6 = scmp.ne.s32.totalorder %s10305_s7, %s7819_s12  ;;  %p7826_p5 = scmp.lt.u32.totalorder %s7819_s12, %s10305_s7 }
  0x45   : > { %p7822_p10 = pnand %p7820_p6, %p8086_p13 }
  0x47   : > { %p7823_p3 = pneg %p7822_p10 }
  0x49   : > { %p7828_p7 = pnand %p7826_p5, %p7823_p3 }
  0x4b   : > { %7831 = shalt.err (!%p7828_p7)
}
  0x4c   : > { %s7832_s23 = scalar_lea.vmem %s325_s28, 1024  ;;  %p7840_p1 = scmp.lt.s32.totalorder %s325_s28, %s325_s28 }
  0x4d   : > { %p7833_p9 = scmp.ne.s32.totalorder %s325_s28, %s7832_s23  ;;  %p7841_p2 = scmp.lt.s32.totalorder %s7832_s23, %s7832_s23 }
  0x4f   : > { %p7835_p12 = pnand %p7833_p9, %p8086_p13  ;;  %p7842_p4 = por %p7841_p2, %p7840_p1 }
  0x51   : > { %p7836_p0 = pneg %p7835_p12 }
  0x53   : > { %p7843_p8 = pnand %p7842_p4, %p7836_p0 }
  0x55   : > { %7846 = shalt.err (!%p7843_p8)
}
  0x56   : > { %7600 = dma.hbm_to_vmem [thread:$0]  (!%p8070_p11), %s10305_s7, 1024, %s325_s28, [#allocation11], %s7956_s30, %s7956_s30, %s7957_s11  }
  0x57   : > { %s8159_s22 = sadd.s32 1, %s7951_s16   ;;  %s35_s10 = sadd.s32 1, %s7947_s15 }
  0x58   : > { %s32_s24 = ssub.s32 %s7951_s16, %s8159_s22  ;;  %p42_p8 = scmp.ne.s32.totalorder %s7947_s15, %s7943_s14 }
  0x59   : > { %p33_p4 = scmp.eq.s32.totalorder %s32_s24, 0  ;;  %p43_p13 = scmp.eq.s32.totalorder %s7951_s16, 0 }
  0x5a   : > { %p7612_p6 = scmp.lt.s32.totalorder %s7951_s16, 2  ;;  %p10397_p3 = scmp.eq.s32.totalorder %s8040_s17, 1 }
  0x5b   : > { %s8169_s13 = scalar_select %p33_p4, %s7947_s15, %s35_s10  }
  0x5c   : > { %p44_p10 = por %p43_p13, %p42_p8  ;;  %p8173_p5 = por %p10397_p3, %p42_p8 }
  0x5d   : > { %s344_s12 = sand.u32 1, %s7947_s15   ;;  %s6495_s18 = sshll.u32 %s7951_s16, 11 }
  0x5e   : > { %s6307_s28 = sshll.u32 %s344_s12, 7  ;;  %s8182_s29 = scalar_lea.hbm %s10298_s0, %s6495_s18 }
  0x5f   : > { %s348_s23 = scalar_lea.vmem [#allocation4], %s6307_s28  ;;  %p8184_p11 = pnand %p7612_p6, %p44_p10 }
  0x60   : > { %s355_s26 = sshll.u32 %s348_s23, 4  ;;  %s8190_s24 = scalar_lea.sflag [#allocation5], %s344_s12  ;;  %s8188_s26 = int_to_ptr.vmem [resolvable:$true] %s355_s26 }
  0x61   : > { %s7847_s10 = scalar_lea.hbm %s8182_s29, 2048  ;;  %p7849_p9 = pneg %p8184_p11 }
  0x62   : > { %p7848_p7 = scmp.ne.s32.totalorder %s8182_s29, %s7847_s10  ;;  %s7852_s25 = scalar_lea.hbm %s10298_s0, 4096 }
  0x63   : > { %p7853_p1 = scmp.lt.u32.totalorder %s8182_s29, %s10298_s0  ;;  %p7854_p2 = scmp.lt.u32.totalorder %s7852_s25, %s7847_s10 }
  0x64   : > { %p7850_p12 = pnand %p7849_p9, %p7848_p7  ;;  %p7856_p8 = scmp.lt.u32.totalorder %s7847_s10, %s8182_s29 }
  0x65   : > { %p7855_p4 = por %p7854_p2, %p7853_p1 }
  0x66   : > { %p7851_p0 = pneg %p7850_p12 }
  0x67   : > { %p7857_p13 = por %p7856_p8, %p7855_p4 }
  0x69   : > { %p7858_p6 = pnand %p7857_p13, %p7851_p0 }
  0x6b   : > { %7861 = shalt.err (!%p7858_p6)
}
  0x6c   : > { %s7862_s12 = scalar_lea.vmem %s8188_s26, 2048  ;;  %s7958_s18 = smov [#allocation4]  }
  0x6d   : > { %p7863_p10 = scmp.ne.s32.totalorder %s8188_s26, %s7862_s12  ;;  %s7867_s28 = sshll.u32 %s7958_s18, 4  ;;  %s7868_s28 = int_to_ptr.vmem [resolvable:$false] %s7867_s28 }
  0x6e   : > { %s7869_s27 = scalar_lea.vmem %s7868_s28, 4096  ;;  %p7870_p12 = scmp.lt.s32.totalorder %s8188_s26, %s7868_s28 }
  0x6f   : > { %p7865_p3 = pnand %p7863_p10, %p7849_p9  ;;  %p7871_p1 = scmp.lt.s32.totalorder %s7869_s27, %s7862_s12 }
  0x71   : > { %p7866_p7 = pneg %p7865_p3  ;;  %p7872_p2 = por %p7871_p1, %p7870_p12 }
  0x73   : > { %p7873_p4 = pnand %p7872_p2, %p7866_p7 }
  0x75   : > { %7876 = shalt.err (!%p7873_p4)
}
  0x76   : > { %7604 = dma.hbm_to_vmem [thread:$0]  (!%p8184_p11), %s8182_s29, 2048, %s8188_s26, %s8190_s24, %s7956_s30, %s7956_s30, %s7957_s11  }
  0x77   : > { %p10400_p9 = scmp.ne.s32.totalorder %s10394_s21, 0 }
  0x79   : > { %367 = sbr.rel (%p10400_p9) target bundleno = 1218 (0x4c2), region = 60 }
  0x80   : > { %s8224_s10 = sand.u32 1, %s7943_s14   ;;  %p10401_p0 = scmp.ne.s32.totalorder %s10391_s19, 0 }
  0x81   : > { %s6311_s25 = sshll.u32 %s8224_s10, 7  ;;  %s370_s23 = scalar_lea.sflag [#allocation5], %s8224_s10 }
  0x82   : > { %s8230_s9 = scalar_lea.vmem [#allocation4], %s6311_s25 }
  0x83   : > { %7922 = dma.done.wait (%p10401_p0), %s370_s23, 2048  }
  0x84   : > { %7924 = vsyncadd (%p10401_p0), %s370_s23, 4294965248  ;;  %p10402_p11 = scmp.eq.s32.totalorder %s8040_s17, 0 }
  0x86   : > { %7926 = dma.done.wait (%p10402_p11), [#allocation8], 10240   ;;  %p10403_p8 = pmov %p10402_p11 }
  0x88   : > { %7928 = vsyncadd (%p10403_p8), [#allocation8], 4294957056  ;;  %p10404_p13 = pmov %p10403_p8 }
  0x89   : > { %p10405_p6 = pmov %p10403_p8 }
  0x8a   : > { %7930 = dma.done.wait (%p10404_p13), [#allocation11], 1024  }
  0x8b   : > { %7932 = vsyncadd (%p10405_p6), [#allocation11], 4294966272  ;;  %v7658_v0 = vld [vmem:[#allocation7] sm:$0xff]   ;;  %v7659_v1 = vld [vmem:[#allocation7 + $0x8] sm:$0xff]   ;;  %v7959_v33 = vmov 0   ;;  %v990_v48 = vlaneseq  ;;  %vm7960_vm3 = vmmov 1  }
  0x8c   : > { %7159 = vmatprep.subr.bf16.mxu0 %v7658_v0  ;;  %7399 = vmatprep.subr.bf16.mxu1 %v7658_v0  ;;  %v7660_v2 = vld [vmem:[#allocation7 + $0x10] sm:$0xff]   ;;  %v7661_v3 = vld [vmem:[#allocation7 + $0x18] sm:$0xff]   ;;  %v7666_v4 = vld [vmem:[%s8230_s9] sm:$0xff]   ;;  %889 = vst [vmem:[#allocation2 + $0x8] sm:$0xf] %v7959_v33  ;;  %s10647_s19 = sld [smem:[#allocation46_spill]] }
  0x8d   : > { %7160 = vmatpush3.bf16.msra.mxu0 %v7658_v0  ;;  %7407 = vmatpush3.bf16.msra.mxu1 %v7658_v0  ;;  %v7662_v5 = vld [vmem:[#allocation7 + $0x20] sm:$0xff]   ;;  %v7663_v7 = vld [vmem:[#allocation7 + $0x28] sm:$0xff]   ;;  %v7664_v8 = vld [vmem:[#allocation7 + $0x30] sm:$0xff]   ;;  %888 = vst [vmem:[#allocation2] sm:$0xff] %v7959_v33  ;;  %v8264_v49 = vshrl.u32 %v990_v48, 7  ;;  %s10167_s21 = scalar_lea.vmem [#allocation12], %s6311_s25 }
  0x8e   : > { %7161 = vmatprep.subr.bf16.mxu0 %v7659_v1  ;;  %7400 = vmatprep.subr.bf16.mxu1 %v7659_v1  ;;  %v7672_v6 = vld [vmem:[%s8230_s9 + $0x40] sm:$0xff]   ;;  %v7665_v9 = vld [vmem:[#allocation7 + $0x38] sm:$0xff]   ;;  %v7667_v11 = vld [vmem:[%s8230_s9 + $0x8] sm:$0xff]   ;;  %890 = vst [vmem:[#allocation2 + $0x88] sm:$0xf0] %v7959_v33  ;;  %s6528_s25 = sshll.u32 %s8040_s17, 11 }
  0x8f   : > { %7175 = vmatprep.mubr.bf16.mxu0 %v7666_v4  ;;  %7191 = vmatprep.mubr.bf16.mxu1 %v7672_v6  ;;  %v7682_v10 = vld [vmem:[#allocation9 + $0x100] sm:$0xff]   ;;  %v7673_v12 = vld [vmem:[%s8230_s9 + $0x48] sm:$0xff]   ;;  %v7668_v13 = vld [vmem:[%s8230_s9 + $0x10] sm:$0xff]   ;;  %891 = vst [vmem:[#allocation2 + $0x90] sm:$0xff] %v7959_v33  ;;  %v993_v52 = vadd.s32 16, %v8264_v49  ;;  %v1027_v53 = vand.u32 15, %v8264_v49 }
  0x90   : > { %v7676_v14 = vld [vmem:[%s8230_s9 + $0x50] sm:$0xff]   ;;  %v7669_v15 = vld [vmem:[%s8230_s9 + $0x18] sm:$0xff]   ;;  %v7670_v17 = vld [vmem:[%s8230_s9 + $0x20] sm:$0xff]   ;;  %10406 = vst [vmem:[#allocation19_spill] sm:$0xff] %v8264_v49  ;;  %v992_v54 = vadd.s32 8, %v8264_v49  ;;  %v994_v55 = vadd.s32 24, %v8264_v49 }
  0x91   : > { %7162 = vmatpush3.bf16.msra.mxu0 %v7659_v1  ;;  %7408 = vmatpush3.bf16.msra.mxu1 %v7659_v1  ;;  %v7677_v16 = vld [vmem:[%s8230_s9 + $0x58] sm:$0xff]   ;;  %v7678_v18 = vld [vmem:[%s8230_s9 + $0x60] sm:$0xff]   ;;  %v7671_v19 = vld [vmem:[%s8230_s9 + $0x28] sm:$0xff]   ;;  %v1041_v56 = vand.u32 15, %v993_v52  ;;  %vm1407_vm0 = vcmp.ge.s32.totalorder %v1027_v53, 1  ;;  %v995_v57 = vadd.s32 32, %v8264_v49 }
  0x92   : > { %7163 = vmatprep.subr.bf16.mxu0 %v7660_v2  ;;  %7401 = vmatprep.subr.bf16.mxu1 %v7660_v2  ;;  %v7679_v20 = vld [vmem:[%s8230_s9 + $0x68] sm:$0xff]   ;;  %v7674_v21 = vld [vmem:[%s8230_s9 + $0x30] sm:$0xff]   ;;  %v7675_v23 = vld [vmem:[%s8230_s9 + $0x38] sm:$0xff]   ;;  %v1034_v58 = vand.u32 15, %v992_v54  ;;  %v1048_v59 = vand.u32 15, %v994_v55  ;;  %v996_v60 = vadd.s32 40, %v8264_v49 }
  0x93   : > { %v7680_v22 = vld [vmem:[%s8230_s9 + $0x70] sm:$0xff]   ;;  %v7681_v24 = vld [vmem:[%s8230_s9 + $0x78] sm:$0xff]   ;;  %v7683_v25 = vld [vmem:[#allocation9 + $0xc0] sm:$0xff]   ;;  %vm8272_vm2 = vcmp.ge.s32.totalorder %v1041_v56, 1  ;;  %v1055_v62 = vand.u32 15, %v995_v57  ;;  %v998_v0 = vadd.s32 56, %v8264_v49 }
  0x94   : > { %v7686_v26 = vld [vmem:[#allocation9 + $0x140] sm:$0xff]   ;;  %v7684_v27 = vld [vmem:[#allocation9 + $0x108] sm:$0xff]   ;;  %v7687_v30 = vld [vmem:[#allocation9 + $0x110] sm:$0xff]   ;;  %vm1440_vm5 = vcmp.le.s32.totalorder %v1034_v58, 14  ;;  %vm8276_vm6 = vcmp.le.s32.totalorder %v1048_v59, 14  ;;  %v1004_v48 = vadd.s32 104, %v8264_v49 }
  0x95   : > { %7164 = vmatpush3.bf16.msra.mxu0 %v7660_v2  ;;  %7409 = vmatpush3.bf16.msra.mxu1 %v7660_v2  ;;  %v7685_v28 = vld [vmem:[#allocation9 + $0xc8] sm:$0xff]   ;;  %v7688_v31 = vld [vmem:[#allocation9 + $0xd0] sm:$0xff]   ;;  %v7690_v34 = vld [vmem:[#allocation9 + $0x118] sm:$0xff]   ;;  %vm8288_vm9 = vcmp.ge.s32.totalorder %v1055_v62, 1  ;;  %v1006_v53 = vadd.s32 120, %v8264_v49  ;;  %v1014_v57 = vadd.s32 184, %v8264_v49 }
  0x96   : > { %7165 = vmatprep.subr.bf16.mxu0 %v7661_v3  ;;  %7402 = vmatprep.subr.bf16.mxu1 %v7661_v3  ;;  %v7689_v29 = vld [vmem:[#allocation9 + $0x148] sm:$0xff]   ;;  %v7692_v32 = vld [vmem:[#allocation9 + $0x150] sm:$0xff]   ;;  %v7691_v35 = vld [vmem:[#allocation9 + $0xd8] sm:$0xff]   ;;  %v1118_v63 = vand.u32 15, %v1004_v48  ;;  %v1012_v48 = vadd.s32 168, %v8264_v49  ;;  %s10648_s29 = sld [smem:[#allocation47_spill]] }
  0x97   : > { %v7695_v36 = vld [vmem:[#allocation9 + $0x158] sm:$0xff]   ;;  %v7693_v37 = vld [vmem:[#allocation9 + $0x120] sm:$0xff]   ;;  %v7696_v40 = vld [vmem:[#allocation9 + $0x128] sm:$0xff]   ;;  %v1132_v4 = vand.u32 15, %v1006_v53  ;;  %s6186_s17 = scalar_lea.sflag [#allocation6], %s8224_s10  ;;  %s7961_s12 = smov [#allocation12]  }
  0x98   : > { %v7694_v38 = vld [vmem:[#allocation9 + $0xe0] sm:$0xff]   ;;  %v7697_v41 = vld [vmem:[#allocation9 + $0xe8] sm:$0xff]   ;;  %v7699_v43 = vld [vmem:[#allocation9 + $0x130] sm:$0xff]   ;;  %s7881_s18 = sshll.u32 %s7961_s12, 4  ;;  %s7882_s18 = int_to_ptr.vmem [resolvable:$false] %s7881_s18 }
  0x99   : > { %7166 = vmatpush3.bf16.msra.mxu0 %v7661_v3  ;;  %7410 = vmatpush3.bf16.msra.mxu1 %v7661_v3  ;;  %v7698_v39 = vld [vmem:[#allocation9 + $0x160] sm:$0xff]   ;;  %v7701_v42 = vld [vmem:[#allocation9 + $0x168] sm:$0xff]   ;;  %v7700_v44 = vld [vmem:[#allocation9 + $0xf0] sm:$0xff]   ;;  %v1062_v3 = vand.u32 15, %v996_v60  ;;  %s7883_s28 = scalar_lea.vmem %s7882_s18, 4096 }
  0x9a   : > { %7167 = vmatprep.subr.bf16.mxu0 %v7662_v5  ;;  %7403 = vmatprep.subr.bf16.mxu1 %v7662_v5  ;;  %v7704_v45 = vld [vmem:[#allocation9 + $0x170] sm:$0xff]   ;;  %v7702_v46 = vld [vmem:[#allocation9 + $0x138] sm:$0xff]   ;;  %v7706_v51 = vld [vmem:[#allocation9 + $0x40] sm:$0xff]  }
  0x9b   : > { %v7703_v47 = vld [vmem:[#allocation9 + $0xf8] sm:$0xff]   ;;  %vm1552_vm1 = vmpackc.low %vm1407_vm0, %vm1407_vm0  ;;  %vm8302_vm12 = vcmp.le.s32.totalorder %v1062_v3, 14 }
  0x9c   : > { %v7705_v50 = vld [vmem:[#allocation9 + $0x178] sm:$0xff]   ;;  %vm1553_vm4 = vmpackc.low %vm7960_vm3, %vm7960_vm3  ;;  %v1584_v1 = vsel %vm1552_vm1, 65537, %v7959_v33  ;;  %s10250_s26 = scalar_lea.hbm %s10648_s29, %s6528_s25 }
  0x9d   : > { %7168 = vmatpush3.bf16.msra.mxu0 %v7662_v5  ;;  %7411 = vmatpush3.bf16.msra.mxu1 %v7662_v5  ;;  %vm1554_vm7 = vmpackc.low %vm8272_vm2, %vm8272_vm2  ;;  %v8286_v2 = vsel %vm1553_vm4, 65537, %v7959_v33  ;;  %v997_v5 = vadd.s32 48, %v8264_v49 }
  0x9e   : > { %7169 = vmatprep.subr.bf16.mxu0 %v7663_v7  ;;  %7404 = vmatprep.subr.bf16.mxu1 %v7663_v7  ;;  %10411 = vst [vmem:[#allocation20_spill] sm:$0xff] %v8286_v2  ;;  %vm2208_vm8 = vmpackc.low %vm1440_vm5, %vm1440_vm5  ;;  %v1586_v6 = vsel %vm1554_vm7, 65537, %v7959_v33  ;;  %vm10315_vm7 = vsmask.f32 3328 }
  0x9f   : > { %vm2210_vm10 = vmpackc.low %vm8276_vm6, %vm8276_vm6 }
  0xa0   : > { %vm1556_vm11 = vmpackc.low %vm8288_vm9, %vm8288_vm9 }
  0xa1   : > { %7170 = vmatpush3.bf16.msra.mxu0 %v7663_v7  ;;  %7412 = vmatpush3.bf16.msra.mxu1 %v7663_v7  ;;  %v6342_v7 = vcombine.low %v1584_v1, %v8286_v2  ;;  %vm2212_vm13 = vmpackc.low %vm8302_vm12, %vm8302_vm12 }
  0xa2   : > { %7171 = vmatprep.subr.bf16.mxu0 %v7664_v8  ;;  %7405 = vmatprep.subr.bf16.mxu1 %v7664_v8 }
  0xa5   : > { %7172 = vmatpush3.bf16.msra.mxu0 %v7664_v8  ;;  %7413 = vmatpush3.bf16.msra.mxu1 %v7664_v8  ;;  %v1076_v8 = vand.u32 15, %v998_v0 }
  0xa6   : > { %7173 = vmatprep.subr.bf16.mxu0 %v7665_v9  ;;  %7406 = vmatprep.subr.bf16.mxu1 %v7665_v9 }
  0xa7   : > { %vm8315_vm14 = vcmp.le.s32.totalorder %v1076_v8, 14 }
  0xa8   : > { %vm2214_vm0 = vmpackc.low %vm8315_vm14, %vm8315_vm14 }
  0xa9   : > { %7174 = vmatpush3.bf16.msra.mxu0 %v7665_v9  ;;  %7414 = vmatpush3.bf16.msra.mxu1 %v7665_v9  ;;  %v2240_v9 = vsel %vm2208_vm8, 65537, %v7959_v33  ;;  %vm1842_vm8 = vsmask.f32 4352 }
  0xaa   : > { %6727 = vmatprep.subr.bf16.mxu1 %v7682_v10  ;;  %7207 = vmatprep.subr.bf16.mxu0 %v7686_v26 }
  0xac   : > { %7176 = vmatmul.mubr.bf16.vlgmr.msra.gmra.mrb[0].mxu0 %v7667_v11  ;;  %7192 = vmatmul.mubr.bf16.vlgmr.msra.gmra.mrb[0].mxu1 %v7673_v12  ;;  %v1000_v11 = vadd.s32 72, %v8264_v49  ;;  %v2242_v12 = vsel %vm2210_vm10, 65537, %v7959_v33  ;;  %vm8372_vm10 = vcmp.le.s32.totalorder %v1118_v63, 14 }
  0xad   : > { %7179 = vmatprep.mubr.bf16.mxu0 %v7668_v13  ;;  %7195 = vmatprep.mubr.bf16.mxu1 %v7676_v14  ;;  %v1069_v13 = vand.u32 15, %v997_v5  ;;  %v6343_v14 = vcombine.low %v1586_v6, %v8286_v2  ;;  %vm2220_vm12 = vmpackc.low %vm8372_vm10, %vm8372_vm10 }
  0xae   : > { %6728 = vmatpush3.bf16.msra.mxu1 %v7683_v25  ;;  %7208 = vmatpush3.bf16.msra.mxu0 %v7686_v26 }
  0xaf   : > { %6729 = vmatprep.subr.bf16.mxu1 %v7684_v27  ;;  %7209 = vmatprep.subr.bf16.mxu0 %v7689_v29  ;;  %vm8320_vm15 = vcmp.ge.s32.totalorder %v1069_v13, 1  ;;  %v1674_v25 = vshrl.u32 %v6343_v14, 16  ;;  %v2244_v27 = vsel %vm2212_vm13, 65537, %v7959_v33 }
  0xb0   : > { %vm1558_vm1 = vmpackc.low %vm8320_vm15, %vm8320_vm15 }
  0xb2   : > { %6730 = vmatpush3.bf16.msra.mxu1 %v7685_v28  ;;  %7210 = vmatpush3.bf16.msra.mxu0 %v7689_v29 }
  0xb3   : > { %6731 = vmatprep.subr.bf16.mxu1 %v7687_v30  ;;  %7211 = vmatprep.subr.bf16.mxu0 %v7692_v32  ;;  %v1677_v30 = vshll.u32 %v6343_v14, 16 }
  0xb4   : > { %7180 = vmatmul.mubr.bf16.gmra.mrb[4].mxu0 %v7669_v15  ;;  %7196 = vmatmul.mubr.bf16.gmra.mrb[4].mxu1 %v7677_v16  ;;  %v1002_v15 = vadd.s32 88, %v8264_v49  ;;  %v1666_v16 = vshrl.u32 %v6342_v7, 16 }
  0xb5   : > { %7183 = vmatprep.mubr.bf16.mxu0 %v7670_v17  ;;  %7199 = vmatprep.mubr.bf16.mxu1 %v7678_v18  ;;  %v6358_v17 = vcombine.low %v8286_v2, %v2240_v9  ;;  %v1588_v18 = vsel %vm1556_vm11, 65537, %v7959_v33  ;;  %vm8377_vm11 = vcmp.le.s32.totalorder %v1132_v4, 14 }
  0xb6   : > { %6732 = vmatpush3.bf16.msra.mxu1 %v7688_v31  ;;  %7212 = vmatpush3.bf16.msra.mxu0 %v7692_v32  ;;  %v6344_v26 = vcombine.low %v1588_v18, %v8286_v2  ;;  %v1104_v28 = vand.u32 15, %v1002_v15  ;;  %v1668_v29 = vrot.slane %v1666_v16, 4  ;;  %v1001_v16 = vadd.s32 80, %v8264_v49  ;;  %vm2222_vm13 = vmpackc.low %vm8377_vm11, %vm8377_vm11 }
  0xb7   : > { %6733 = vmatprep.subr.bf16.mxu1 %v7690_v34  ;;  %7213 = vmatprep.subr.bf16.mxu0 %v7695_v36  ;;  %v2320_v31 = vshrl.u32 %v6358_v17, 16  ;;  %v2323_v34 = vshll.u32 %v6358_v17, 16 }
  0xb8   : > { %vm8339_vm3 = vcmp.le.s32.totalorder %v1104_v28, 14 }
  0xb9   : > { %vm2218_vm5 = vmpackc.low %vm8339_vm3, %vm8339_vm3 }
  0xba   : > { %6734 = vmatpush3.bf16.msra.mxu1 %v7691_v35  ;;  %7214 = vmatpush3.bf16.msra.mxu0 %v7695_v36  ;;  %v2250_v3 = vsel %vm2218_vm5, 65537, %v7959_v33  ;;  %v1010_v36 = vadd.s32 152, %v8264_v49 }
  0xbb   : > { %6735 = vmatprep.subr.bf16.mxu1 %v7693_v37  ;;  %7215 = vmatprep.subr.bf16.mxu0 %v7698_v39  ;;  %v6363_v13 = vcombine.low %v8286_v2, %v2250_v3  ;;  %v1016_v3 = vadd.s32 200, %v8264_v49 }
  0xbc   : > { %7184 = vmatmul.mubr.bf16.gmra.mrb[8].mxu0 %v7671_v19  ;;  %7200 = vmatmul.mubr.bf16.gmra.mrb[8].mxu1 %v7679_v20  ;;  %v1669_v20 = vshll.u32 %v6342_v7, 16  ;;  %v1160_v53 = vand.u32 15, %v1010_v36 }
  0xbd   : > { %7187 = vmatprep.mubr.bf16.mxu0 %v7674_v21  ;;  %7203 = vmatprep.mubr.bf16.mxu1 %v7680_v22  ;;  %v6359_v21 = vcombine.low %v8286_v2, %v2242_v12  ;;  %v1090_v22 = vand.u32 15, %v1000_v11 }
  0xbe   : > { %6736 = vmatpush3.bf16.msra.mxu1 %v7694_v38  ;;  %7216 = vmatpush3.bf16.msra.mxu0 %v7698_v39  ;;  %v1671_v32 = vrot.slane %v1669_v20, 5  ;;  %v6360_v38 = vcombine.low %v8286_v2, %v2244_v27  ;;  %v2246_v39 = vsel %vm2214_vm0, 65537, %v7959_v33  ;;  %v1202_v20 = vand.u32 15, %v1016_v3 }
  0xbf   : > { %6737 = vmatprep.subr.bf16.mxu1 %v7696_v40  ;;  %7217 = vmatprep.subr.bf16.mxu0 %v7701_v42  ;;  %v2328_v35 = vshrl.u32 %v6359_v21, 16  ;;  %vm8333_vm2 = vcmp.le.s32.totalorder %v1090_v22, 14  ;;  %v2331_v37 = vshll.u32 %v6359_v21, 16  ;;  %v6361_v52 = vcombine.low %v8286_v2, %v2246_v39 }
  0xc0   : > { %vm2216_vm4 = vmpackc.low %vm8333_vm2, %vm8333_vm2  ;;  %v2337_v55 = vshrl.u32 %v6360_v38, 16  ;;  %v2340_v56 = vshll.u32 %v6360_v38, 16  ;;  %v8359_v62 = vor.u32 %v1671_v32, %v1668_v29  ;;  %v2364_v29 = vshrl.u32 %v6363_v13, 16 }
  0xc1   : > { %v2333_v54 = vrot.slane %v2331_v37, 4  ;;  %v2248_v61 = vsel %vm2216_vm4, 65537, %v7959_v33  ;;  %v2346_v0 = vshrl.u32 %v6361_v52, 16  ;;  %v2349_v1 = vshll.u32 %v6361_v52, 16 }
  0xc2   : > { %6738 = vmatpush3.bf16.msra.mxu1 %v7697_v41  ;;  %7218 = vmatpush3.bf16.msra.mxu0 %v7701_v42  ;;  %v1676_v41 = vrot.slane %v1674_v25, 4  ;;  %v1683_v42 = vshrl.u32 %v6344_v26, 16  ;;  %10426 = vst [vmem:[#allocation21_spill] sm:$0xff] %v8359_v62  ;;  %v6362_v8 = vcombine.low %v8286_v2, %v2248_v61  ;;  %v2339_v10 = vrot.slane %v2337_v55, 3 }
  0xc3   : > { %6739 = vmatprep.subr.bf16.mxu1 %v7699_v43  ;;  %7219 = vmatprep.subr.bf16.mxu0 %v7704_v45  ;;  %v1686_v43 = vshll.u32 %v6344_v26, 16  ;;  %v2342_v11 = vrot.slane %v2340_v56, 4  ;;  %v2348_v17 = vrot.slane %v2346_v0, 3  ;;  %v2351_v18 = vrot.slane %v2349_v1, 4 }
  0xc4   : > { %7188 = vmatmul.mubr.bf16.gmra.mrb[12].mxu0 %v7675_v23  ;;  %7204 = vmatmul.mubr.bf16.gmra.mrb[12].mxu1 %v7681_v24  ;;  %v999_v24 = vadd.s32 64, %v8264_v49  ;;  %v1685_v58 = vrot.slane %v1683_v42, 4  ;;  %v2355_v21 = vshrl.u32 %v6362_v8, 16  ;;  %v2358_v22 = vshll.u32 %v6362_v8, 16 }
  0xc5   : > { %v1688_v59 = vrot.slane %v1686_v43, 5  ;;  %v1008_v23 = vadd.s32 136, %v8264_v49  ;;  %v2343_v26 = vor.u32 %v2342_v11, %v2339_v10  ;;  %v8401_v32 = vor.u32 %v2351_v18, %v2348_v17 }
  0xc6   : > { %6740 = vmatpush3.bf16.msra.mxu1 %v7700_v44  ;;  %7220 = vmatpush3.bf16.msra.mxu0 %v7704_v45  ;;  %v1083_v40 = vand.u32 15, %v999_v24  ;;  %v1679_v45 = vrot.slane %v1677_v30, 5  ;;  %v2367_v30 = vshll.u32 %v6363_v13, 16  ;;  %v2357_v37 = vrot.slane %v2355_v21, 3 }
  0xc7   : > { %6741 = vmatprep.subr.bf16.mxu1 %v7702_v46  ;;  %7221 = vmatprep.subr.bf16.mxu0 %v7705_v50  ;;  %v2322_v46 = vrot.slane %v2320_v31, 3  ;;  %v8368_v9 = vor.u32 %v1688_v59, %v1685_v58  ;;  %v1097_v31 = vand.u32 15, %v1001_v16  ;;  %v2360_v38 = vrot.slane %v2358_v22, 4 }
  0xc8   : > { %vm8353_vm6 = vcmp.ge.s32.totalorder %v1083_v40, 1  ;;  %v1680_v5 = vor.u32 %v1679_v45, %v1676_v41  ;;  %v2252_v39 = vsel %vm2220_vm12, 65537, %v7959_v33  ;;  %v1146_v40 = vand.u32 15, %v1008_v23 }
  0xc9   : > { %vm1560_vm9 = vmpackc.low %vm8353_vm6, %vm8353_vm6  ;;  %v2254_v43 = vsel %vm2222_vm13, 65537, %v7959_v33  ;;  %v1003_v44 = vadd.s32 96, %v8264_v49  ;;  %v2366_v45 = vrot.slane %v2364_v29, 3  ;;  %vm8407_vm14 = vcmp.ge.s32.totalorder %v1097_v31, 1 }
  0xca   : > { %6742 = vmatpush3.bf16.msra.mxu1 %v7703_v47  ;;  %7222 = vmatpush3.bf16.msra.mxu0 %v7705_v50  ;;  %v1590_v47 = vsel %vm1558_vm1, 65537, %v7959_v33  ;;  %v2325_v50 = vrot.slane %v2323_v34, 4  ;;  %v1592_v14 = vsel %vm1560_vm9, 65537, %v7959_v33  ;;  %v8384_v24 = vsel %vm10315_vm7, %v8359_v62, %v1680_v5  ;;  %vm1562_vm0 = vmpackc.low %vm8407_vm14, %vm8407_vm14 }
  0xcb   : > { %6863 = vmatprep.subr.bf16.mxu0 %v7706_v51  ;;  %v2330_v51 = vrot.slane %v2328_v35, 3  ;;  %v6345_v60 = vcombine.low %v1590_v47, %v8286_v2  ;;  %10432 = vst [vmem:[#allocation23_spill] sm:$0xff] %v8384_v24  ;;  %v6346_v27 = vcombine.low %v1592_v14, %v8286_v2  ;;  %v8396_v28 = vsel %vm10315_vm7, %v1680_v5, %v8368_v9 }
  0xcc   : > { %v8365_v6 = vor.u32 %v2325_v50, %v2322_v46  ;;  %v2369_v46 = vrot.slane %v2367_v30, 4  ;;  %v6364_v52 = vcombine.low %v8286_v2, %v2252_v39  ;;  %v6365_v55 = vcombine.low %v8286_v2, %v2254_v43 }
  0xcd   : > { %v2334_v7 = vor.u32 %v2333_v54, %v2330_v51  ;;  %v1692_v12 = vshrl.u32 %v6345_v60, 16  ;;  %v1695_v19 = vshll.u32 %v6345_v60, 16  ;;  %v1701_v41 = vshrl.u32 %v6346_v27, 16 }
  0xce   : > { %10427 = vst [vmem:[#allocation22_spill] sm:$0xff] %v8365_v6  ;;  %v1704_v42 = vshll.u32 %v6346_v27, 16  ;;  %v8420_v54 = vsel %vm1842_vm8, %v2343_v26, %v8401_v32  ;;  %vm8423_vm15 = vcmp.le.s32.totalorder %v1146_v40, 14  ;;  %v2361_v58 = vor.u32 %v2360_v38, %v2357_v37 }
  0xcf   : > { %v8388_v25 = vsel %vm1842_vm8, %v8365_v6, %v2334_v7  ;;  %v1694_v34 = vrot.slane %v1692_v12, 4  ;;  %v1697_v35 = vrot.slane %v1695_v19, 5  ;;  %v8413_v50 = vsel %vm1842_vm8, %v2334_v7, %v2343_v26  ;;  %10437 = vst [vmem:[#allocation26_spill] sm:$0xff] %v8420_v54  ;;  %vm2224_vm1 = vmpackc.low %vm8423_vm15, %vm8423_vm15 }
  0xd0   : > { %10433 = vst [vmem:[#allocation24_spill] sm:$0xff] %v8388_v25  ;;  %10436 = vst [vmem:[#allocation25_spill] sm:$0xff] %v8413_v50  ;;  %v1703_v59 = vrot.slane %v1701_v41, 4  ;;  %v1111_v60 = vand.u32 15, %v1003_v44  ;;  %v1005_v61 = vadd.s32 112, %v8264_v49  ;;  %v8432_v63 = vor.u32 %v2369_v46, %v2366_v45 }
  0xd1   : > { %v8415_v51 = vor.u32 %v1697_v35, %v1694_v34  ;;  %v1706_v0 = vrot.slane %v1704_v42, 5  ;;  %v1174_v1 = vand.u32 15, %v1012_v48  ;;  %v2373_v4 = vshrl.u32 %v6364_v52, 16 }
  0xd2   : > { %v2376_v5 = vshll.u32 %v6364_v52, 16  ;;  %vm8438_vm2 = vcmp.le.s32.totalorder %v1160_v53, 14  ;;  %v1018_v8 = vadd.s32 216, %v8264_v49  ;;  %v2382_v10 = vshrl.u32 %v6365_v55, 16 }
  0xd3   : > { %v1594_v11 = vsel %vm1562_vm0, 65537, %v7959_v33  ;;  %v1188_v12 = vand.u32 15, %v1014_v57  ;;  %v1007_v13 = vadd.s32 128, %v8264_v49  ;;  %v2385_v14 = vshll.u32 %v6365_v55, 16  ;;  %vm2226_vm4 = vmpackc.low %vm8438_vm2, %vm8438_vm2 }
  0xd4   : > { %vm8445_vm3 = vcmp.ge.s32.totalorder %v1111_v60, 1  ;;  %v1125_v16 = vand.u32 15, %v1005_v61  ;;  %v1020_v17 = vadd.s32 232, %v8264_v49  ;;  %v2256_v18 = vsel %vm2224_vm1, 65537, %v7959_v33 }
  0xd5   : > { %vm8454_vm5 = vcmp.le.s32.totalorder %v1174_v1, 14  ;;  %v1022_v21 = vadd.s32 248, %v8264_v49  ;;  %v8459_v22 = vor.u32 %v1706_v0, %v1703_v59  ;;  %v6347_v23 = vcombine.low %v1594_v11, %v8286_v2  ;;  %vm1564_vm6 = vmpackc.low %vm8445_vm3, %vm8445_vm3 }
  0xd6   : > { %v1216_v26 = vand.u32 15, %v1018_v8  ;;  %v1009_v27 = vadd.s32 144, %v8264_v49  ;;  %v2375_v29 = vrot.slane %v2373_v4, 3  ;;  %v2378_v30 = vrot.slane %v2376_v5, 4  ;;  %vm2228_vm10 = vmpackc.low %vm8454_vm5, %vm8454_vm5 }
  0xd7   : > { %vm8466_vm9 = vcmp.le.s32.totalorder %v1188_v12, 14  ;;  %v1139_v34 = vand.u32 15, %v1007_v13  ;;  %v6366_v35 = vcombine.low %v8286_v2, %v2256_v18  ;;  %v2258_v36 = vsel %vm2226_vm4, 65537, %v7959_v33 }
  0xd8   : > { %vm8475_vm11 = vcmp.ge.s32.totalorder %v1125_v16, 1  ;;  %v1230_v38 = vand.u32 15, %v1020_v17  ;;  %v2384_v39 = vrot.slane %v2382_v10, 3  ;;  %v2387_v40 = vrot.slane %v2385_v14, 4  ;;  %vm2230_vm13 = vmpackc.low %vm8466_vm9, %vm8466_vm9  ;;  %v7722_v17 = vld [vmem:[#allocation9 + $0x1c0] sm:$0xff]  }
  0xd9   : > { %vm8479_vm12 = vcmp.le.s32.totalorder %v1202_v20, 14  ;;  %v1244_v42 = vand.u32 15, %v1022_v21  ;;  %v1710_v43 = vshrl.u32 %v6347_v23, 16  ;;  %v1596_v44 = vsel %vm1564_vm6, 65537, %v7959_v33  ;;  %vm1566_vm15 = vmpackc.low %vm8475_vm11, %vm8475_vm11  ;;  %6999 = vmatprep.subr.bf16.mxu1 %v7722_v17 }
  0xda   : > { %vm8487_vm14 = vcmp.le.s32.totalorder %v1216_v26, 14  ;;  %v1153_v46 = vand.u32 15, %v1009_v27  ;;  %v1713_v47 = vshll.u32 %v6347_v23, 16  ;;  %v6367_v48 = vcombine.low %v8286_v2, %v2258_v36  ;;  %vm2232_vm1 = vmpackc.low %vm8479_vm12, %vm8479_vm12 }
  0xdb   : > { %v2260_v52 = vsel %vm2228_vm10, 65537, %v7959_v33  ;;  %vm8496_vm0 = vcmp.ge.s32.totalorder %v1139_v34, 1  ;;  %v8503_v55 = vsel %vm10315_vm7, %v8368_v9, %v8415_v51  ;;  %v2391_v56 = vshrl.u32 %v6366_v35, 16  ;;  %vm2234_vm3 = vmpackc.low %vm8487_vm14, %vm8487_vm14 }
  0xdc   : > { %v2394_v57 = vshll.u32 %v6366_v35, 16  ;;  %vm8508_vm2 = vcmp.le.s32.totalorder %v1230_v38, 14  ;;  %v8514_v60 = vsel %vm1842_vm8, %v8401_v32, %v2361_v58  ;;  %v8518_v61 = vsel %vm1842_vm8, %v2361_v58, %v8432_v63  ;;  %vm1568_vm5 = vmpackc.low %vm8496_vm0, %vm8496_vm0 }
  0xdd   : > { %10458 = vst [vmem:[#allocation27_spill] sm:$0xff] %v8514_v60  ;;  %10459 = vst [vmem:[#allocation28_spill] sm:$0xff] %v8518_v61  ;;  %v6348_v9 = vcombine.low %v1596_v44, %v8286_v2  ;;  %vm8524_vm4 = vcmp.le.s32.totalorder %v1244_v42, 14  ;;  %v8531_v1 = vsel %vm10315_vm7, %v8415_v51, %v8459_v22  ;;  %v8533_v32 = vor.u32 %v2378_v30, %v2375_v29 }
  0xde   : > { %v6368_v58 = vcombine.low %v8286_v2, %v2260_v52  ;;  %vm8539_vm6 = vcmp.ge.s32.totalorder %v1153_v46, 1  ;;  %v8543_v4 = vor.u32 %v2387_v40, %v2384_v39  ;;  %v8545_v5 = vrot.slane %v1710_v43, 4  ;;  %vm2236_vm10 = vmpackc.low %vm8508_vm2, %vm8508_vm2 }
  0xdf   : > { %v8547_v7 = vrot.slane %v1713_v47, 5  ;;  %v2400_v51 = vshrl.u32 %v6367_v48, 16  ;;  %v8552_v8 = vrot.slane %v2391_v56, 3  ;;  %v8554_v10 = vrot.slane %v2394_v57, 4  ;;  %vm2238_vm7 = vmpackc.low %vm8524_vm4, %vm8524_vm4 }
  0xe0   : > { %v2403_v11 = vshll.u32 %v6367_v48, 16  ;;  %v2262_v12 = vsel %vm2230_vm13, 65537, %v7959_v33  ;;  %v1719_v13 = vshrl.u32 %v6348_v9, 16  ;;  %v1722_v14 = vshll.u32 %v6348_v9, 16  ;;  %vm1570_vm9 = vmpackc.low %vm8539_vm6, %vm8539_vm6 }
  0xe1   : > { %v1598_v15 = vsel %vm1566_vm15, 65537, %v7959_v33  ;;  %v2264_v16 = vsel %vm2232_vm1, 65537, %v7959_v33  ;;  %v2409_v18 = vshrl.u32 %v6368_v58, 16  ;;  %v2412_v19 = vshll.u32 %v6368_v58, 16 }
  0xe2   : > { %v2266_v20 = vsel %vm2234_vm3, 65537, %v7959_v33  ;;  %v1600_v21 = vsel %vm1568_vm5, 65537, %v7959_v33  ;;  %v6369_v23 = vcombine.low %v8286_v2, %v2262_v12  ;;  %v2268_v26 = vsel %vm2236_vm10, 65537, %v7959_v33 }
  0xe3   : > { %v2270_v27 = vsel %vm2238_vm7, 65537, %v7959_v33  ;;  %v1011_v29 = vadd.s32 160, %v8264_v49  ;;  %v2402_v30 = vrot.slane %v2400_v51, 3  ;;  %v6349_v31 = vcombine.low %v1598_v15, %v8286_v2 }
  0xe4   : > { %v6370_v34 = vcombine.low %v8286_v2, %v2264_v16  ;;  %v1602_v35 = vsel %vm1570_vm9, 65537, %v7959_v33  ;;  %v2405_v36 = vrot.slane %v2403_v11, 4  ;;  %v1721_v37 = vrot.slane %v1719_v13, 4 }
  0xe5   : > { %v6371_v38 = vcombine.low %v8286_v2, %v2266_v20  ;;  %v6350_v39 = vcombine.low %v1600_v21, %v8286_v2  ;;  %v1724_v40 = vrot.slane %v1722_v14, 5  ;;  %v2411_v41 = vrot.slane %v2409_v18, 3 }
  0xe6   : > { %v6372_v42 = vcombine.low %v8286_v2, %v2268_v26  ;;  %v6373_v43 = vcombine.low %v8286_v2, %v2270_v27  ;;  %v2414_v44 = vrot.slane %v2412_v19, 4  ;;  %v2418_v45 = vshrl.u32 %v6369_v23, 16 }
  0xe7   : > { %v6351_v46 = vcombine.low %v1602_v35, %v8286_v2  ;;  %v1167_v47 = vand.u32 15, %v1011_v29  ;;  %v2421_v48 = vshll.u32 %v6369_v23, 16  ;;  %v1728_v52 = vshrl.u32 %v6349_v31, 16 }
  0xe8   : > { %v1731_v53 = vshll.u32 %v6349_v31, 16  ;;  %v2427_v56 = vshrl.u32 %v6370_v34, 16  ;;  %v2430_v57 = vshll.u32 %v6370_v34, 16  ;;  %v2436_v59 = vshrl.u32 %v6371_v38, 16 }
  0xe9   : > { %v2439_v9 = vshll.u32 %v6371_v38, 16  ;;  %v1737_v0 = vshrl.u32 %v6350_v39, 16  ;;  %v1740_v58 = vshll.u32 %v6350_v39, 16  ;;  %v2445_v3 = vshrl.u32 %v6372_v42, 16 }
  0xea   : > { %v2448_v51 = vshll.u32 %v6372_v42, 16  ;;  %v2454_v11 = vshrl.u32 %v6373_v43, 16  ;;  %v2457_v12 = vshll.u32 %v6373_v43, 16  ;;  %v1746_v13 = vshrl.u32 %v6351_v46, 16 }
  0xeb   : > { %v1749_v14 = vshll.u32 %v6351_v46, 16  ;;  %vm8609_vm7 = vcmp.ge.s32.totalorder %v1167_v47, 1  ;;  %v2420_v16 = vrot.slane %v2418_v45, 3  ;;  %v2423_v17 = vrot.slane %v2421_v48, 4 }
  0xec   : > { %v1730_v18 = vrot.slane %v1728_v52, 4  ;;  %v1733_v19 = vrot.slane %v1731_v53, 5  ;;  %v2429_v20 = vrot.slane %v2427_v56, 3  ;;  %v2432_v21 = vrot.slane %v2430_v57, 4  ;;  %vm1572_vm11 = vmpackc.low %vm8609_vm7, %vm8609_vm7 }
  0xed   : > { %v2438_v23 = vrot.slane %v2436_v59, 3  ;;  %v2441_v26 = vrot.slane %v2439_v9, 4  ;;  %v1739_v27 = vrot.slane %v1737_v0, 4  ;;  %v1742_v29 = vrot.slane %v1740_v58, 5 }
  0xee   : > { %v2447_v31 = vrot.slane %v2445_v3, 3  ;;  %v2450_v34 = vrot.slane %v2448_v51, 4  ;;  %v2456_v35 = vrot.slane %v2454_v11, 3  ;;  %v2459_v38 = vrot.slane %v2457_v12, 4 }
  0xef   : > { %v1748_v39 = vrot.slane %v1746_v13, 4  ;;  %v1751_v42 = vrot.slane %v1749_v14, 5  ;;  %v1716_v43 = vor.u32 %v8547_v7, %v8545_v5  ;;  %v2397_v45 = vor.u32 %v8554_v10, %v8552_v8 }
  0xf0   : > { %v2406_v46 = vor.u32 %v2405_v36, %v2402_v30  ;;  %v1725_v47 = vor.u32 %v1724_v40, %v1721_v37  ;;  %v2415_v48 = vor.u32 %v2414_v44, %v2411_v41  ;;  %v2424_v52 = vor.u32 %v2423_v17, %v2420_v16  ;;  %v8669_v41 = vld [vmem:[%s10301_s3] ss:$0 sm:$0xff] }
  0xf1   : > { %v1734_v53 = vor.u32 %v1733_v19, %v1730_v18  ;;  %v1604_v56 = vsel %vm1572_vm11, 65537, %v7959_v33  ;;  %v2433_v57 = vor.u32 %v2432_v21, %v2429_v20  ;;  %v2442_v59 = vor.u32 %v2441_v26, %v2438_v23  ;;  %v8638_v33 = vld [vmem:[%s10300_s2] ss:$0 sm:$0xff] }
  0xf2   : > { %v1743_v9 = vor.u32 %v1742_v29, %v1739_v27  ;;  %v2451_v0 = vor.u32 %v2450_v34, %v2447_v31  ;;  %v8624_v58 = vsel %vm1842_vm8, %v8432_v63, %v8533_v32  ;;  %v8629_v5 = vsel %vm1842_vm8, %v8533_v32, %v8543_v4 }
  0xf3   : > { %10466 = vst [vmem:[#allocation29_spill] sm:$0xff] %v8624_v58  ;;  %10467 = vst [vmem:[#allocation30_spill] sm:$0xff] %v8629_v5  ;;  %v8631_v7 = vor.u32 %v2459_v38, %v2456_v35  ;;  %v8633_v8 = vor.u32 %v1751_v42, %v1748_v39  ;;  %vm10470_vm12 = vsmask.f32 3328  ;;  %v8646_v63 = vsel %vm1842_vm8, %v8543_v4, %v2397_v45 }
  0xf4   : > { %v8642_v10 = vsel %vm10470_vm12, %v8459_v22, %v1716_v43  ;;  %10471 = vst [vmem:[#allocation33_spill] sm:$0xff] %v8646_v63  ;;  %v8649_v32 = vsel %vm1842_vm8, %v2397_v45, %v2406_v46  ;;  %v8652_v30 = vcombine.low %v1604_v56, %v8286_v2  ;;  %vm10474_vm13 = vmmov %vm10470_vm12  ;;  %v8658_v37 = vsel %vm1842_vm8, %v2406_v46, %v2415_v48 }
  0xf5   : > { %10468 = vst [vmem:[#allocation31_spill] sm:$0xff] %v8631_v7  ;;  %10469 = vst [vmem:[#allocation32_spill] sm:$0xff] %v8633_v8  ;;  %v8655_v36 = vsel %vm10474_vm13, %v1716_v43, %v1725_v47  ;;  %v8661_v40 = vsel %vm1842_vm8, %v2415_v48, %v2424_v52  ;;  %v8672_v3 = vsel %vm1842_vm8, %v2424_v52, %v2433_v57  ;;  %v8697_v27 = vadd.s32 176, %v8264_v49 }
  0xf6   : > { %10472 = vst [vmem:[#allocation34_spill] sm:$0xff] %v8649_v32  ;;  %10473 = vst [vmem:[#allocation35_spill] sm:$0xff] %v8652_v30  ;;  %v8675_v51 = vsel %vm1842_vm8, %v2433_v57, %v2442_v59  ;;  %v8681_v12 = vsel %vm1842_vm8, %v2442_v59, %v2451_v0  ;;  %v8687_v17 = vsel %vm1842_vm8, %v2451_v0, %v8631_v7  ;;  %v1755_v26 = vshrl.u32 %v8652_v30, 16 }
  0xf7   : > { %10475 = vst [vmem:[#allocation36_spill] sm:$0xff] %v8661_v40  ;;  %vm10476_vm14 = vmmov %vm10470_vm12  ;;  %vm924_vm1 = vcmask 1043456   ;;  %vm1809_vm2 = vcmp.ne.s16.totalorder %v8384_v24, 0  ;;  %vm10340_vm3 = vcmp.ne.s16.totalorder %v8388_v25, 0  ;;  %vm1808_vm4 = vcmp.ne.s16.totalorder %v8359_v62, 0 }
  0xf8   : > { %v8664_v22 = vsel %vm10476_vm14, %v1725_v47, %v1734_v53  ;;  %10478 = vst [vmem:[#allocation38_spill] sm:$0xff] %v8672_v3  ;;  %10479 = vst [vmem:[#allocation39_spill] sm:$0xff] %v8675_v51  ;;  %vm10341_vm5 = vcmp.ne.s16.totalorder %v8365_v6, 0  ;;  %vm1810_vm6 = vcmp.ne.s16.totalorder %v8396_v28, 0  ;;  %vm10339_vm10 = vcmp.ne.s16.totalorder %v8413_v50, 0 }
  0xf9   : > { %10477 = vst [vmem:[#allocation37_spill] sm:$0xff] %v8664_v22  ;;  %vm10480_vm15 = vmmov %vm10470_vm12  ;;  %vm10338_vm9 = vcmp.ne.s16.totalorder %v8420_v54, 0  ;;  %vm1811_vm7 = vcmp.ne.s16.totalorder %v8503_v55, 0  ;;  %vm10337_vm11 = vcmp.ne.s16.totalorder %v8514_v60, 0  ;;  %vm10344_vm13 = vcmp.ne.s16.totalorder %v8518_v61, 0 }
  0xfa   : > { %v8678_v11 = vsel %vm10480_vm15, %v1734_v53, %v1743_v9  ;;  %10481 = vst [vmem:[#allocation40_spill] sm:$0xff] %v8681_v12  ;;  %10482 = vst [vmem:[#allocation41_spill] sm:$0xff] %v8687_v17  ;;  %vm10362_vm14 = vcmp.ne.s16.totalorder %v8531_v1, 0  ;;  %vm10343_vm15 = vcmp.ne.s16.totalorder %v8624_v58, 0 }
  0xfb   : > { %vm10483_vm0 = vmmov %vm10470_vm12  ;;  %10485 = vst [vmem:[#allocation43_spill] sm:$0xff] %v8697_v27 }
  0xfc   : > { %v8691_v18 = vsel %vm10483_vm0, %v1743_v9, %v8633_v8  ;;  %v8714_v9 = vrot.slane %v1755_v26, 4  ;;  %vm10497_vm12 = vmmov %vm10483_vm0  ;;  %vm10342_vm0 = vcmp.ne.s16.totalorder %v8629_v5, 0 }
  0xfd   : > { %10484 = vst [vmem:[#allocation42_spill] sm:$0xff] %v8691_v18 }
  0xfe   : > { %10486 = vst [vmem:[#allocation44_spill] sm:$0xff] %v8714_v9 }
 0x17f   : > { %v7177_v4 = vpop.f32.mrb[0].mxu0  ;;  %v7193_v44 = vpop.f32.mrb[0].mxu1 }
 0x180   : > { %v787_v13 = vmul.f32 %v7177_v4, %v8638_v33  ;;  %v651_v14 = vpop.f32.mrb[1].mxu0  ;;  %v803_v15 = vmul.f32 %v7193_v44, %v8638_v33  ;;  %v715_v16 = vpop.f32.mrb[1].mxu1 }
 0x181   : > { %v785_v19 = vmul.f32 %v8638_v33, %v651_v14  ;;  %v7178_v20 = vpop.f32.mrb[2].mxu0  ;;  %v801_v21 = vmul.f32 %v8638_v33, %v715_v16  ;;  %v7194_v23 = vpop.f32.mrb[2].mxu1 }
 0x182   : > { %v826_v29 = vadd.f32 %v8669_v41, %v787_v13  ;;  %v788_v31 = vmul.f32 %v7178_v20, %v8638_v33  ;;  %v654_v34 = vpop.f32.mrb[3].mxu0  ;;  %v842_v35 = vadd.f32 %v8669_v41, %v803_v15  ;;  %v804_v38 = vmul.f32 %v7194_v23, %v8638_v33  ;;  %v718_v39 = vpop.f32.mrb[3].mxu1 }
 0x183   : > { %v824_v42 = vadd.f32 %v8669_v41, %v785_v19  ;;  %v786_v43 = vmul.f32 %v8638_v33, %v654_v34  ;;  %v840_v45 = vadd.f32 %v8669_v41, %v801_v21  ;;  %v802_v46 = vmul.f32 %v8638_v33, %v718_v39 }
 0x184   : > { %v827_v47 = vadd.f32 %v8669_v41, %v788_v31  ;;  %v874_v48 = vmax.f32 %v842_v35, 0.0  ;;  %v843_v52 = vadd.f32 %v8669_v41, %v804_v38  ;;  %v858_v0 = vmax.f32 %v826_v29, 0.0 }
 0x185   : > { %v825_v56 = vadd.f32 %v8669_v41, %v786_v43  ;;  %v872_v57 = vmax.f32 %v840_v45, 0.0  ;;  %v841_v59 = vadd.f32 %v8669_v41, %v802_v46  ;;  %v8717_v13 = vadd.s32 192, %v8264_v49 }
 0x186   : > { %v859_v4 = vmax.f32 %v827_v47, 0.0  ;;  %v875_v44 = vmax.f32 %v843_v52, 0.0  ;;  %v856_v14 = vmax.f32 %v824_v42, 0.0 }
 0x187   : > { %10487 = vst [vmem:[#allocation45_spill] sm:$0xff] %v8717_v13  ;;  %v857_v15 = vmax.f32 %v825_v56, 0.0  ;;  %v7181_v16 = vpop.f32.mrb[4].mxu0  ;;  %v873_v19 = vmax.f32 %v841_v59, 0.0  ;;  %v7197_v20 = vpop.f32.mrb[4].mxu1 }
 0x188   : > { %v8720_v23 = vpack.c.bf16 %v859_v4, %v858_v0  ;;  %v791_v31 = vmul.f32 %v7181_v16, %v8638_v33  ;;  %v667_v34 = vpop.f32.mrb[5].mxu0  ;;  %v8723_v26 = vpack.c.bf16 %v875_v44, %v874_v48  ;;  %v807_v29 = vmul.f32 %v7197_v20, %v8638_v33  ;;  %v731_v35 = vpop.f32.mrb[5].mxu1 }
 0x189   : > { %v892_v38 = vpack.c.bf16 %v857_v15, %v856_v14  ;;  %v789_v39 = vmul.f32 %v8638_v33, %v667_v34  ;;  %v7182_v42 = vpop.f32.mrb[6].mxu0  ;;  %v8727_v43 = vpack.c.bf16 %v873_v19, %v872_v57  ;;  %v805_v45 = vmul.f32 %v8638_v33, %v731_v35  ;;  %v7198_v46 = vpop.f32.mrb[6].mxu1 }
 0x18a   : > { %v926_v47 = vrot.slane %v8720_v23, 4  ;;  %v830_v52 = vadd.f32 %v8669_v41, %v791_v31  ;;  %v792_v56 = vmul.f32 %v7182_v42, %v8638_v33  ;;  %v670_v48 = vpop.f32.mrb[7].mxu0  ;;  %v10316_v59 = vrot.slane %v8723_v26, 4  ;;  %v734_v0 = vpop.f32.mrb[7].mxu1 }
 0x18b   : > { %v925_v4 = vrot.slane %v892_v38, 4  ;;  %v828_v44 = vadd.f32 %v8669_v41, %v789_v39  ;;  %v790_v14 = vmul.f32 %v8638_v33, %v670_v48  ;;  %v10317_v57 = vrot.slane %v8727_v43, 4 }
 0x18c   : > { %v862_v15 = vmax.f32 %v830_v52, 0.0  ;;  %v831_v16 = vadd.f32 %v8669_v41, %v792_v56  ;;  %v846_v19 = vadd.f32 %v8669_v41, %v807_v29  ;;  %v8741_v20 = vadd.f32 %v8669_v41, %v805_v45 }
 0x18d   : > { %v8744_v23 = vsel %vm924_vm1, %v925_v4, %v926_v47  ;;  %973 = vst [vmem:[#allocation2 + $0x8] sm:$0xf0] %v925_v4  ;;  %v860_v31 = vmax.f32 %v828_v44, 0.0  ;;  %v829_v34 = vadd.f32 %v8669_v41, %v790_v14  ;;  %v943_v35 = vsel %vm924_vm1, %v10317_v57, %v10316_v59 }
 0x18e   : > { %974 = vst [vmem:[#allocation2 + $0x10] sm:$0xff] %v8744_v23  ;;  %v863_v38 = vmax.f32 %v831_v16, 0.0  ;;  %982 = vst [vmem:[#allocation2 + $0x50] sm:$0xff] %v943_v35  ;;  %v878_v39 = vmax.f32 %v846_v19, 0.0  ;;  %v808_v56 = vmul.f32 %v7198_v46, %v8638_v33  ;;  %v2794_v48 = vsel %vm1809_vm2, %v8744_v23, 0 }
 0x18f   : > { %v861_v45 = vmax.f32 %v829_v34, 0.0  ;;  %v7185_v52 = vpop.f32.mrb[8].mxu0  ;;  %v8763_v4 = vsel %vm10340_vm3, %v8744_v23, 0  ;;  %v8765_v44 = vpop.f32.mrb[8].mxu1  ;;  %v2819_v34 = vshrl.u32 %v2794_v48, 16  ;;  %v2822_v46 = vshll.u32 %v2794_v48, 16 }
 0x190   : > { %v8767_v14 = vpack.c.bf16 %v863_v38, %v862_v15  ;;  %v795_v16 = vmul.f32 %v7185_v52, %v8638_v33  ;;  %v683_v19 = vpop.f32.mrb[9].mxu0  ;;  %v8770_v35 = vpop.f32.mrb[9].mxu1  ;;  %v847_v57 = vadd.f32 %v8669_v41, %v808_v56  ;;  %vm10350_vm3 = vcmp.ne.s16.totalorder %v8658_v37, 0 }
 0x191   : > { %v894_v53 = vpack.c.bf16 %v861_v45, %v860_v31  ;;  %v793_v21 = vmul.f32 %v8638_v33, %v683_v19  ;;  %v7186_v59 = vpop.f32.mrb[10].mxu0  ;;  %v8775_v29 = vpop.f32.mrb[10].mxu1  ;;  %v2821_v48 = vrot.slane %v2819_v34, 3  ;;  %v2824_v15 = vrot.slane %v2822_v46, 4 }
 0x192   : > { %v834_v38 = vadd.f32 %v8669_v41, %v795_v16  ;;  %v796_v52 = vmul.f32 %v7186_v59, %v8638_v33  ;;  %v686_v25 = vpop.f32.mrb[11].mxu0  ;;  %v8780_v24 = vpop.f32.mrb[11].mxu1  ;;  %v879_v56 = vmax.f32 %v847_v57, 0.0  ;;  %v8786_v16 = vmul.f32 %v8638_v33, %v734_v0 }
 0x193   : > { %v928_v31 = vrot.slane %v894_v53, 4  ;;  %v832_v45 = vadd.f32 %v8669_v41, %v793_v21  ;;  %v794_v19 = vmul.f32 %v8638_v33, %v686_v25  ;;  %v10488_v34 = vrot.slane %v8767_v14, 4 }
 0x194   : > { %v866_v8 = vmax.f32 %v834_v38, 0.0  ;;  %v835_v42 = vadd.f32 %v8669_v41, %v796_v52  ;;  %v2994_v9 = vld [vmem:[#allocation2 + $0x8] sm:$0xf0]  ;;  %v8799_v38 = vpack.c.bf16 %v879_v56, %v878_v39 }
 0x195   : > { %v2776_v2 = vld [vmem:[#allocation2 + $0x8] sm:$0xf8]  ;;  %v8789_v59 = vsel %vm924_vm1, %v926_v47, %v928_v31  ;;  %v8794_v53 = vsel %vm924_vm1, %v928_v31, %v10488_v34  ;;  %v864_v21 = vmax.f32 %v832_v45, 0.0  ;;  %v833_v25 = vadd.f32 %v8669_v41, %v794_v19 }
 0x196   : > { %975 = vst [vmem:[#allocation2 + $0x18] sm:$0xff] %v8789_v59  ;;  %976 = vst [vmem:[#allocation2 + $0x20] sm:$0xff] %v8794_v53  ;;  %v867_v57 = vmax.f32 %v835_v42, 0.0  ;;  %v3028_v46 = vrot.slane %v2994_v9, 4  ;;  %v2793_v47 = vsel %vm1808_vm4, %v2776_v2, 0  ;;  %v8803_v34 = vor.u32 %v2824_v15, %v2821_v48 }
 0x197   : > { %v3093_v0 = vld [vmem:[#allocation2 + $0x8] sm:$0xf0]  ;;  %v865_v52 = vmax.f32 %v833_v25, 0.0  ;;  %v7189_v49 = vpop.f32.mrb[12].mxu0  ;;  %v2811_v7 = vshrl.u32 %v2793_v47, 16  ;;  %v2814_v31 = vshll.u32 %v2793_v47, 16 }
 0x198   : > { %v8805_v45 = vpop.f32.mrb[12].mxu1  ;;  %v8807_v19 = vpack.c.bf16 %v867_v57, %v866_v8  ;;  %v799_v18 = vmul.f32 %v7189_v49, %v8638_v33  ;;  %v699_v42 = vpop.f32.mrb[13].mxu0  ;;  %v10489_v9 = vrot.slane %v8744_v23, 4 }
 0x199   : > { %v8814_v56 = vpop.f32.mrb[13].mxu1  ;;  %v896_v25 = vpack.c.bf16 %v865_v52, %v864_v21  ;;  %v797_v47 = vmul.f32 %v8638_v33, %v699_v42  ;;  %v7190_v15 = vpop.f32.mrb[14].mxu0  ;;  %v2813_v48 = vrot.slane %v2811_v7, 3  ;;  %v2816_v62 = vrot.slane %v2814_v31, 4 }
 0x19a   : > { %v3030_v39 = vsel %vm924_vm1, %v3028_v46, %v10489_v9  ;;  %v8818_v8 = vpop.f32.mrb[14].mxu1  ;;  %v838_v57 = vadd.f32 %v8669_v41, %v799_v18  ;;  %v800_v46 = vmul.f32 %v7190_v15, %v8638_v33  ;;  %v702_v9 = vpop.f32.mrb[15].mxu0  ;;  %v3110_v21 = vsel %vm10341_vm5, %v3093_v0, 0  ;;  %v7723_v18 = vld [vmem:[#allocation9 + $0x180] sm:$0xff]  }
 0x19b   : > { %3583 = vmatprep.mubr.bf16.mxu1 %v3030_v39  ;;  %v8825_v52 = vpop.f32.mrb[15].mxu1  ;;  %v932_v42 = vrot.slane %v896_v25, 4  ;;  %v836_v7 = vadd.f32 %v8669_v41, %v797_v47  ;;  %v798_v31 = vmul.f32 %v8638_v33, %v702_v9  ;;  %v2817_v39 = vor.u32 %v2816_v62, %v2813_v48  ;;  %v7725_v48 = vld [vmem:[#allocation9 + $0x1c8] sm:$0xff]  }
 0x19c   : > { %v870_v2 = vmax.f32 %v838_v57, 0.0  ;;  %v839_v30 = vadd.f32 %v8669_v41, %v800_v46  ;;  %v3128_v49 = vshrl.u32 %v3110_v21, 16  ;;  %v3131_v13 = vshll.u32 %v3110_v21, 16 }
 0x19d   : > { %v10490_v15 = vrot.slane %v8767_v14, 4  ;;  %v10491_v25 = vrot.slane %v8807_v19, 4  ;;  %v868_v9 = vmax.f32 %v836_v7, 0.0  ;;  %v837_v62 = vadd.f32 %v8669_v41, %v798_v31 }
 0x19e   : > { %v871_v57 = vmax.f32 %v839_v30, 0.0  ;;  %v2826_v14 = vsel %vm1842_vm8, %v2817_v39, %v8803_v34  ;;  %v3130_v46 = vrot.slane %v3128_v49, 4  ;;  %v3133_v21 = vrot.slane %v3131_v13, 5  ;;  %v7726_v13 = vld [vmem:[#allocation9 + $0x188] sm:$0xff]  }
 0x19f   : > { %v8834_v0 = vsel %vm924_vm1, %v10490_v15, %v932_v42  ;;  %v8839_v47 = vsel %vm924_vm1, %v932_v42, %v10491_v25  ;;  %v869_v15 = vmax.f32 %v837_v62, 0.0  ;;  %3584 = vmatmul.mubr.bf16.vlgmr.msra.gmra.mrb[16].mxu1 %v2826_v14  ;;  %v10492_v42 = vshrl.u32 %v8763_v4, 16 }
 0x1a0   : > { %977 = vst [vmem:[#allocation2 + $0x28] sm:$0xff] %v8834_v0  ;;  %978 = vst [vmem:[#allocation2 + $0x30] sm:$0xff] %v8839_v47  ;;  %v3139_v31 = vshll.u32 %v8763_v4, 16  ;;  %v845_v25 = vadd.f32 %v8669_v41, %v8786_v16  ;;  %v899_v6 = vpack.c.bf16 %v871_v57, %v870_v2  ;;  %v3134_v17 = vor.u32 %v3133_v21, %v3130_v46  ;;  %v7728_v4 = vld [vmem:[#allocation9 + $0x1d0] sm:$0xff]  }
 0x1a1   : > { %v3138_v7 = vrot.slane %v10492_v42, 4  ;;  %v3031_v30 = vrot.slane %v8789_v59, 4  ;;  %v811_v49 = vmul.f32 %v8765_v44, %v8638_v33  ;;  %7000 = vmatpush3.bf16.msra.mxu1 %v7723_v18  ;;  %v898_v39 = vpack.c.bf16 %v869_v15, %v868_v9  ;;  %v7729_v15 = vld [vmem:[#allocation9 + $0x190] sm:$0xff]  }
 0x1a2   : > { %v3141_v62 = vrot.slane %v3139_v31, 5  ;;  %v877_v14 = vmax.f32 %v845_v25, 0.0  ;;  %v809_v42 = vmul.f32 %v8638_v33, %v8770_v35  ;;  %7001 = vmatprep.subr.bf16.mxu1 %v7725_v48  ;;  %v938_v27 = vrot.slane %v899_v6, 4 }
 0x1a3   : > { %v10493_v16 = vrot.slane %v8744_v23, 4  ;;  %v850_v57 = vadd.f32 %v8669_v41, %v811_v49  ;;  %v812_v44 = vmul.f32 %v8775_v29, %v8638_v33  ;;  %v936_v18 = vrot.slane %v898_v39, 4  ;;  %v7731_v39 = vld [vmem:[#allocation9 + $0x1d8] sm:$0xff]  }
 0x1a4   : > { %v8865_v9 = vor.u32 %v3141_v62, %v3138_v7  ;;  %v10494_v46 = vmax.f32 %v8741_v20, 0.0  ;;  %v848_v6 = vadd.f32 %v8669_v41, %v809_v42  ;;  %v10495_v23 = vrot.slane %v8727_v43, 4 }
 0x1a5   : > { %v3032_v2 = vsel %vm924_vm1, %v10493_v16, %v3031_v30  ;;  %v882_v21 = vmax.f32 %v850_v57, 0.0  ;;  %v851_v29 = vadd.f32 %v8669_v41, %v812_v44  ;;  %v2795_v20 = vsel %vm1810_vm6, %v8789_v59, 0  ;;  %7002 = vmatpush3.bf16.msra.mxu1 %v7726_v13 }
 0x1a6   : > { %v902_v35 = vpack.c.bf16 %v877_v14, %v10494_v46  ;;  %3591 = vmatprep.mubr.bf16.mxu1 %v3032_v2  ;;  %v8875_v48 = vsel %vm924_vm1, %v938_v27, %v10495_v23  ;;  %v10496_v7 = vrot.slane %v8807_v19, 4  ;;  %v8888_v43 = vsel %vm924_vm1, %v936_v18, %v938_v27  ;;  %7003 = vmatprep.subr.bf16.mxu1 %v7728_v4  ;;  %v7732_v46 = vld [vmem:[#allocation9 + $0x198] sm:$0xff]  }
 0x1a7   : > { %981 = vst [vmem:[#allocation2 + $0x48] sm:$0xff] %v8875_v48  ;;  %v3143_v25 = vsel %vm10497_vm12, %v3134_v17, %v8865_v9  ;;  %980 = vst [vmem:[#allocation2 + $0x40] sm:$0xff] %v8888_v43  ;;  %v880_v13 = vmax.f32 %v848_v6, 0.0  ;;  %v883_v62 = vmax.f32 %v851_v29, 0.0  ;;  %v2828_v19 = vshrl.u32 %v2795_v20, 16  ;;  %v7733_v29 = vld [vmem:[#allocation9 + $0x1e0] sm:$0xff]  }
 0x1a8   : > { %v8885_v31 = vsel %vm924_vm1, %v10496_v7, %v936_v18  ;;  %v944_v49 = vrot.slane %v902_v35, 4  ;;  %7223 = vmatprep.mubr.bf16.mxu0 %v3143_v25  ;;  %v2831_v14 = vshll.u32 %v2795_v20, 16  ;;  %v10498_v42 = vrot.slane %v8723_v26, 4 }
 0x1a9   : > { %979 = vst [vmem:[#allocation2 + $0x38] sm:$0xff] %v8885_v31  ;;  %v10499_v16 = vrot.slane %v8799_v38, 4  ;;  %v3112_v4 = vsel %vm10339_vm10, %v8789_v59, 0  ;;  %v810_v2 = vmul.f32 %v8638_v33, %v8780_v24  ;;  %v8911_v26 = vpack.c.bf16 %v883_v62, %v882_v21  ;;  %7004 = vmatpush3.bf16.msra.mxu1 %v7729_v15 }
 0x1aa   : > { %v8897_v27 = vsel %vm924_vm1, %v10498_v42, %v944_v49  ;;  %v2830_v57 = vrot.slane %v2828_v19, 3  ;;  %v2833_v44 = vrot.slane %v2831_v14, 4  ;;  %v3145_v18 = vshrl.u32 %v3112_v4, 16  ;;  %7005 = vmatprep.subr.bf16.mxu1 %v7731_v39 }
 0x1ab   : > { %v8902_v17 = vsel %vm924_vm1, %v944_v49, %v10499_v16  ;;  %983 = vst [vmem:[#allocation2 + $0x58] sm:$0xff] %v8897_v27  ;;  %v3148_v35 = vshll.u32 %v3112_v4, 16  ;;  %v849_v6 = vadd.f32 %v8669_v41, %v810_v2  ;;  %v3033_v23 = vrot.slane %v8794_v53, 4  ;;  %v7734_v4 = vld [vmem:[#allocation9 + $0x1a0] sm:$0xff]  }
 0x1ac   : > { %984 = vst [vmem:[#allocation2 + $0x60] sm:$0xff] %v8902_v17  ;;  %v3113_v24 = vsel %vm10338_vm9, %v8794_v53, 0  ;;  %v950_v21 = vrot.slane %v8911_v26, 4  ;;  %v8920_v20 = vor.u32 %v2833_v44, %v2830_v57  ;;  %v3147_v7 = vrot.slane %v3145_v18, 4  ;;  %v7707_v2 = vld [vmem:[#allocation9] sm:$0xff]   ;;  %v7708_v18 = vld [vmem:[#allocation9 + $0x48] sm:$0xff]  }
 0x1ad   : > { %v3154_v25 = vshrl.u32 %v3113_v24, 16  ;;  %v3150_v49 = vrot.slane %v3148_v35, 5  ;;  %v881_v15 = vmax.f32 %v849_v6, 0.0  ;;  %v3034_v62 = vsel %vm924_vm1, %v3031_v30, %v3033_v23  ;;  %7006 = vmatpush3.bf16.msra.mxu1 %v7732_v46 }
 0x1ae   : > { %v3157_v19 = vshll.u32 %v3113_v24, 16  ;;  %v2835_v39 = vsel %vm1842_vm8, %v8803_v34, %v8920_v20  ;;  %v815_v42 = vmul.f32 %v8805_v45, %v8638_v33  ;;  %v813_v16 = vmul.f32 %v8638_v33, %v8814_v56  ;;  %7007 = vmatprep.subr.bf16.mxu1 %v7733_v29  ;;  %v7735_v34 = vld [vmem:[#allocation9 + $0x1e8] sm:$0xff]  }
 0x1af   : > { %v3156_v14 = vrot.slane %v3154_v25, 4  ;;  %3592 = vmatmul.mubr.bf16.gmra.mrb[20].mxu1 %v2835_v39  ;;  %v3151_v59 = vor.u32 %v3150_v49, %v3147_v7  ;;  %v904_v30 = vpack.c.bf16 %v881_v15, %v880_v13  ;;  %v816_v44 = vmul.f32 %v8818_v8, %v8638_v33  ;;  %v7736_v15 = vld [vmem:[#allocation9 + $0x1a8] sm:$0xff]  }
 0x1b0   : > { %v3159_v57 = vrot.slane %v3157_v19, 5  ;;  %3599 = vmatprep.mubr.bf16.mxu1 %v3034_v62  ;;  %v854_v45 = vadd.f32 %v8669_v41, %v815_v42  ;;  %v8941_v56 = vadd.f32 %v8669_v41, %v813_v16  ;;  %v2796_v13 = vsel %vm1811_vm7, %v8794_v53, 0  ;;  %v7709_v42 = vld [vmem:[#allocation9 + $0x8] sm:$0xff]   ;;  %v7738_v16 = vld [vmem:[#allocation9 + $0x1f0] sm:$0xff]  }
 0x1b1   : > { %v3114_v8 = vsel %vm10337_vm11, %v8834_v0, 0  ;;  %v3152_v46 = vsel %vm10497_vm12, %v8865_v9, %v3151_v59  ;;  %v948_v35 = vrot.slane %v904_v30, 4  ;;  %v855_v24 = vadd.f32 %v8669_v41, %v816_v44  ;;  %7008 = vmatpush3.bf16.msra.mxu1 %v7734_v4 }
 0x1b2   : > { %v3160_v6 = vor.u32 %v3159_v57, %v3156_v14  ;;  %7224 = vmatmul.mubr.bf16.vlgmr.msra.gmra.mrb[16].mxu0 %v3152_v46  ;;  %v886_v29 = vmax.f32 %v854_v45, 0.0  ;;  %v884_v7 = vmax.f32 %v8941_v56, 0.0  ;;  %v2837_v25 = vshrl.u32 %v2796_v13, 16  ;;  %7009 = vmatprep.subr.bf16.mxu1 %v7735_v34  ;;  %v7710_v57 = vld [vmem:[#allocation9 + $0x50] sm:$0xff]  }
 0x1b3   : > { %v2840_v49 = vshll.u32 %v2796_v13, 16  ;;  %6864 = vmatpush3.bf16.msra.mxu0 %v7707_v2  ;;  %v10500_v62 = vrot.slane %v8799_v38, 4  ;;  %v8961_v9 = vsel %vm924_vm1, %v948_v35, %v950_v21  ;;  %v887_v14 = vmax.f32 %v855_v24, 0.0 }
 0x1b4   : > { %v3161_v39 = vsel %vm10497_vm12, %v3151_v59, %v3160_v6  ;;  %vm10346_vm11 = vcmp.ne.s16.totalorder %v8642_v10, 0  ;;  %986 = vst [vmem:[#allocation2 + $0x70] sm:$0xff] %v8961_v9  ;;  %6865 = vmatprep.subr.bf16.mxu0 %v7708_v18  ;;  %v2839_v38 = vrot.slane %v2837_v25, 3  ;;  %v3163_v2 = vshrl.u32 %v3114_v8, 16  ;;  %v7740_v25 = vld [vmem:[#allocation9 + $0x1f8] sm:$0xff]  }
 0x1b5   : > { %v8956_v19 = vsel %vm924_vm1, %v10500_v62, %v948_v35  ;;  %7227 = vmatprep.mubr.bf16.mxu0 %v3161_v39  ;;  %v2842_v4 = vrot.slane %v2840_v49, 4  ;;  %v3166_v30 = vshll.u32 %v3114_v8, 16  ;;  %v8967_v44 = vpack.c.bf16 %v887_v14, %v886_v29  ;;  %7010 = vmatpush3.bf16.msra.mxu1 %v7736_v15  ;;  %v7739_v8 = vld [vmem:[#allocation9 + $0x1b0] sm:$0xff]  }
 0x1b6   : > { %985 = vst [vmem:[#allocation2 + $0x68] sm:$0xff] %v8956_v19  ;;  %v814_v59 = vmul.f32 %v8638_v33, %v8825_v52  ;;  %v3035_v45 = vrot.slane %v8834_v0, 4  ;;  %v3115_v34 = vsel %vm10344_vm13, %v8839_v47, 0  ;;  %vm10345_vm12 = vcmp.ne.s16.totalorder %v8646_v63, 0  ;;  %7011 = vmatprep.subr.bf16.mxu1 %v7738_v16  ;;  %v7711_v39 = vld [vmem:[#allocation9 + $0x10] sm:$0xff]   ;;  %v7712_v16 = vld [vmem:[#allocation9 + $0x58] sm:$0xff]  }
 0x1b7   : > { %v8976_v13 = vor.u32 %v2842_v4, %v2839_v38  ;;  %v3165_v18 = vrot.slane %v3163_v2, 4  ;;  %v3168_v46 = vrot.slane %v3166_v30, 5  ;;  %v3172_v35 = vshrl.u32 %v3115_v34, 16  ;;  %6866 = vmatpush3.bf16.msra.mxu0 %v7709_v42  ;;  %v7741_v2 = vld [vmem:[#allocation9 + $0x1b8] sm:$0xff]  }
 0x1b8   : > { %v954_v24 = vrot.slane %v8967_v44, 4  ;;  %v853_v33 = vadd.f32 %v8669_v41, %v814_v59  ;;  %v3036_v52 = vsel %vm924_vm1, %v3033_v23, %v3035_v45  ;;  %v3175_v29 = vshll.u32 %v3115_v34, 16  ;;  %6867 = vmatprep.subr.bf16.mxu0 %v7710_v57  ;;  %v2781_v59 = vld [vmem:[#allocation2 + $0x30] sm:$0xff] }
 0x1b9   : > { %vm10347_vm9 = vcmp.ne.s16.totalorder %v8649_v32, 0  ;;  %v2844_v49 = vsel %vm1842_vm8, %v8920_v20, %v8976_v13  ;;  %v3169_v15 = vor.u32 %v3168_v46, %v3165_v18  ;;  %v3174_v62 = vrot.slane %v3172_v35, 4  ;;  %7012 = vmatpush3.bf16.msra.mxu1 %v7739_v8  ;;  %v7713_v35 = vld [vmem:[#allocation9 + $0x18] sm:$0xff]  }
 0x1ba   : > { %v2797_v41 = vsel %vm10362_vm14, %v8834_v0, 0  ;;  %989 = vst [vmem:[#allocation2 + $0x88] sm:$0xf] %v954_v24  ;;  %3600 = vmatmul.mubr.bf16.gmra.mrb[24].mxu1 %v2844_v49  ;;  %v885_v53 = vmax.f32 %v853_v33, 0.0  ;;  %v3177_v23 = vrot.slane %v3175_v29, 5  ;;  %v3116_v20 = vsel %vm10343_vm15, %v8885_v31, 0  ;;  %7013 = vmatprep.subr.bf16.mxu1 %v7740_v25 }
 0x1bb   : > { %v2846_v14 = vshrl.u32 %v2797_v41, 16  ;;  %v2849_v42 = vshll.u32 %v2797_v41, 16  ;;  %vm10501_vm10 = vsmask.f32 3328  ;;  %3607 = vmatprep.mubr.bf16.mxu1 %v3036_v52  ;;  %v3037_v4 = vrot.slane %v8839_v47, 4  ;;  %6868 = vmatpush3.bf16.msra.mxu0 %v7711_v39  ;;  %v7714_v52 = vld [vmem:[#allocation9 + $0x60] sm:$0xff]  }
 0x1bc   : > { %v3170_v38 = vsel %vm10501_vm10, %v3160_v6, %v3169_v15  ;;  %v3117_v0 = vsel %vm10342_vm0, %v8888_v43, 0  ;;  %v906_v30 = vpack.c.bf16 %v885_v53, %v884_v7  ;;  %v3178_v6 = vor.u32 %v3177_v23, %v3174_v62  ;;  %6869 = vmatprep.subr.bf16.mxu0 %v7712_v16  ;;  %v9022_v53 = vld [vmem:[#allocation2 + $0x50] sm:$0xff]  ;;  %v7718_v47 = vld [vmem:[#allocation9 + $0x70] sm:$0xff]  }
 0x1bd   : > { %7228 = vmatmul.mubr.bf16.gmra.mrb[20].mxu0 %v3170_v38  ;;  %v2848_v57 = vrot.slane %v2846_v14, 3  ;;  %v2851_v44 = vrot.slane %v2849_v42, 4  ;;  %vm10348_vm10 = vcmp.ne.s16.totalorder %v8655_v36, 0  ;;  %v3181_v34 = vshrl.u32 %v3116_v20, 16  ;;  %7014 = vmatpush3.bf16.msra.mxu1 %v7741_v2 }
 0x1be   : > { %v3184_v18 = vshll.u32 %v3116_v20, 16  ;;  %v3038_v43 = vsel %vm924_vm1, %v3035_v45, %v3037_v4  ;;  %v3190_v46 = vshrl.u32 %v3117_v0, 16  ;;  %v952_v8 = vrot.slane %v906_v30, 4  ;;  %v2782_v20 = vld [vmem:[#allocation2 + $0x38] sm:$0xff] }
 0x1bf   : > { %vm10502_vm5 = vsmask.f32 3328  ;;  %v9006_v7 = vor.u32 %v2851_v44, %v2848_v57  ;;  %v3193_v33 = vshll.u32 %v3117_v0, 16  ;;  %vm10349_vm0 = vcmp.ne.s16.totalorder %v8661_v40, 0  ;;  %6870 = vmatpush3.bf16.msra.mxu0 %v7713_v35  ;;  %v7716_v0 = vld [vmem:[#allocation9 + $0x68] sm:$0xff]  }
 0x1c0   : > { %v3179_v56 = vsel %vm10502_vm5, %v3169_v15, %v3178_v6  ;;  %v3183_v29 = vrot.slane %v3181_v34, 4  ;;  %v3186_v25 = vrot.slane %v3184_v18, 5  ;;  %v3192_v49 = vrot.slane %v3190_v46, 4  ;;  %6871 = vmatprep.subr.bf16.mxu0 %v7714_v52 }
 0x1c1   : > { %7231 = vmatprep.mubr.bf16.mxu0 %v3179_v56  ;;  %v2798_v62 = vsel %vm10346_vm11, %v2781_v59, 0  ;;  %v9014_v45 = vsel %vm924_vm1, %v950_v21, %v952_v8  ;;  %v9017_v15 = vsel %vm924_vm1, %v952_v8, %v954_v24  ;;  %v2853_v41 = vsel %vm1842_vm8, %v8976_v13, %v9006_v7  ;;  %v7715_v13 = vld [vmem:[#allocation9 + $0x20] sm:$0xff]   ;;  %v7717_v8 = vld [vmem:[#allocation9 + $0x28] sm:$0xff]  }
 0x1c2   : > { %v3195_v39 = vrot.slane %v3193_v33, 5  ;;  %vm1815_vm5 = vcmp.ne.s16.totalorder %v8664_v22, 0  ;;  %vm10351_vm15 = vcmp.ne.s16.totalorder %v8672_v3, 0  ;;  %987 = vst [vmem:[#allocation2 + $0x78] sm:$0xff] %v9014_v45  ;;  %988 = vst [vmem:[#allocation2 + $0x80] sm:$0xff] %v9017_v15  ;;  %v3187_v26 = vor.u32 %v3186_v25, %v3183_v29  ;;  %3608 = vmatmul.mubr.bf16.gmra.mrb[28].mxu1 %v2853_v41 }
 0x1c3   : > { %v2855_v21 = vshrl.u32 %v2798_v62, 16  ;;  %v2858_v23 = vshll.u32 %v2798_v62, 16  ;;  %v3118_v24 = vsel %vm10345_vm12, %v8875_v48, 0  ;;  %v3039_v38 = vrot.slane %v8885_v31, 4  ;;  %3615 = vmatprep.mubr.bf16.mxu1 %v3038_v43  ;;  %6872 = vmatpush3.bf16.msra.mxu0 %v7715_v13  ;;  %v10505_v62 = vld [vmem:[#allocation43_spill] sm:$0xff]  ;;  %v10523_v31 = vld [vmem:[#allocation20_spill] sm:$0xff] }
 0x1c4   : > { %v3196_v14 = vor.u32 %v3195_v39, %v3192_v49  ;;  %v3199_v42 = vshrl.u32 %v3118_v24, 16  ;;  %v3202_v16 = vshll.u32 %v3118_v24, 16  ;;  %vm10503_vm13 = vsmask.f32 3328  ;;  %6873 = vmatprep.subr.bf16.mxu0 %v7716_v0  ;;  %v9059_v24 = vld [vmem:[#allocation2 + $0x40] sm:$0xff]  ;;  %v7719_v0 = vld [vmem:[#allocation9 + $0x30] sm:$0xff]  }
 0x1c5   : > { %v3188_v2 = vsel %vm10503_vm13, %v3178_v6, %v3187_v26  ;;  %v2857_v30 = vrot.slane %v2855_v21, 3  ;;  %v2860_v57 = vrot.slane %v2858_v23, 4  ;;  %v3119_v48 = vsel %vm10347_vm9, %v9022_v53, 0  ;;  %vm10504_vm11 = vmmov %vm10503_vm13 }
 0x1c6   : > { %vm10352_vm12 = vcmp.ne.s16.totalorder %v8675_v51, 0  ;;  %7232 = vmatmul.mubr.bf16.gmra.mrb[24].mxu0 %v3188_v2  ;;  %v3197_v44 = vsel %vm10504_vm11, %v3187_v26, %v3196_v14  ;;  %v3201_v59 = vrot.slane %v3199_v42, 4  ;;  %v3204_v34 = vrot.slane %v3202_v16, 5 }
 0x1c7   : > { %v3040_v6 = vsel %vm924_vm1, %v3037_v4, %v3039_v38  ;;  %7235 = vmatprep.mubr.bf16.mxu0 %v3197_v44  ;;  %v9043_v18 = vor.u32 %v2860_v57, %v2857_v30  ;;  %v3208_v43 = vshrl.u32 %v3119_v48, 16  ;;  %v3211_v46 = vshll.u32 %v3119_v48, 16  ;;  %6874 = vmatpush3.bf16.msra.mxu0 %v7717_v8  ;;  %v10510_v57 = vld [vmem:[#allocation41_spill] sm:$0xff]  ;;  %v7720_v48 = vld [vmem:[#allocation9 + $0x78] sm:$0xff]  }
 0x1c8   : > { %v2799_v35 = vsel %vm10348_vm10, %v2782_v20, 0  ;;  %v3205_v56 = vor.u32 %v3204_v34, %v3201_v59  ;;  %v3120_v29 = vsel %vm10350_vm3, %v8897_v27, 0  ;;  %vm1816_vm11 = vcmp.ne.s16.totalorder %v8678_v11, 0  ;;  %6875 = vmatprep.subr.bf16.mxu0 %v7718_v47  ;;  %v10511_v44 = vld [vmem:[#allocation45_spill] sm:$0xff] }
 0x1c9   : > { %v2864_v33 = vshrl.u32 %v2799_v35, 16  ;;  %v2867_v52 = vshll.u32 %v2799_v35, 16  ;;  %vm10353_vm13 = vcmp.ne.s16.totalorder %v8681_v12, 0  ;;  %v3210_v4 = vrot.slane %v3208_v43, 4  ;;  %v10512_v43 = vld [vmem:[#allocation35_spill] sm:$0xff] }
 0x1ca   : > { %v3213_v25 = vrot.slane %v3211_v46, 5  ;;  %v3217_v49 = vshrl.u32 %v3120_v29, 16  ;;  %v10506_v41 = vand.u32 15, %v10505_v62  ;;  %vm10509_vm10 = vsmask.f32 3328 }
 0x1cb   : > { %v3206_v26 = vsel %vm10509_vm10, %v3196_v14, %v3205_v56  ;;  %v2866_v21 = vrot.slane %v2864_v33, 3  ;;  %v2869_v23 = vrot.slane %v2867_v52, 4  ;;  %v3220_v27 = vshll.u32 %v3120_v29, 16  ;;  %6876 = vmatpush3.bf16.msra.mxu0 %v7719_v0 }
 0x1cc   : > { %vm9054_vm9 = vcmp.ge.s32.totalorder %v10506_v41, 1  ;;  %v2862_v13 = vsel %vm1842_vm8, %v9006_v7, %v9043_v18  ;;  %v3214_v42 = vor.u32 %v3213_v25, %v3210_v4  ;;  %v3219_v16 = vrot.slane %v3217_v49, 4  ;;  %v9086_v41 = vld [vmem:[#allocation2 + $0x48] sm:$0xff]  ;;  %6877 = vmatprep.subr.bf16.mxu0 %v7720_v48 }
 0x1cd   : > { %v3121_v20 = vsel %vm10349_vm0, %v8902_v17, 0  ;;  %3616 = vmatmul.mubr.bf16.gmra.mrb[32].mxu1 %v2862_v13  ;;  %v3222_v2 = vrot.slane %v3220_v27, 5  ;;  %vm10359_vm10 = vcmp.ne.s16.totalorder %v10510_v57, 0  ;;  %v1195_v59 = vand.u32 15, %v10511_v44  ;;  %vm1574_vm3 = vmpackc.low %vm9054_vm9, %vm9054_vm9 }
 0x1ce   : > { %v3226_v14 = vshrl.u32 %v3121_v20, 16  ;;  %v3229_v30 = vshll.u32 %v3121_v20, 16  ;;  %3623 = vmatprep.mubr.bf16.mxu1 %v3040_v6  ;;  %v9069_v7 = vor.u32 %v2869_v23, %v2866_v21  ;;  %v2800_v34 = vsel %vm1815_vm5, %v9059_v24, 0  ;;  %7236 = vmatmul.mubr.bf16.gmra.mrb[28].mxu0 %v3206_v26  ;;  %v9091_v26 = vld [vmem:[#allocation9 + $0x80] sm:$0xff]   ;;  %v9098_v20 = vld [vmem:[#allocation2] sm:$0xff] }
 0x1cf   : > { %v3122_v17 = vsel %vm10351_vm15, %v8956_v19, 0  ;;  %v10513_v46 = vshll.u32 %v10512_v43, 16  ;;  %vm10514_vm0 = vsmask.f32 3328  ;;  %v3223_v33 = vor.u32 %v3222_v2, %v3219_v16  ;;  %v7721_v19 = vld [vmem:[#allocation9 + $0x38] sm:$0xff]  }
 0x1d0   : > { %v3215_v8 = vsel %vm10514_vm0, %v3205_v56, %v3214_v42  ;;  %v3228_v52 = vrot.slane %v3226_v14, 4  ;;  %v3231_v6 = vrot.slane %v3229_v30, 5  ;;  %v2873_v29 = vshrl.u32 %v2800_v34, 16  ;;  %v10517_v16 = vld [vmem:[#allocation42_spill] sm:$0xff]  ;;  %6878 = vmatpush3.bf16.msra.mxu0 %v7721_v19 }
 0x1d1   : > { %v9079_v35 = vrot.slane %v10513_v46, 5  ;;  %7239 = vmatprep.mubr.bf16.mxu0 %v3215_v8  ;;  %v2876_v47 = vshll.u32 %v2800_v34, 16  ;;  %v3235_v4 = vshrl.u32 %v3122_v17, 16  ;;  %v3238_v25 = vshll.u32 %v3122_v17, 16  ;;  %v10519_v34 = vld [vmem:[#allocation31_spill] sm:$0xff]  ;;  %7255 = vmatprep.subr.bf16.mxu0 %v9091_v26 }
 0x1d2   : > { %v3041_v49 = vrot.slane %v9059_v24, 4  ;;  %v3232_v62 = vor.u32 %v3231_v6, %v3228_v52  ;;  %v3123_v56 = vsel %vm10352_vm12, %v8961_v9, 0  ;;  %vm9093_vm0 = vcmp.ge.s32.totalorder %v1195_v59, 1  ;;  %v10520_v46 = vld [vmem:[#allocation19_spill] sm:$0xff]  ;;  %v9426_v24 = vld [vmem:[#allocation2 + $0x48] sm:$0xff] }
 0x1d3   : > { %v2875_v23 = vrot.slane %v2873_v29, 3  ;;  %v3237_v27 = vrot.slane %v3235_v4, 4  ;;  %v3240_v13 = vrot.slane %v3238_v25, 5  ;;  %vm1817_vm15 = vcmp.ne.s16.totalorder %v10517_v16, 0 }
 0x1d4   : > { %v1606_v9 = vsel %vm1574_vm3, 65537, %v9098_v20  ;;  %vm10518_vm12 = vsmask.f32 3328  ;;  %v2878_v2 = vrot.slane %v2876_v47, 4  ;;  %v3244_v14 = vshrl.u32 %v3123_v56, 16 }
 0x1d5   : > { %v3233_v0 = vsel %vm10518_vm12, %v3223_v33, %v3232_v62  ;;  %v3247_v30 = vshll.u32 %v3123_v56, 16  ;;  %v2871_v48 = vsel %vm1842_vm8, %v9043_v18, %v9069_v7  ;;  %v3241_v44 = vor.u32 %v3240_v13, %v3237_v27  ;;  %vm10521_vm9 = vmmov %vm10518_vm12 }
 0x1d6   : > { %v2801_v59 = vsel %vm1816_vm11, %v9086_v41, 0  ;;  %v3124_v39 = vsel %vm10353_vm13, %v9014_v45, 0  ;;  %vm10354_vm3 = vcmp.ne.s16.totalorder %v10519_v34, 0  ;;  %3624 = vmatmul.mubr.bf16.gmra.mrb[36].mxu1 %v2871_v48  ;;  %v3042_v17 = vsel %vm924_vm1, %v3039_v38, %v3041_v49  ;;  %vm10522_vm12 = vmmov %vm10521_vm9  ;;  %v9264_v34 = vld [vmem:[#allocation2 + $0x70] sm:$0xff] }
 0x1d7   : > { %v3246_v18 = vrot.slane %v3244_v14, 4  ;;  %v3249_v43 = vrot.slane %v3247_v30, 5  ;;  %v1017_v8 = vadd.s32 208, %v10520_v46  ;;  %v3224_v52 = vsel %vm10521_vm9, %v3214_v42, %v3223_v33  ;;  %3631 = vmatprep.mubr.bf16.mxu1 %v3042_v17  ;;  %vm1576_vm13 = vmpackc.low %vm9093_vm0, %vm9093_vm0  ;;  %v10524_v14 = vld [vmem:[#allocation44_spill] sm:$0xff] }
 0x1d8   : > { %v3242_v45 = vsel %vm10522_vm12, %v3232_v62, %v3241_v44  ;;  %v3253_v6 = vshrl.u32 %v3124_v39, 16  ;;  %v3256_v29 = vshll.u32 %v3124_v39, 16  ;;  %7240 = vmatmul.mubr.bf16.gmra.mrb[32].mxu0 %v3224_v52  ;;  %v2879_v47 = vor.u32 %v2878_v2, %v2875_v23  ;;  %vm10525_vm0 = vmmov %vm10521_vm9 }
 0x1d9   : > { %v3250_v4 = vor.u32 %v3249_v43, %v3246_v18  ;;  %v2882_v25 = vshrl.u32 %v2801_v59, 16  ;;  %v6353_v19 = vcombine.low %v1606_v9, %v10523_v31  ;;  %7243 = vmatprep.mubr.bf16.mxu0 %v3233_v0  ;;  %v2885_v38 = vshll.u32 %v2801_v59, 16  ;;  %v1471_v59 = vld [vmem:[#allocation2] sm:$0xf8]  ;;  %v3109_v43 = vld [vmem:[#allocation2 + $0x88] sm:$0x1f]  ;;  %vm10529_vm12 = vmmov %vm10525_vm0 }
 0x1da   : > { %v3255_v56 = vrot.slane %v3253_v6, 4  ;;  %v3258_v27 = vrot.slane %v3256_v29, 5  ;;  %v3125_v42 = vsel %vm10359_vm10, %v9017_v15, 0  ;;  %v3043_v33 = vrot.slane %v9086_v41, 4  ;;  %v10528_v29 = vld [vmem:[#allocation32_spill] sm:$0xff] }
 0x1db   : > { %v3251_v62 = vsel %vm10521_vm9, %v3241_v44, %v3250_v4  ;;  %v3262_v23 = vshrl.u32 %v3125_v42, 16  ;;  %v1209_v13 = vand.u32 15, %v1017_v8  ;;  %v3265_v9 = vshll.u32 %v3125_v42, 16  ;;  %vm10531_vm9 = vmmov %vm10525_vm0 }
 0x1dc   : > { %v3259_v2 = vor.u32 %v3258_v27, %v3255_v56  ;;  %v1761_v21 = vor.u32 %v9079_v35, %v10524_v14  ;;  %v1608_v0 = vsel %vm1576_vm13, 65537, %v9098_v20  ;;  %v2880_v30 = vsel %vm1842_vm8, %v9069_v7, %v2879_v47 }
 0x1dd   : > { %v3264_v48 = vrot.slane %v3262_v23, 4  ;;  %v1764_v39 = vshrl.u32 %v6353_v19, 16  ;;  %v1767_v15 = vshll.u32 %v6353_v19, 16  ;;  %v2884_v17 = vrot.slane %v2882_v25, 3 }
 0x1de   : > { %v2887_v41 = vrot.slane %v2885_v38, 4  ;;  %v3260_v44 = vsel %vm10525_vm0, %v3250_v4, %v3259_v2  ;;  %v3267_v18 = vrot.slane %v3265_v9, 5  ;;  %3632 = vmatmul.mubr.bf16.gmra.mrb[40].mxu1 %v2880_v30  ;;  %v3044_v35 = vsel %vm924_vm1, %v3041_v49, %v3043_v33 }
 0x1df   : > { %v2802_v8 = vsel %vm1817_vm15, %v9022_v53, 0  ;;  %vm9147_vm13 = vcmp.ge.s32.totalorder %v1209_v13, 1  ;;  %v1019_v52 = vadd.s32 224, %v10520_v46  ;;  %3639 = vmatprep.mubr.bf16.mxu1 %v3044_v35  ;;  %v9156_v4 = vsel %vm10529_vm12, %v10528_v29, %v1761_v21 }
 0x1e0   : > { %v9152_v6 = vor.u32 %v3267_v18, %v3264_v48  ;;  %v9160_v49 = vsel %vm1808_vm4, %v1471_v59, 0  ;;  %7244 = vmatmul.mubr.bf16.gmra.mrb[36].mxu0 %v3242_v45  ;;  %v3126_v25 = vsel %vm10354_vm3, %v3109_v43, 0  ;;  %v1766_v19 = vrot.slane %v1764_v39, 4  ;;  %vm1578_vm0 = vmpackc.low %vm9147_vm13, %vm9147_vm13  ;;  %v9171_v48 = vld [vmem:[#allocation2 + $0x58] sm:$0xff] }
 0x1e1   : > { %v1769_v38 = vrot.slane %v1767_v15, 5  ;;  %v6354_v56 = vcombine.low %v1608_v0, %v10523_v31  ;;  %7247 = vmatprep.mubr.bf16.mxu0 %v3251_v62  ;;  %v2888_v27 = vor.u32 %v2887_v41, %v2884_v17  ;;  %v2891_v23 = vshrl.u32 %v2802_v8, 16  ;;  %v2027_v62 = vld [vmem:[#allocation2] sm:$0xf0] }
 0x1e2   : > { %v3269_v42 = vsel %vm10531_vm9, %v3259_v2, %v9152_v6  ;;  %v2894_v13 = vshll.u32 %v2802_v8, 16  ;;  %v3045_v45 = vrot.slane %v9022_v53, 4  ;;  %v1223_v9 = vand.u32 15, %v1019_v52  ;;  %v9179_v53 = vld [vmem:[#allocation2 + $0x8] sm:$0xff] }
 0x1e3   : > { %v3271_v14 = vshrl.u32 %v3126_v25, 16  ;;  %v3274_v30 = vshll.u32 %v3126_v25, 16  ;;  %v1844_v0 = vshrl.u32 %v9160_v49, 16  ;;  %vm1818_vm12 = vcmp.ne.s16.totalorder %v9156_v4, 0 }
 0x1e4   : > { %v9175_v59 = vor.u32 %v1769_v38, %v1766_v19  ;;  %v1773_v2 = vshrl.u32 %v6354_v56, 16  ;;  %v1610_v39 = vsel %vm1578_vm0, 65537, %v9098_v20  ;;  %v2889_v15 = vsel %vm1842_vm8, %v2879_v47, %v2888_v27 }
 0x1e5   : > { %v2893_v17 = vrot.slane %v2891_v23, 3  ;;  %v2896_v41 = vrot.slane %v2894_v13, 4  ;;  %v1021_v18 = vadd.s32 240, %v10520_v46  ;;  %v3046_v43 = vsel %vm924_vm1, %v3043_v33, %v3045_v45 }
 0x1e6   : > { %3640 = vmatmul.mubr.bf16.gmra.mrb[44].mxu1 %v2889_v15  ;;  %v2803_v35 = vsel %vm1818_vm12, %v9171_v48, 0  ;;  %v1776_v8 = vshll.u32 %v6354_v56, 16  ;;  %vm9186_vm13 = vcmp.ge.s32.totalorder %v1223_v9, 1  ;;  %v3273_v47 = vrot.slane %v3271_v14, 4 }
 0x1e7   : > { %3647 = vmatprep.mubr.bf16.mxu1 %v3046_v43  ;;  %v3276_v52 = vrot.slane %v3274_v30, 5  ;;  %v2061_v29 = vrot.slane %v2027_v62, 4  ;;  %v1826_v46 = vsel %vm1809_vm2, %v9179_v53, 0  ;;  %v1847_v33 = vshll.u32 %v9160_v49, 16  ;;  %vm1580_vm0 = vmpackc.low %vm9186_vm13, %vm9186_vm13  ;;  %v9205_v43 = vld [vmem:[#allocation2 + $0x60] sm:$0xff] }
 0x1e8   : > { %7248 = vmatmul.mubr.bf16.gmra.mrb[40].mxu0 %v3260_v44  ;;  %v9196_v19 = vsel %vm10531_vm9, %v1761_v21, %v9175_v59  ;;  %v6355_v38 = vcombine.low %v1610_v39, %v10523_v31  ;;  %v2897_v56 = vor.u32 %v2896_v41, %v2893_v17  ;;  %v2900_v23 = vshrl.u32 %v2803_v35, 16 }
 0x1e9   : > { %10535 = vst [vmem:[#allocation43_spill] sm:$0xff] %v9196_v19  ;;  %7251 = vmatprep.mubr.bf16.mxu0 %v3269_v42  ;;  %v2903_v13 = vshll.u32 %v2803_v35, 16  ;;  %v1237_v44 = vand.u32 15, %v1021_v18  ;;  %v9203_v9 = vrot.slane %v9171_v48, 4  ;;  %v1846_v14 = vrot.slane %v1844_v0, 3  ;;  %v9211_v0 = vld [vmem:[#allocation2 + $0x10] sm:$0xff] }
 0x1ea   : > { %v1775_v49 = vrot.slane %v1773_v2, 4  ;;  %v1778_v30 = vrot.slane %v1776_v8, 5  ;;  %v3277_v62 = vor.u32 %v3276_v52, %v3273_v47  ;;  %v1852_v21 = vshrl.u32 %v1826_v46, 16 }
 0x1eb   : > { %v1855_v15 = vshll.u32 %v1826_v46, 16  ;;  %vm1819_vm9 = vcmp.ne.s16.totalorder %v9196_v19, 0  ;;  %v2062_v42 = vrot.slane %v9179_v53, 4  ;;  %v1782_v39 = vshrl.u32 %v6355_v38, 16  ;;  %v9360_v19 = vld [vmem:[#allocation2 + $0x38] sm:$0xff] }
 0x1ec   : > { %v1785_v17 = vshll.u32 %v6355_v38, 16  ;;  %v1612_v41 = vsel %vm1580_vm0, 65537, %v9098_v20  ;;  %v2898_v18 = vsel %vm1842_vm8, %v2888_v27, %v2897_v56  ;;  %v2902_v35 = vrot.slane %v2900_v23, 3 }
 0x1ed   : > { %v2905_v7 = vrot.slane %v2903_v13, 4  ;;  %vm9213_vm13 = vcmp.ge.s32.totalorder %v1237_v44, 1  ;;  %v3048_v8 = vsel %vm924_vm1, %v3045_v45, %v9203_v9  ;;  %v1849_v47 = vrot.slane %v1847_v33, 4 }
 0x1ee   : > { %3648 = vmatmul.mubr.bf16.gmra.mrb[48].mxu1 %v2898_v18  ;;  %v2804_v53 = vsel %vm1819_vm9, %v9205_v43, 0  ;;  %v1779_v52 = vor.u32 %v1778_v30, %v1775_v49  ;;  %vm10538_vm0 = vsmask.f32 3328  ;;  %v1854_v46 = vrot.slane %v1852_v21, 3  ;;  %vm1582_vm3 = vmpackc.low %vm9213_vm13, %vm9213_vm13 }
 0x1ef   : > { %v3278_v27 = vsel %vm10538_vm0, %v9152_v6, %v3277_v62  ;;  %3655 = vmatprep.mubr.bf16.mxu1 %v3048_v8  ;;  %v1857_v38 = vrot.slane %v1855_v15, 4  ;;  %v6356_v23 = vcombine.low %v1612_v41, %v10523_v31  ;;  %v2063_v13 = vsel %vm924_vm1, %v2061_v29, %v2062_v42  ;;  %v9241_v8 = vld [vmem:[#allocation2 + $0x18] sm:$0xff] }
 0x1f0   : > { %7252 = vmatmul.mubr.bf16.gmra.mrb[44].mxu0 %v3278_v27  ;;  %v1827_v45 = vsel %vm1810_vm6, %v9211_v0, 0  ;;  %v1784_v33 = vrot.slane %v1782_v39, 4  ;;  %v1787_v44 = vrot.slane %v1785_v17, 5  ;;  %v2906_v6 = vor.u32 %v2905_v7, %v2902_v35  ;;  %v9237_v39 = vld [vmem:[#allocation2 + $0x68] sm:$0xff] }
 0x1f1   : > { %4049 = vmatprep.mubr.bf16.mxu0 %v2063_v13  ;;  %v2909_v49 = vshrl.u32 %v2804_v53, 16  ;;  %v2912_v30 = vshll.u32 %v2804_v53, 16  ;;  %v1850_v62 = vor.u32 %v1849_v47, %v1846_v14  ;;  %v3049_v21 = vrot.slane %v9205_v43, 4 }
 0x1f2   : > { %v9235_v29 = vsel %vm10538_vm0, %v9175_v59, %v1779_v52  ;;  %v1858_v15 = vor.u32 %v1857_v38, %v1854_v46  ;;  %v1861_v41 = vshrl.u32 %v1827_v45, 16  ;;  %v1864_v18 = vshll.u32 %v1827_v45, 16  ;;  %v7727_v46 = vld [vmem:[#allocation9 + $0x88] sm:$0xff]  }
 0x1f3   : > { %10539 = vst [vmem:[#allocation45_spill] sm:$0xff] %v9235_v29  ;;  %v1614_v17 = vsel %vm1582_vm3, 65537, %v9098_v20  ;;  %v2064_v2 = vrot.slane %v9211_v0, 4  ;;  %v1788_v35 = vor.u32 %v1787_v44, %v1784_v33  ;;  %v1791_v7 = vshrl.u32 %v6356_v23, 16  ;;  %vm10540_vm3 = vmmov %vm10538_vm0 }
 0x1f4   : > { %v1794_v14 = vshll.u32 %v6356_v23, 16  ;;  %v2907_v47 = vsel %vm1842_vm8, %v2897_v56, %v2906_v6  ;;  %v2911_v53 = vrot.slane %v2909_v49, 3  ;;  %v2914_v27 = vrot.slane %v2912_v30, 4 }
 0x1f5   : > { %vm1820_vm13 = vcmp.ne.s16.totalorder %v9235_v29, 0  ;;  %v9247_v59 = vsel %vm924_vm1, %v9203_v9, %v3049_v21  ;;  %v6357_v0 = vcombine.low %v1614_v17, %v10523_v31  ;;  %v1859_v38 = vsel %vm1842_vm8, %v1850_v62, %v1858_v15 }
 0x1f6   : > { %3656 = vmatmul.mubr.bf16.gmra.mrb[52].mxu1 %v2907_v47  ;;  %v2805_v20 = vsel %vm1820_vm13, %v9237_v39, 0  ;;  %v1863_v56 = vrot.slane %v1861_v41, 3  ;;  %v1866_v23 = vrot.slane %v1864_v18, 4  ;;  %v1828_v13 = vsel %vm1811_vm7, %v9241_v8, 0  ;;  %v7730_v47 = vld [vmem:[#allocation9 + $0x90] sm:$0xff]  }
 0x1f7   : > { %3663 = vmatprep.mubr.bf16.mxu1 %v9247_v59  ;;  %v2065_v45 = vsel %vm924_vm1, %v2062_v42, %v2064_v2  ;;  %v9260_v33 = vsel %vm10540_vm3, %v1779_v52, %v1788_v35  ;;  %v1793_v44 = vrot.slane %v1791_v7, 4  ;;  %v1796_v49 = vrot.slane %v1794_v14, 5 }
 0x1f8   : > { %4050 = vmatmul.mubr.bf16.vlgmr.msra.gmra.mrb[48].mxu0 %v1859_v38  ;;  %v2915_v31 = vor.u32 %v2914_v27, %v2911_v53  ;;  %v2918_v30 = vshrl.u32 %v2805_v20, 16  ;;  %v2921_v62 = vshll.u32 %v2805_v20, 16  ;;  %v3051_v41 = vrot.slane %v9237_v39, 4 }
 0x1f9   : > { %7256 = vmatpush3.bf16.msra.mxu0 %v9091_v26  ;;  %4057 = vmatprep.mubr.bf16.mxu0 %v2065_v45  ;;  %v1870_v18 = vshrl.u32 %v1828_v13, 16  ;;  %v1873_v17 = vshll.u32 %v1828_v13, 16  ;;  %v1867_v38 = vor.u32 %v1866_v23, %v1863_v56  ;;  %vm1821_vm0 = vcmp.ne.s16.totalorder %v9260_v33, 0  ;;  %v9270_v26 = vld [vmem:[#allocation2 + $0x20] sm:$0xff]  ;;  %v7737_v45 = vld [vmem:[#allocation9 + $0x98] sm:$0xff]  }
 0x1fa   : > { %7257 = vmatprep.subr.bf16.mxu0 %v7727_v46  ;;  %v1800_v42 = vshrl.u32 %v6357_v0, 16  ;;  %v1803_v52 = vshll.u32 %v6357_v0, 16  ;;  %v9268_v7 = vrot.slane %v9241_v8, 4  ;;  %v1797_v14 = vor.u32 %v1796_v49, %v1793_v44 }
 0x1fb   : > { %v2916_v53 = vsel %vm1842_vm8, %v2906_v6, %v2915_v31  ;;  %v2920_v27 = vrot.slane %v2918_v30, 3  ;;  %v2923_v20 = vrot.slane %v2921_v62, 4  ;;  %v9274_v56 = vsel %vm924_vm1, %v3049_v21, %v3051_v41 }
 0x1fc   : > { %10541 = vst [vmem:[#allocation35_spill] sm:$0xff] %v9274_v56  ;;  %v1872_v23 = vrot.slane %v1870_v18, 3  ;;  %v1875_v13 = vrot.slane %v1873_v17, 4  ;;  %v2806_v0 = vsel %vm1821_vm0, %v9264_v34, 0  ;;  %v1868_v60 = vsel %vm1842_vm8, %v1858_v15, %v1867_v38  ;;  %v9289_v15 = vld [vmem:[#allocation2 + $0x78] sm:$0xff] }
 0x1fd   : > { %7258 = vmatpush3.bf16.msra.mxu0 %v7727_v46  ;;  %v1829_v6 = vsel %vm10362_vm14, %v9270_v26, 0  ;;  %v1802_v46 = vrot.slane %v1800_v42, 4  ;;  %v1805_v44 = vrot.slane %v1803_v52, 5  ;;  %v2067_v21 = vsel %vm924_vm1, %v2064_v2, %v9268_v7  ;;  %v9296_v52 = vld [vmem:[#allocation2 + $0x28] sm:$0xff] }
 0x1fe   : > { %3664 = vmatmul.mubr.bf16.gmra.mrb[56].mxu1 %v2916_v53  ;;  %7259 = vmatprep.subr.bf16.mxu0 %v7730_v47  ;;  %v9287_v49 = vsel %vm10540_vm3, %v1788_v35, %v1797_v14  ;;  %v2924_v30 = vor.u32 %v2923_v20, %v2920_v27  ;;  %v2927_v62 = vshrl.u32 %v2806_v0, 16  ;;  %v2930_v18 = vshll.u32 %v2806_v0, 16 }
 0x1ff   : > { %3671 = vmatprep.mubr.bf16.mxu1 %v9274_v56  ;;  %v1876_v17 = vor.u32 %v1875_v13, %v1872_v23  ;;  %v3053_v53 = vrot.slane %v9264_v34, 4  ;;  %v1879_v57 = vshrl.u32 %v1829_v6, 16  ;;  %v1882_v42 = vshll.u32 %v1829_v6, 16 }
 0x200   : > { %4058 = vmatmul.mubr.bf16.gmra.mrb[52].mxu0 %v1868_v60  ;;  %v7742_v60 = vld [vmem:[#allocation9 + $0xa0] sm:$0xff]   ;;  %vm1822_vm10 = vcmp.ne.s16.totalorder %v9287_v49, 0  ;;  %v9293_v2 = vor.u32 %v1805_v44, %v1802_v46  ;;  %v2068_v35 = vrot.slane %v9270_v26, 4  ;;  %v2929_v20 = vrot.slane %v2927_v62, 3  ;;  %v7743_v44 = vld [vmem:[#allocation9 + $0xa8] sm:$0xff]  }
 0x201   : > { %4065 = vmatprep.mubr.bf16.mxu0 %v2067_v21  ;;  %7260 = vmatpush3.bf16.msra.mxu0 %v7730_v47  ;;  %v2807_v27 = vsel %vm1822_vm10, %v9289_v15, 0  ;;  %v2925_v47 = vsel %vm1842_vm8, %v2915_v31, %v2924_v30  ;;  %v2932_v23 = vrot.slane %v2930_v18, 4  ;;  %v1877_v13 = vsel %vm1842_vm8, %v1867_v38, %v1876_v17  ;;  %v9322_v62 = vld [vmem:[#allocation2 + $0x80] sm:$0xff]  ;;  %v9324_v18 = vld [vmem:[#allocation2 + $0x30] sm:$0xff] }
 0x202   : > { %7261 = vmatprep.subr.bf16.mxu0 %v7737_v45  ;;  %10542 = vst [vmem:[#allocation42_spill] sm:$0xff] %v9293_v2  ;;  %v9304_v0 = vsel %vm924_vm1, %v3051_v41, %v3053_v53  ;;  %v1881_v6 = vrot.slane %v1879_v57, 3  ;;  %v1884_v46 = vrot.slane %v1882_v42, 4  ;;  %v2936_v21 = vshrl.u32 %v2807_v27, 16 }
 0x203   : > { %10543 = vst [vmem:[#allocation19_spill] sm:$0xff] %v9304_v0  ;;  %v2939_v12 = vshll.u32 %v2807_v27, 16  ;;  %vm10544_vm3 = vcmp.ne.s16.totalorder %v8642_v10, 0  ;;  %vm10545_vm14 = vsmask.f32 3328  ;;  %v9316_v41 = vsel %vm924_vm1, %v9268_v7, %v2068_v35 }
 0x204   : > { %v1830_v31 = vsel %vm10544_vm3, %v9296_v52, 0  ;;  %v2933_v57 = vor.u32 %v2932_v23, %v2929_v20  ;;  %v9320_v38 = vrot.slane %v9289_v15, 4  ;;  %v1885_v42 = vor.u32 %v1884_v46, %v1881_v6 }
 0x205   : > { %7262 = vmatpush3.bf16.msra.mxu0 %v7737_v45  ;;  %v9312_v45 = vsel %vm10545_vm14, %v1797_v14, %v9293_v2  ;;  %v1888_v27 = vshrl.u32 %v1830_v31, 16  ;;  %v1891_v14 = vshll.u32 %v1830_v31, 16  ;;  %v2941_v51 = vrot.slane %v2939_v12, 4 }
 0x206   : > { %3672 = vmatmul.mubr.bf16.gmra.mrb[60].mxu1 %v2925_v47  ;;  %7263 = vmatprep.subr.bf16.mxu0 %v7742_v60  ;;  %10546 = vst [vmem:[#allocation20_spill] sm:$0xff] %v9320_v38  ;;  %vm1823_vm14 = vcmp.ne.s16.totalorder %v9312_v45, 0  ;;  %v7744_v47 = vld [vmem:[#allocation9 + $0xb0] sm:$0xff]   ;;  %v2070_v3 = vrot.slane %v9296_v52, 4  ;;  %v2934_v40 = vsel %vm1842_vm8, %v2924_v30, %v2933_v57  ;;  %v1836_v6 = vsel %vm1819_vm9, %v9171_v48, 0  ;;  %v7745_v30 = vld [vmem:[#allocation9 + $0xb8] sm:$0xff]  }
 0x207   : > { %3679 = vmatprep.mubr.bf16.mxu1 %v9304_v0  ;;  %v1886_v12 = vsel %vm1842_vm8, %v1876_v17, %v1885_v42  ;;  %v9340_v46 = vsel %vm924_vm1, %v3053_v53, %v9320_v38  ;;  %v1893_v31 = vrot.slane %v1891_v14, 4  ;;  %vm10548_vm3 = vcmp.ne.s16.totalorder %v8655_v36, 0 }
 0x208   : > { %4066 = vmatmul.mubr.bf16.gmra.mrb[56].mxu0 %v1877_v13  ;;  %v2938_v13 = vrot.slane %v2936_v21, 3  ;;  %10547 = vst [vmem:[#allocation44_spill] sm:$0xff] %v9340_v46  ;;  %v1890_v21 = vrot.slane %v1888_v27, 3  ;;  %v1831_v48 = vsel %vm10548_vm3, %v9324_v18, 0  ;;  %v1945_v20 = vshll.u32 %v1836_v6, 16 }
 0x209   : > { %4073 = vmatprep.mubr.bf16.mxu0 %v9316_v41  ;;  %7264 = vmatpush3.bf16.msra.mxu0 %v7742_v60  ;;  %v2808_v60 = vsel %vm1823_vm14, %v9322_v62, 0  ;;  %v9349_v17 = vsel %vm924_vm1, %v2068_v35, %v2070_v3  ;;  %v10549_v53 = vrot.slane %v9322_v62, 4  ;;  %v10550_v14 = vrot.slane %v9324_v18, 4 }
 0x20a   : > { %7265 = vmatprep.subr.bf16.mxu0 %v7743_v44  ;;  %v9343_v23 = vor.u32 %v2941_v51, %v2938_v13  ;;  %v2945_v13 = vshrl.u32 %v2808_v60, 16  ;;  %v1947_v35 = vrot.slane %v1945_v20, 4  ;;  %v1897_v50 = vshrl.u32 %v1831_v48, 16 }
 0x20b   : > { %v3058_v27 = vsel %vm924_vm1, %v9320_v38, %v10549_v53  ;;  %v9358_v51 = vsel %vm924_vm1, %v2070_v3, %v10550_v14  ;;  %v1894_v53 = vor.u32 %v1893_v31, %v1890_v21  ;;  %v1900_v38 = vshll.u32 %v1831_v48, 16  ;;  %v9366_v3 = vld [vmem:[#allocation9 + $0x200] sm:$0xff]  }
 0x20c   : > { %v2943_v14 = vsel %vm1842_vm8, %v2933_v57, %v9343_v23  ;;  %vm1824_vm3 = vcmp.ne.s16.totalorder %v9293_v2, 0  ;;  %v2947_v20 = vrot.slane %v2945_v13, 3 }
 0x20d   : > { %7266 = vmatpush3.bf16.msra.mxu0 %v7743_v44  ;;  %v3010_v44 = vld [vmem:[#allocation2 + $0x88] sm:$0xf]  ;;  %v1902_v2 = vrot.slane %v1900_v38, 4 }
 0x20e   : > { %3680 = vmatmul.mubr.bf16.gmra.mrb[64].mxu1 %v2934_v40  ;;  %7267 = vmatprep.subr.bf16.mxu0 %v7744_v47  ;;  %v1942_v40 = vshrl.u32 %v1836_v6, 16  ;;  %v2948_v6 = vshll.u32 %v2808_v60, 16  ;;  %v3059_v0 = vrot.slane %v3010_v44, 4  ;;  %v1899_v44 = vrot.slane %v1897_v50, 3 }
 0x20f   : > { %3687 = vmatprep.mubr.bf16.mxu1 %v9340_v46  ;;  %v1837_v46 = vsel %vm1820_vm13, %v9205_v43, 0  ;;  %v1832_v43 = vsel %vm1815_vm5, %v9360_v19, 0 }
 0x210   : > { %4074 = vmatmul.mubr.bf16.gmra.mrb[60].mxu0 %v1886_v12  ;;  %v2792_v12 = vld [vmem:[#allocation2 + $0x88] sm:$0xf]  ;;  %v1944_v54 = vrot.slane %v1942_v40, 3  ;;  %v1951_v60 = vshrl.u32 %v1837_v46, 16  ;;  %v1954_v40 = vshll.u32 %v1837_v46, 16  ;;  %v2950_v21 = vrot.slane %v2948_v6, 4 }
 0x211   : > { %4081 = vmatprep.mubr.bf16.mxu0 %v9349_v17  ;;  %7268 = vmatpush3.bf16.msra.mxu0 %v7744_v47  ;;  %v2809_v29 = vsel %vm1824_vm3, %v2792_v12, 0  ;;  %v1838_v47 = vsel %vm1821_vm0, %v9237_v39, 0  ;;  %v1895_v46 = vsel %vm1842_vm8, %v1885_v42, %v1894_v53  ;;  %v1906_v56 = vshrl.u32 %v1832_v43, 16 }
 0x212   : > { %7269 = vmatprep.subr.bf16.mxu0 %v7745_v30  ;;  %v9379_v31 = vor.u32 %v1947_v35, %v1944_v54  ;;  %v1953_v57 = vrot.slane %v1951_v60, 3  ;;  %v1956_v48 = vrot.slane %v1954_v40, 4  ;;  %v1960_v13 = vshrl.u32 %v1838_v47, 16 }
 0x213   : > { %v1963_v12 = vshll.u32 %v1838_v47, 16  ;;  %v1839_v54 = vsel %vm1822_vm10, %v9264_v34, 0  ;;  %v2954_v39 = vshrl.u32 %v2809_v29, 16  ;;  %v2951_v50 = vor.u32 %v2950_v21, %v2947_v20  ;;  %v4339_v21 = vld [vmem:[#allocation2 + $0x10] sm:$0xf8] }
 0x214   : > { %v1957_v22 = vor.u32 %v1956_v48, %v1953_v57  ;;  %v1962_v6 = vrot.slane %v1960_v13, 3  ;;  %v1969_v35 = vshrl.u32 %v1839_v54, 16  ;;  %v2957_v42 = vshll.u32 %v2809_v29, 16 }
 0x215   : > { %7270 = vmatpush3.bf16.msra.mxu0 %v7745_v30  ;;  %v1965_v30 = vrot.slane %v1963_v12, 4  ;;  %v1972_v38 = vshll.u32 %v1839_v54, 16  ;;  %v1903_v47 = vor.u32 %v1902_v2, %v1899_v44  ;;  %v10551_v34 = vrot.slane %v9322_v62, 4  ;;  %v9395_v12 = vld [vmem:[#allocation2 + $0x40] sm:$0xff] }
 0x216   : > { %3688 = vmatmul.mubr.bf16.gmra.mrb[68].mxu1 %v2943_v14  ;;  %7303 = vmatprep.subr.bf16.mxu0 %v9366_v3  ;;  %v9389_v14 = vsel %vm1842_vm8, %v9379_v31, %v1957_v22  ;;  %v1971_v40 = vrot.slane %v1969_v35, 3  ;;  %v1908_v13 = vrot.slane %v1906_v56, 3  ;;  %v1840_v20 = vsel %vm1823_vm14, %v9289_v15, 0 }
 0x217   : > { %3695 = vmatprep.mubr.bf16.mxu1 %v3058_v27  ;;  %v1909_v27 = vshll.u32 %v1832_v43, 16  ;;  %v1966_v60 = vor.u32 %v1965_v30, %v1962_v6  ;;  %v3060_v57 = vsel %vm924_vm1, %v10551_v34, %v3059_v0  ;;  %v1974_v48 = vrot.slane %v1972_v38, 4 }
 0x218   : > { %4082 = vmatmul.mubr.bf16.gmra.mrb[64].mxu0 %v1895_v46  ;;  %v2074_v46 = vrot.slane %v9360_v19, 4  ;;  %v2952_v2 = vsel %vm1842_vm8, %v9343_v23, %v2951_v50  ;;  %v2956_v43 = vrot.slane %v2954_v39, 3  ;;  %v2959_v62 = vrot.slane %v2957_v42, 4  ;;  %v4557_v42 = vld [vmem:[#allocation2 + $0x10] sm:$0xf0] }
 0x219   : > { %4089 = vmatprep.mubr.bf16.mxu0 %v9358_v51  ;;  %v9398_v29 = vsel %vm1842_vm8, %v1957_v22, %v1966_v60  ;;  %v1975_v0 = vor.u32 %v1974_v48, %v1971_v40  ;;  %v1911_v44 = vrot.slane %v1909_v27, 4  ;;  %v4357_v56 = vsel %vm1809_vm2, %v9241_v8, 0 }
 0x21a   : > { %v1978_v54 = vshrl.u32 %v1840_v20, 16  ;;  %v1981_v22 = vshll.u32 %v1840_v20, 16  ;;  %v1904_v6 = vsel %vm1842_vm8, %v1894_v53, %v1903_v47  ;;  %v1833_v15 = vsel %vm1816_vm11, %v9395_v12, 0 }
 0x21b   : > { %v9413_v23 = vsel %vm1842_vm8, %v1966_v60, %v1975_v0  ;;  %v10552_v39 = vrot.slane %v9324_v18, 4  ;;  %v4356_v25 = vsel %vm1808_vm4, %v4339_v21, 0  ;;  %v2960_v53 = vor.u32 %v2959_v62, %v2956_v43 }
 0x21c   : > { %v1980_v8 = vrot.slane %v1978_v54, 3  ;;  %v1983_v35 = vrot.slane %v1981_v22, 4  ;;  %v4382_v38 = vshrl.u32 %v4357_v56, 16  ;;  %v4385_v27 = vshll.u32 %v4357_v56, 16 }
 0x21d   : > { %v9418_v30 = vsel %vm924_vm1, %v10552_v39, %v2074_v46  ;;  %v1912_v40 = vor.u32 %v1911_v44, %v1908_v13  ;;  %v1915_v60 = vshrl.u32 %v1833_v15, 16  ;;  %v4374_v48 = vshrl.u32 %v4356_v25, 16 }
 0x21e   : > { %3696 = vmatmul.mubr.bf16.gmra.mrb[72].mxu1 %v2952_v2  ;;  %v9423_v34 = vor.u32 %v1983_v35, %v1980_v8  ;;  %v4377_v20 = vshll.u32 %v4356_v25, 16  ;;  %v2076_v2 = vrot.slane %v9395_v12, 4  ;;  %v2961_v43 = vsel %vm1842_vm8, %v2951_v50, %v2960_v53 }
 0x21f   : > { %3703 = vmatprep.mubr.bf16.mxu1 %v3060_v57  ;;  %v1918_v57 = vshll.u32 %v1833_v15, 16  ;;  %v4384_v62 = vrot.slane %v4382_v38, 3  ;;  %v4387_v56 = vrot.slane %v4385_v27, 4  ;;  %v1913_v13 = vsel %vm1842_vm8, %v1903_v47, %v1912_v40  ;;  %v9447_v38 = vld [vmem:[#allocation2 + $0x50] sm:$0xff] }
 0x220   : > { %4090 = vmatmul.mubr.bf16.gmra.mrb[68].mxu0 %v1904_v6  ;;  %v4591_v6 = vrot.slane %v4557_v42, 4  ;;  %v9430_v21 = vsel %vm1842_vm8, %v1975_v0, %v9423_v34  ;;  %v1917_v54 = vrot.slane %v1915_v60, 3  ;;  %v4358_v22 = vsel %vm1810_vm6, %v9270_v26, 0 }
 0x221   : > { %4097 = vmatprep.mubr.bf16.mxu0 %v9418_v30  ;;  %v1920_v15 = vrot.slane %v1918_v57, 4  ;;  %v4376_v39 = vrot.slane %v4374_v48, 3  ;;  %v4379_v0 = vrot.slane %v4377_v20, 4  ;;  %v1834_v50 = vsel %vm1817_vm15, %v9426_v24, 0 }
 0x222   : > { %v4593_v44 = vsel %vm924_vm1, %v4591_v6, %v9268_v7  ;;  %v9443_v25 = vsel %vm924_vm1, %v2074_v46, %v2076_v2  ;;  %v4388_v7 = vor.u32 %v4387_v56, %v4384_v62  ;;  %v4391_v47 = vshrl.u32 %v4358_v22, 16 }
 0x223   : > { %v4394_v8 = vshll.u32 %v4358_v22, 16  ;;  %v1924_v35 = vshrl.u32 %v1834_v50, 16  ;;  %v1927_v28 = vshll.u32 %v1834_v50, 16  ;;  %v1921_v26 = vor.u32 %v1920_v15, %v1917_v54 }
 0x224   : > { %v4380_v53 = vor.u32 %v4379_v0, %v4376_v39  ;;  %v2078_v42 = vrot.slane %v9426_v24, 4  ;;  %v4393_v60 = vrot.slane %v4391_v47, 3  ;;  %v4359_v46 = vsel %vm1811_vm7, %v9296_v52, 0 }
 0x225   : > { %v4396_v57 = vrot.slane %v4394_v8, 4  ;;  %v1926_v48 = vrot.slane %v1924_v35, 3  ;;  %v1929_v20 = vrot.slane %v1927_v28, 4  ;;  %v1922_v6 = vsel %vm1842_vm8, %v1912_v40, %v1921_v26 }
 0x226   : > { %3704 = vmatmul.mubr.bf16.gmra.mrb[76].mxu1 %v2961_v43  ;;  %v4389_v27 = vsel %vm1842_vm8, %v4380_v53, %v4388_v7  ;;  %v1835_v43 = vsel %vm1818_vm12, %v9447_v38, 0  ;;  %vm10553_vm2 = vcmp.ne.s16.totalorder %v8518_v61, 0  ;;  %v9462_v56 = vsel %vm924_vm1, %v2076_v2, %v2078_v42 }
 0x227   : > { %5146 = vmatprep.mubr.bf16.mxu1 %v4593_v44  ;;  %v2484_v62 = vsel %vm10553_vm2, %v9296_v52, 0  ;;  %v4400_v55 = vshrl.u32 %v4359_v46, 16  ;;  %v4403_v44 = vshll.u32 %v4359_v46, 16  ;;  %v1933_v22 = vshrl.u32 %v1835_v43, 16 }
 0x228   : > { %4098 = vmatmul.mubr.bf16.gmra.mrb[72].mxu0 %v1913_v13  ;;  %v4397_v13 = vor.u32 %v4396_v57, %v4393_v60  ;;  %v2541_v40 = vshrl.u32 %v2484_v62, 16  ;;  %v2544_v54 = vshll.u32 %v2484_v62, 16  ;;  %vm10554_vm4 = vcmp.ne.s16.totalorder %v8624_v58, 0 }
 0x229   : > { %4105 = vmatprep.mubr.bf16.mxu0 %v9443_v25  ;;  %v2485_v15 = vsel %vm10554_vm4, %v9324_v18, 0  ;;  %v1936_v39 = vshll.u32 %v1835_v43, 16  ;;  %v9469_v2 = vrot.slane %v9447_v38, 4  ;;  %vm10555_vm6 = vcmp.ne.s16.totalorder %v8531_v1, 0 }
 0x22a   : > { %v2543_v0 = vrot.slane %v2541_v40, 4  ;;  %v2546_v52 = vrot.slane %v2544_v54, 5  ;;  %v2550_v50 = vshrl.u32 %v2485_v15, 16  ;;  %v4360_v47 = vsel %vm10555_vm6, %v9324_v18, 0 }
 0x22b   : > { %v2553_v8 = vshll.u32 %v2485_v15, 16  ;;  %v4398_v35 = vsel %vm1842_vm8, %v4388_v7, %v4397_v13  ;;  %v4402_v28 = vrot.slane %v4400_v55, 3  ;;  %v4405_v53 = vrot.slane %v4403_v44, 4 }
 0x22c   : > { %v1935_v60 = vrot.slane %v1933_v22, 3  ;;  %v9475_v57 = vor.u32 %v2546_v52, %v2543_v0  ;;  %vm10556_vm7 = vcmp.ne.s16.totalorder %v8629_v5, 0  ;;  %v1938_v1 = vrot.slane %v1936_v39, 4 }
 0x22d   : > { %v2555_v46 = vrot.slane %v2553_v8, 5  ;;  %v4409_v18 = vshrl.u32 %v4360_v47, 16  ;;  %v9484_v7 = vsel %vm924_vm1, %v2078_v42, %v9469_v2  ;;  %v4412_v43 = vshll.u32 %v4360_v47, 16 }
 0x22e   : > { %5147 = vmatmul.mubr.bf16.vlgmr.msra.gmra.mrb[80].mxu1 %v4389_v27  ;;  %v2552_v27 = vrot.slane %v2550_v50, 4  ;;  %v4406_v44 = vor.u32 %v4405_v53, %v4402_v28  ;;  %vm10557_vm2 = vcmp.ne.s16.totalorder %v8646_v63, 0  ;;  %vm10558_vm4 = vcmp.ne.s16.totalorder %v8649_v32, 0  ;;  %v10587_v63 = vld [vmem:[#allocation40_spill] sm:$0xff] }
 0x22f   : > { %5154 = vmatprep.mubr.bf16.mxu1 %v9316_v41  ;;  %v1930_v41 = vor.u32 %v1929_v20, %v1926_v48  ;;  %v2486_v48 = vsel %vm10556_vm7, %v9360_v19, 0  ;;  %vm10559_vm6 = vsmask.f32 3328  ;;  %v1939_v15 = vor.u32 %v1938_v1, %v1935_v60 }
 0x230   : > { %4106 = vmatmul.mubr.bf16.gmra.mrb[76].mxu0 %v1922_v6  ;;  %v2559_v6 = vshrl.u32 %v2486_v48, 16  ;;  %v2556_v62 = vor.u32 %v2555_v46, %v2552_v27  ;;  %v2562_v55 = vshll.u32 %v2486_v48, 16  ;;  %v4411_v39 = vrot.slane %v4409_v18, 3 }
 0x231   : > { %4113 = vmatprep.mubr.bf16.mxu0 %v9462_v56  ;;  %v1931_v20 = vsel %vm1842_vm8, %v1921_v26, %v1930_v41  ;;  %v2487_v26 = vsel %vm10557_vm2, %v9395_v12, 0  ;;  %v4414_v50 = vrot.slane %v4412_v43, 4  ;;  %v4407_v28 = vsel %vm1842_vm8, %v4397_v13, %v4406_v44  ;;  %vm10561_vm2 = vmmov %vm10559_vm6 }
 0x232   : > { %v2561_v40 = vrot.slane %v2559_v6, 4  ;;  %v9495_v54 = vsel %vm10559_vm6, %v9475_v57, %v2556_v62  ;;  %v2564_v42 = vrot.slane %v2562_v55, 5  ;;  %v2568_v22 = vshrl.u32 %v2487_v26, 16  ;;  %vm10563_vm6 = vmmov %vm10561_vm2 }
 0x233   : > { %v2571_v0 = vshll.u32 %v2487_v26, 16  ;;  %vm10560_vm7 = vcmp.ne.s16.totalorder %v8642_v10, 0  ;;  %v1940_v1 = vsel %vm1842_vm8, %v1930_v41, %v1939_v15  ;;  %v2083_v10 = vsel %vm924_vm1, %v9469_v2, %v9203_v9 }
 0x234   : > { %v2565_v47 = vor.u32 %v2564_v42, %v2561_v40  ;;  %v2570_v8 = vrot.slane %v2568_v22, 4  ;;  %v4361_v53 = vsel %vm10560_vm7, %v9360_v19, 0  ;;  %v4415_v19 = vor.u32 %v4414_v50, %v4411_v39  ;;  %vm10564_vm7 = vmmov %vm10561_vm2 }
 0x235   : > { %v2573_v27 = vrot.slane %v2571_v0, 5  ;;  %v4418_v43 = vshrl.u32 %v4361_v53, 16  ;;  %v4421_v55 = vshll.u32 %v4361_v53, 16 }
 0x236   : > { %5155 = vmatmul.mubr.bf16.gmra.mrb[84].mxu1 %v4398_v35  ;;  %v9502_v48 = vsel %vm10561_vm2, %v2556_v62, %v2565_v47  ;;  %v4416_v42 = vsel %vm1842_vm8, %v4406_v44, %v4415_v19 }
 0x237   : > { %5162 = vmatprep.mubr.bf16.mxu1 %v9349_v17  ;;  %v2488_v17 = vsel %vm10558_vm4, %v9426_v24, 0  ;;  %vm10562_vm4 = vcmp.ne.s16.totalorder %v8658_v37, 0  ;;  %v2574_v13 = vor.u32 %v2573_v27, %v2570_v8  ;;  %v4420_v22 = vrot.slane %v4418_v43, 3 }
 0x238   : > { %4114 = vmatmul.mubr.bf16.gmra.mrb[80].mxu0 %v1931_v20  ;;  %v2577_v52 = vshrl.u32 %v2488_v17, 16  ;;  %v2580_v35 = vshll.u32 %v2488_v17, 16  ;;  %v2489_v20 = vsel %vm10562_vm4, %v9447_v38, 0  ;;  %v4423_v0 = vrot.slane %v4421_v55, 4 }
 0x239   : > { %4121 = vmatprep.mubr.bf16.mxu0 %v9484_v7  ;;  %v2586_v18 = vshrl.u32 %v2489_v20, 16  ;;  %v2589_v6 = vshll.u32 %v2489_v20, 16  ;;  %v9513_v40 = vsel %vm10563_vm6, %v2565_v47, %v2574_v13  ;;  %vm10565_vm4 = vcmp.ne.s16.totalorder %v8655_v36, 0 }
 0x23a   : > { %v2579_v46 = vrot.slane %v2577_v52, 4  ;;  %v2582_v60 = vrot.slane %v2580_v35, 5  ;;  %v4362_v39 = vsel %vm10565_vm4, %v9395_v12, 0  ;;  %v1949_v52 = vsel %vm1842_vm8, %v1939_v15, %v9379_v31  ;;  %v1487_v31 = vld [vmem:[#allocation2 + $0x80] sm:$0xf]  ;;  %v10567_v15 = vld [vmem:[#allocation35_spill] sm:$0xff] }
 0x23b   : > { %v2588_v26 = vrot.slane %v2586_v18, 4  ;;  %v2591_v41 = vrot.slane %v2589_v6, 5  ;;  %v4424_v44 = vor.u32 %v4423_v0, %v4420_v22  ;;  %v4427_v50 = vshrl.u32 %v4362_v39, 16 }
 0x23c   : > { %v2583_v62 = vor.u32 %v2582_v60, %v2579_v46  ;;  %v4430_v47 = vshll.u32 %v4362_v39, 16  ;;  %v4363_v36 = vsel %vm1815_vm5, %v9426_v24, 0  ;;  %v4364_v46 = vsel %vm1816_vm11, %v9447_v38, 0  ;;  %v2127_v38 = vld [vmem:[#allocation2 + $0x8] sm:$0xff] }
 0x23d   : > { %v9518_v17 = vor.u32 %v2591_v41, %v2588_v26  ;;  %v4425_v8 = vsel %vm1842_vm8, %v4415_v19, %v4424_v44  ;;  %v4429_v35 = vrot.slane %v4427_v50, 3  ;;  %v4436_v12 = vshrl.u32 %v4363_v36, 16  ;;  %v2043_v41 = vld [vmem:[#allocation2 + $0x80] sm:$0xf] }
 0x23e   : > { %5163 = vmatmul.mubr.bf16.gmra.mrb[88].mxu1 %v4407_v28  ;;  %v4432_v28 = vrot.slane %v4430_v47, 4  ;;  %v1841_v24 = vsel %vm1824_vm3, %v1487_v31, 0  ;;  %v4448_v6 = vshll.u32 %v4364_v46, 16  ;;  %vm10577_vm6 = vcmp.ne.s16.totalorder %v8658_v37, 0 }
 0x23f   : > { %5170 = vmatprep.mubr.bf16.mxu1 %v9358_v51  ;;  %v9516_v51 = vsel %vm10564_vm7, %v2574_v13, %v2583_v62  ;;  %v9523_v9 = vsel %vm10561_vm2, %v2583_v62, %v9518_v17  ;;  %v4438_v20 = vrot.slane %v4436_v12, 3  ;;  %v2126_v13 = vld [vmem:[#allocation2] sm:$0xf0]  ;;  %v1990_v19 = vshll.u32 %v1841_v24, 16  ;;  %v10569_v62 = vld [vmem:[#allocation22_spill] sm:$0xff] }
 0x240   : > { %4122 = vmatmul.mubr.bf16.gmra.mrb[84].mxu0 %v1940_v1  ;;  %v4433_v27 = vor.u32 %v4432_v28, %v4429_v35  ;;  %v4445_v1 = vshrl.u32 %v4364_v46, 16  ;;  %vm10570_vm5 = vcmp.ne.s16.totalorder %v10569_v62, 0  ;;  %v4450_v22 = vrot.slane %v4448_v6, 4  ;;  %v9557_v35 = vld [vmem:[#allocation2 + $0x60] sm:$0xff]  ;;  %v2128_v46 = vld [vmem:[#allocation2 + $0x10] sm:$0xff]  ;;  %v10575_v6 = vld [vmem:[#allocation25_spill] sm:$0xff] }
 0x241   : > { %4129 = vmatprep.mubr.bf16.mxu0 %v2083_v10  ;;  %v1987_v10 = vshrl.u32 %v1841_v24, 16  ;;  %v2479_v55 = vsel %vm10570_vm5, %v2126_v13, 0  ;;  %v1992_v39 = vrot.slane %v1990_v19, 4  ;;  %v2092_v28 = vrot.slane %v2043_v41, 4  ;;  %v9578_v19 = vld [vmem:[#allocation2 + $0x18] sm:$0xff] }
 0x242   : > { %v4434_v18 = vsel %vm1842_vm8, %v4424_v44, %v4433_v27  ;;  %v4447_v26 = vrot.slane %v4445_v1, 3  ;;  %vm10576_vm11 = vcmp.ne.s16.totalorder %v10575_v6, 0  ;;  %v9605_v41 = vld [vmem:[#allocation2 + $0x78] sm:$0xff]  ;;  %vm10588_vm5 = vcmp.ne.s16.totalorder %v10587_v63, 0 }
 0x243   : > { %v1989_v0 = vrot.slane %v1987_v10, 3  ;;  %v9576_v10 = vsel %vm10576_vm11, %v2128_v46, 0  ;;  %vm10591_vm11 = vsmask.f32 3328  ;;  %v4616_v33 = vrot.slane %v9605_v41, 4 }
 0x244   : > { %v4451_v12 = vor.u32 %v4450_v22, %v4447_v26  ;;  %v2514_v22 = vshrl.u32 %v9576_v10, 16 }
 0x246   : > { %5171 = vmatmul.mubr.bf16.gmra.mrb[92].mxu1 %v4416_v42  ;;  %v10571_v42 = vld [vmem:[#allocation19_spill] sm:$0xff] }
 0x247   : > { %5178 = vmatprep.mubr.bf16.mxu1 %v9418_v30  ;;  %v4439_v30 = vshll.u32 %v4363_v36, 16 }
 0x248   : > { %4130 = vmatmul.mubr.bf16.gmra.mrb[88].mxu0 %v1949_v52  ;;  %v10572_v52 = vld [vmem:[#allocation24_spill] sm:$0xff] }
 0x249   : > { %4137 = vmatprep.mubr.bf16.mxu0 %v9247_v59  ;;  %v9538_v59 = vld [vmem:[#allocation2 + $0x58] sm:$0xff] }
 0x24e   : > { %5179 = vmatmul.mubr.bf16.gmra.mrb[96].mxu1 %v4425_v8  ;;  %v2497_v8 = vshrl.u32 %v2479_v55, 16 }
 0x24f   : > { %5186 = vmatprep.mubr.bf16.mxu1 %v9443_v25  ;;  %v4365_v25 = vsel %vm1817_vm15, %v9538_v59, 0  ;;  %vm10573_vm15 = vcmp.ne.s16.totalorder %v10572_v52, 0 }
 0x250   : > { %4138 = vmatmul.mubr.bf16.gmra.mrb[92].mxu0 %v9389_v14  ;;  %v4441_v14 = vrot.slane %v4439_v30, 4  ;;  %v4454_v43 = vshrl.u32 %v4365_v25, 16  ;;  %v4457_v11 = vshll.u32 %v4365_v25, 16  ;;  %v2480_v44 = vsel %vm10573_vm15, %v2127_v38, 0 }
 0x251   : > { %4145 = vmatprep.mubr.bf16.mxu0 %v10567_v15  ;;  %v2505_v53 = vshrl.u32 %v2480_v44, 16  ;;  %v2508_v36 = vshll.u32 %v2480_v44, 16  ;;  %v1993_v30 = vor.u32 %v1992_v39, %v1989_v0  ;;  %v10382_v15 = vrot.slane %v9557_v35, 4  ;;  %v10579_v39 = vld [vmem:[#allocation26_spill] sm:$0xff]  ;;  %v10581_v44 = vld [vmem:[#allocation36_spill] sm:$0xff] }
 0x252   : > { %v4442_v16 = vor.u32 %v4441_v14, %v4438_v20  ;;  %v4456_v50 = vrot.slane %v4454_v43, 3  ;;  %v4459_v47 = vrot.slane %v4457_v11, 4  ;;  %v9564_v25 = vrot.slane %v2497_v8, 4  ;;  %v10574_v14 = vld [vmem:[#allocation20_spill] sm:$0xff]  ;;  %v9580_v43 = vld [vmem:[#allocation2 + $0x68] sm:$0xff] }
 0x253   : > { %v2093_v1 = vsel %vm924_vm1, %v10574_v14, %v2092_v28  ;;  %v2507_v13 = vrot.slane %v2505_v53, 4  ;;  %v10578_v11 = vld [vmem:[#allocation44_spill] sm:$0xff]  ;;  %v2517_v0 = vshll.u32 %v9576_v10, 16  ;;  %vm10580_vm7 = vcmp.ne.s16.totalorder %v10579_v39, 0 }
 0x254   : > { %v4443_v31 = vsel %vm1842_vm8, %v4433_v27, %v4442_v16  ;;  %v9562_v24 = vor.u32 %v4459_v47, %v4456_v50  ;;  %v2482_v4 = vsel %vm10580_vm7, %v9578_v19, 0  ;;  %v9623_v14 = vld [vmem:[#allocation2 + $0x80] sm:$0xff] }
 0x256   : > { %5187 = vmatmul.mubr.bf16.gmra.mrb[100].mxu1 %v4434_v18  ;;  %v2510_v18 = vrot.slane %v2508_v36, 5  ;;  %v4461_v37 = vsel %vm1842_vm8, %v4451_v12, %v9562_v24  ;;  %v10583_v36 = vld [vmem:[#allocation38_spill] sm:$0xff] }
 0x257   : > { %5194 = vmatprep.mubr.bf16.mxu1 %v9462_v56  ;;  %v2500_v56 = vshll.u32 %v2479_v55, 16  ;;  %v4366_v55 = vsel %vm1818_vm12, %v9557_v35, 0  ;;  %vm10582_vm12 = vcmp.ne.s16.totalorder %v10581_v44, 0  ;;  %vm10584_vm2 = vcmp.ne.s16.totalorder %v10583_v36, 0 }
 0x258   : > { %4146 = vmatmul.mubr.bf16.gmra.mrb[96].mxu0 %v9398_v29  ;;  %v4608_v29 = vrot.slane %v9538_v59, 4  ;;  %v4684_v50 = vsel %vm10582_vm12, %v9580_v43, 0  ;;  %v9615_v47 = vor.u32 %v2510_v18, %v2507_v13  ;;  %v4463_v8 = vshrl.u32 %v4366_v55, 16  ;;  %v9625_v18 = vld [vmem:[#allocation2 + $0x88] sm:$0xff] }
 0x259   : > { %4153 = vmatprep.mubr.bf16.mxu0 %v10571_v42  ;;  %v9566_v20 = vrot.slane %v2500_v56, 5  ;;  %v4792_v53 = vshll.u32 %v4684_v50, 16  ;;  %v4466_v46 = vshll.u32 %v4366_v55, 16 }
 0x25a   : > { %v4609_v27 = vsel %vm924_vm1, %v9469_v2, %v4608_v29  ;;  %v4452_v2 = vsel %vm1842_vm8, %v4442_v16, %v4451_v12  ;;  %v9594_v38 = vsel %vm924_vm1, %v4608_v29, %v10382_v15  ;;  %v9603_v16 = vld [vmem:[#allocation2 + $0x70] sm:$0xff]  ;;  %v4789_v29 = vshrl.u32 %v4684_v50, 16  ;;  %v10585_v12 = vld [vmem:[#allocation39_spill] sm:$0xff] }
 0x25b   : > { %v2503_v26 = vor.u32 %v9566_v20, %v9564_v25  ;;  %vm10586_vm4 = vcmp.ne.s16.totalorder %v10585_v12, 0  ;;  %v2523_v25 = vshrl.u32 %v2482_v4, 16  ;;  %v2526_v20 = vshll.u32 %v2482_v4, 16 }
 0x25c   : > { %v4791_v10 = vrot.slane %v4789_v29, 4 }
 0x25e   : > { %5195 = vmatmul.mubr.bf16.gmra.mrb[104].mxu1 %v4443_v31  ;;  %v4685_v31 = vsel %vm10584_vm2, %v9603_v16, 0 }
 0x25f   : > { %5202 = vmatprep.mubr.bf16.mxu1 %v9484_v7  ;;  %v4683_v7 = vsel %vm10577_vm6, %v9557_v35, 0  ;;  %v4798_v13 = vshrl.u32 %v4685_v31, 16  ;;  %vm10594_vm6 = vmmov %vm10591_vm11 }
 0x260   : > { %4154 = vmatmul.mubr.bf16.gmra.mrb[100].mxu0 %v9413_v23  ;;  %v9589_v23 = vsel %vm1842_vm8, %v9423_v34, %v1993_v30  ;;  %v4780_v34 = vshrl.u32 %v4683_v7, 16  ;;  %v4783_v42 = vshll.u32 %v4683_v7, 16  ;;  %v4686_v30 = vsel %vm10586_vm4, %v9605_v41, 0  ;;  %vm10595_vm7 = vmmov %vm10594_vm6 }
 0x261   : > { %4161 = vmatprep.mubr.bf16.mxu0 %v10578_v11  ;;  %v4794_v7 = vrot.slane %v4792_v53, 5  ;;  %v4801_v11 = vshll.u32 %v4685_v31, 16  ;;  %v4800_v15 = vrot.slane %v4798_v13, 4  ;;  %v10589_v31 = vld [vmem:[#allocation41_spill] sm:$0xff]  ;;  %vm10596_vm12 = vmmov %vm10594_vm6 }
 0x262   : > { %v4782_v56 = vrot.slane %v4780_v34, 4  ;;  %v4785_v28 = vrot.slane %v4783_v42, 5  ;;  %v4807_v34 = vshrl.u32 %v4686_v30, 16  ;;  %v4465_v42 = vrot.slane %v4463_v8, 3  ;;  %vm10599_vm2 = vmmov %vm10594_vm6 }
 0x263   : > { %v4795_v55 = vor.u32 %v4794_v7, %v4791_v10  ;;  %v4803_v4 = vrot.slane %v4801_v11, 5  ;;  %vm10590_vm15 = vcmp.ne.s16.totalorder %v10589_v31, 0  ;;  %v9640_v11 = vld [vmem:[#allocation2 + $0x20] sm:$0xff]  ;;  %vm10600_vm4 = vmmov %vm10599_vm2 }
 0x264   : > { %v9628_v50 = vor.u32 %v4785_v28, %v4782_v56  ;;  %v4809_v32 = vrot.slane %v4807_v34, 4 }
 0x265   : > { %v4804_v56 = vor.u32 %v4803_v4, %v4800_v15  ;;  %v2519_v15 = vrot.slane %v2517_v0, 5 }
 0x266   : > { %5203 = vmatmul.mubr.bf16.gmra.mrb[108].mxu1 %v4452_v2  ;;  %v4810_v2 = vshll.u32 %v4686_v30, 16  ;;  %v9638_v8 = vsel %vm10591_vm11, %v9628_v50, %v4795_v55  ;;  %v4468_v30 = vrot.slane %v4466_v46, 4  ;;  %v2525_v46 = vrot.slane %v2523_v25, 4  ;;  %vm10606_vm11 = vmmov %vm10599_vm2 }
 0x267   : > { %5210 = vmatprep.mubr.bf16.mxu1 %v4609_v27  ;;  %v4687_v27 = vsel %vm10588_vm5, %v9623_v14, 0  ;;  %10592 = vst [vmem:[#allocation32_spill] sm:$0xff] %v9638_v8  ;;  %v2516_v8 = vrot.slane %v2514_v22, 4  ;;  %vm10603_vm5 = vmmov %vm10599_vm2 }
 0x268   : > { %4162 = vmatmul.mubr.bf16.gmra.mrb[104].mxu0 %v9430_v21  ;;  %v4812_v5 = vrot.slane %v4810_v2, 5  ;;  %v4816_v29 = vshrl.u32 %v4687_v27, 16  ;;  %v4819_v53 = vshll.u32 %v4687_v27, 16  ;;  %v4688_v21 = vsel %vm10590_vm15, %v9625_v18, 0  ;;  %vm10604_vm15 = vmmov %vm10599_vm2 }
 0x269   : > { %4169 = vmatprep.mubr.bf16.mxu0 %v2093_v1  ;;  %v4825_v1 = vshrl.u32 %v4688_v21, 16  ;;  %v4828_v28 = vshll.u32 %v4688_v21, 16  ;;  %v4367_v2 = vsel %vm1819_vm9, %v9580_v43, 0  ;;  %v9646_v27 = vsel %vm10594_vm6, %v4795_v55, %v4804_v56  ;;  %v10597_v55 = vld [vmem:[#allocation27_spill] sm:$0xff] }
 0x26a   : > { %v4813_v13 = vor.u32 %v4812_v5, %v4809_v32  ;;  %v4818_v10 = vrot.slane %v4816_v29, 4  ;;  %v4821_v7 = vrot.slane %v4819_v53, 5  ;;  %v2512_v32 = vsel %vm10596_vm12, %v2503_v26, %v9615_v47  ;;  %vm10613_vm12 = vmmov %vm10599_vm2 }
 0x26b   : > { %v4827_v58 = vrot.slane %v4825_v1, 4  ;;  %v4830_v61 = vrot.slane %v4828_v28, 5  ;;  %v2528_v29 = vrot.slane %v2526_v20, 5  ;;  %vm10598_vm9 = vcmp.ne.s16.totalorder %v10597_v55, 0 }
 0x26c   : > { %v9649_v4 = vsel %vm10595_vm7, %v4804_v56, %v4813_v13  ;;  %v4822_v5 = vor.u32 %v4821_v7, %v4818_v10  ;;  %v4472_v22 = vshrl.u32 %v4367_v2, 16  ;;  %v4475_v0 = vshll.u32 %v4367_v2, 16  ;;  %vm10611_vm7 = vmmov %vm10599_vm2 }
 0x26d   : > { %v9654_v53 = vor.u32 %v4830_v61, %v4827_v58  ;;  %v4469_v56 = vor.u32 %v4468_v30, %v4465_v42  ;;  %v4612_v61 = vrot.slane %v9580_v43, 4  ;;  %v2520_v58 = vor.u32 %v2519_v15, %v2516_v8  ;;  %v7747_v30 = vld [vmem:[#allocation9 + $0x208] sm:$0xff]  }
 0x26e   : > { %5211 = vmatmul.mubr.bf16.gmra.mrb[112].mxu1 %v4461_v37  ;;  %v2483_v37 = vsel %vm10598_vm9, %v9640_v11, 0  ;;  %v9661_v21 = vsel %vm10599_vm2, %v4813_v13, %v4822_v5  ;;  %v2529_v25 = vor.u32 %v2528_v29, %v2525_v46  ;;  %v4474_v20 = vrot.slane %v4472_v22, 3  ;;  %v7748_v22 = vld [vmem:[#allocation9 + $0x210] sm:$0xff]   ;;  %vm10614_vm9 = vmmov %vm10599_vm2 }
 0x26f   : > { %5218 = vmatprep.mubr.bf16.mxu1 %v9594_v38  ;;  %v9665_v38 = vsel %vm10600_vm4, %v4822_v5, %v9654_v53  ;;  %v2532_v26 = vshrl.u32 %v2483_v37, 16  ;;  %v4477_v1 = vrot.slane %v4475_v0, 4  ;;  %v4470_v28 = vsel %vm1842_vm8, %v9562_v24, %v4469_v56 }
 0x270   : > { %4170 = vmatmul.mubr.bf16.gmra.mrb[108].mxu0 %v9589_v23  ;;  %v2535_v23 = vshll.u32 %v2483_v37, 16  ;;  %v10601_v13 = vrot.slane %v9557_v35, 4  ;;  %v4368_v7 = vsel %vm1820_vm13, %v9603_v16, 0  ;;  %v2521_v8 = vsel %vm10603_vm5, %v9615_v47, %v2520_v58  ;;  %vm10605_vm13 = vmmov %vm10599_vm2 }
 0x271   : > { %7271 = vmatprep.mubr.bf16.mxu0 %v2512_v32  ;;  %v2534_v34 = vrot.slane %v2532_v26, 4  ;;  %v2530_v15 = vsel %vm10604_vm15, %v2520_v58, %v2529_v25  ;;  %v4478_v24 = vor.u32 %v4477_v1, %v4474_v20  ;;  %v4481_v32 = vshrl.u32 %v4368_v7, 16  ;;  %vm10619_vm15 = vmmov %vm10603_vm5 }
 0x272   : > { %v4613_v42 = vsel %vm924_vm1, %v10601_v13, %v4612_v61  ;;  %v2537_v2 = vrot.slane %v2535_v23, 5  ;;  %v6743_v5 = vpop.f32.mrb[16].mxu1  ;;  %v4484_v46 = vshll.u32 %v4368_v7, 16  ;;  %v4614_v29 = vrot.slane %v9603_v16, 4 }
 0x273   : > { %v6744_v37 = vpop.f32.mrb[17].mxu1  ;;  %v4479_v23 = vsel %vm1842_vm8, %v4469_v56, %v4478_v24  ;;  %v4369_v1 = vsel %vm1821_vm0, %v9605_v41, 0  ;;  %vm10607_vm0 = vcmp.ne.s16.totalorder %v10581_v44, 0  ;;  %v4371_v44 = vsel %vm1823_vm14, %v9625_v18, 0 }
 0x274   : > { %v2538_v0 = vor.u32 %v2537_v2, %v2534_v34  ;;  %v9681_v47 = vadd.f32 %v6744_v37, %v6743_v5  ;;  %v6746_v26 = vpop.f32.mrb[18].mxu1  ;;  %v4486_v20 = vrot.slane %v4484_v46, 4  ;;  %v4615_v13 = vsel %vm924_vm1, %v4612_v61, %v4614_v29  ;;  %v7750_v34 = vld [vmem:[#allocation9 + $0x220] sm:$0xff]   ;;  %v7751_v5 = vld [vmem:[#allocation9 + $0x228] sm:$0xff]  }
 0x275   : > { %v4493_v7 = vshll.u32 %v4369_v1, 16  ;;  %v2490_v49 = vsel %vm10607_vm0, %v9538_v59, 0  ;;  %vm10609_vm14 = vcmp.ne.s16.totalorder %v10585_v12, 0  ;;  %vm10610_vm6 = vcmp.ne.s16.totalorder %v10587_v63, 0  ;;  %vm10623_vm0 = vmmov %vm10603_vm5 }
 0x276   : > { %5219 = vmatmul.mubr.bf16.gmra.mrb[116].mxu1 %v4470_v28  ;;  %v6747_v28 = vpop.f32.mrb[19].mxu1  ;;  %v2539_v10 = vsel %vm10605_vm13, %v2529_v25, %v2538_v0  ;;  %v2548_v56 = vsel %vm10606_vm11, %v2538_v0, %v9475_v57  ;;  %v4617_v25 = vsel %vm924_vm1, %v4614_v29, %v4616_v33  ;;  %v4370_v57 = vsel %vm1822_vm10, %v9623_v14, 0  ;;  %vm10622_vm11 = vmmov %vm10603_vm5 }
 0x277   : > { %5226 = vmatprep.mubr.bf16.mxu1 %v4613_v42  ;;  %v9684_v58 = vadd.f32 %v6747_v28, %v6746_v26  ;;  %v7749_v42 = vld [vmem:[#allocation9 + $0x218] sm:$0xff]   ;;  %v4495_v61 = vrot.slane %v4493_v7, 4  ;;  %v4499_v0 = vshrl.u32 %v4370_v57, 16  ;;  %v4502_v26 = vshll.u32 %v4370_v57, 16  ;;  %v7752_v28 = vld [vmem:[#allocation9 + $0x230] sm:$0xff]  }
 0x278   : > { %7272 = vmatmul.mubr.bf16.vlgmr.msra.gmra.mrb[16].mxu0 %v2521_v8  ;;  %vm10608_vm10 = vcmp.ne.s16.totalorder %v10583_v36, 0  ;;  %v2492_v45 = vsel %vm10609_vm14, %v9580_v43, 0  ;;  %vm10618_vm4 = vcmp.ne.s16.totalorder %v10569_v62, 0  ;;  %vm10620_vm13 = vcmp.ne.s16.totalorder %v10575_v6, 0 }
 0x279   : > { %7304 = vmatpush3.bf16.msra.mxu0 %v9366_v3  ;;  %7275 = vmatprep.mubr.bf16.mxu0 %v2530_v15  ;;  %v4483_v3 = vrot.slane %v4481_v32, 3 }
 0x27a   : > { %7305 = vmatprep.subr.bf16.mxu0 %v7747_v30 }
 0x27b   : > { %v4487_v8 = vor.u32 %v4486_v20, %v4483_v3  ;;  %v2595_v3 = vshrl.u32 %v2490_v49, 16  ;;  %v2598_v20 = vshll.u32 %v2490_v49, 16 }
 0x27d   : > { %7306 = vmatpush3.bf16.msra.mxu0 %v7747_v30  ;;  %v4490_v30 = vshrl.u32 %v4369_v1, 16  ;;  %v4488_v15 = vsel %vm1842_vm8, %v4478_v24, %v4487_v8  ;;  %v4501_v1 = vrot.slane %v4499_v0, 3 }
 0x27e   : > { %5227 = vmatmul.mubr.bf16.gmra.mrb[120].mxu1 %v4479_v23  ;;  %7307 = vmatprep.subr.bf16.mxu0 %v7748_v22  ;;  %v4618_v23 = vrot.slane %v9623_v14, 4  ;;  %v7753_v14 = vld [vmem:[#allocation9 + $0x238] sm:$0xff]  }
 0x27f   : > { %5234 = vmatprep.mubr.bf16.mxu1 %v4615_v13  ;;  %v4492_v2 = vrot.slane %v4490_v30, 3  ;;  %v4504_v13 = vrot.slane %v4502_v26, 4  ;;  %v2491_v30 = vsel %vm10608_vm10, %v9557_v35, 0  ;;  %vm10624_vm10 = vcmp.ne.s16.totalorder %v10597_v55, 0  ;;  %v4662_v55 = vld [vmem:[#allocation2 + $0x40] sm:$0xff] }
 0x280   : > { %7276 = vmatmul.mubr.bf16.gmra.mrb[20].mxu0 %v2539_v10  ;;  %v2597_v10 = vrot.slane %v2595_v3, 4  ;;  %v2604_v36 = vshrl.u32 %v2491_v30, 16  ;;  %v2607_v35 = vshll.u32 %v2491_v30, 16 }
 0x281   : > { %7279 = vmatprep.mubr.bf16.mxu0 %v2548_v56  ;;  %7308 = vmatpush3.bf16.msra.mxu0 %v7748_v22  ;;  %v4496_v37 = vor.u32 %v4495_v61, %v4492_v2  ;;  %v2600_v56 = vrot.slane %v2598_v20, 5 }
 0x282   : > { %7309 = vmatprep.subr.bf16.mxu0 %v7749_v42  ;;  %v6749_v32 = vpop.f32.mrb[20].mxu1  ;;  %v2606_v26 = vrot.slane %v2604_v36, 4  ;;  %v2609_v49 = vrot.slane %v2607_v35, 5 }
 0x283   : > { %v6750_v46 = vpop.f32.mrb[21].mxu1  ;;  %v2601_v57 = vor.u32 %v2600_v56, %v2597_v10 }
 0x284   : > { %v9701_v22 = vadd.f32 %v6750_v46, %v6749_v32  ;;  %v6752_v24 = vpop.f32.mrb[22].mxu1  ;;  %v2616_v32 = vshll.u32 %v2492_v45, 16 }
 0x285   : > { %7310 = vmatpush3.bf16.msra.mxu0 %v7749_v42  ;;  %v6753_v29 = vpop.f32.mrb[23].mxu1  ;;  %v4619_v42 = vsel %vm924_vm1, %v4616_v33, %v4618_v23  ;;  %v4508_v33 = vshrl.u32 %v4371_v44, 16 }
 0x286   : > { %5235 = vmatmul.mubr.bf16.gmra.mrb[124].mxu1 %v4488_v15  ;;  %7311 = vmatprep.subr.bf16.mxu0 %v7750_v34  ;;  %v2618_v20 = vrot.slane %v2616_v32, 5 }
 0x287   : > { %5242 = vmatprep.mubr.bf16.mxu1 %v4617_v25  ;;  %v4355_v25 = vld [vmem:[#allocation2 + $0x90] sm:$0xf]  ;;  %v4510_v43 = vrot.slane %v4508_v33, 3 }
 0x288   : > { %7280 = vmatmul.mubr.bf16.gmra.mrb[24].mxu0 %v9495_v54  ;;  %v9707_v54 = vadd.f32 %v6753_v29, %v6752_v24  ;;  %v4372_v0 = vsel %vm1824_vm3, %v4355_v25, 0  ;;  %v4573_v29 = vld [vmem:[#allocation2 + $0x90] sm:$0xf]  ;;  %vm10612_vm3 = vcmp.ne.s16.totalorder %v10589_v31, 0 }
 0x289   : > { %7283 = vmatprep.mubr.bf16.mxu0 %v9502_v48  ;;  %7312 = vmatpush3.bf16.msra.mxu0 %v7750_v34  ;;  %v4497_v48 = vsel %vm1842_vm8, %v4487_v8, %v4496_v37  ;;  %v4505_v8 = vor.u32 %v4504_v13, %v4501_v1  ;;  %v4511_v34 = vshll.u32 %v4371_v44, 16  ;;  %v4517_v60 = vshrl.u32 %v4372_v0, 16 }
 0x28a   : > { %7313 = vmatprep.subr.bf16.mxu0 %v7751_v5  ;;  %v4520_v1 = vshll.u32 %v4372_v0, 16  ;;  %v2494_v13 = vsel %vm10612_vm3, %v9605_v41, 0  ;;  %v4622_v63 = vrot.slane %v4573_v29, 4 }
 0x28b   : > { %v4506_v12 = vsel %vm1842_vm8, %v4496_v37, %v4505_v8  ;;  %v4513_v24 = vrot.slane %v4511_v34, 4  ;;  %v2602_v37 = vsel %vm10611_vm7, %v9518_v17, %v2601_v57  ;;  %v2610_v17 = vor.u32 %v2609_v49, %v2606_v26  ;;  %vm10628_vm7 = vmmov %vm10623_vm0 }
 0x28c   : > { %v2634_v33 = vshll.u32 %v2494_v13, 16  ;;  %v4519_v41 = vrot.slane %v4517_v60, 3 }
 0x28d   : > { %7314 = vmatpush3.bf16.msra.mxu0 %v7751_v5  ;;  %v6755_v7 = vpop.f32.mrb[24].mxu1  ;;  %v2613_v5 = vshrl.u32 %v2492_v45, 16  ;;  %v4522_v45 = vrot.slane %v4520_v1, 4  ;;  %v2611_v25 = vsel %vm10613_vm12, %v2601_v57, %v2610_v17 }
 0x28e   : > { %5243 = vmatmul.mubr.bf16.gmra.mrb[128].mxu1 %v4497_v48  ;;  %7315 = vmatprep.subr.bf16.mxu0 %v7752_v28  ;;  %v6756_v2 = vpop.f32.mrb[25].mxu1  ;;  %v4514_v48 = vor.u32 %v4513_v24, %v4510_v43  ;;  %v2636_v32 = vrot.slane %v2634_v33, 5 }
 0x28f   : > { %5250 = vmatprep.mubr.bf16.mxu1 %v4619_v42  ;;  %v9723_v61 = vadd.f32 %v6756_v2, %v6755_v7  ;;  %v6758_v15 = vpop.f32.mrb[26].mxu1  ;;  %v2615_v3 = vrot.slane %v2613_v5, 4  ;;  %v7754_v42 = vld [vmem:[#allocation10] sm:$0xff]   ;;  %v2631_v7 = vshrl.u32 %v2494_v13, 16  ;;  %v2142_v2 = vld [vmem:[#allocation2 + $0x80] sm:$0x1f] }
 0x290   : > { %7284 = vmatmul.mubr.bf16.gmra.mrb[28].mxu0 %v9513_v40  ;;  %v4620_v40 = vrot.slane %v9625_v18, 4  ;;  %7351 = vmatprep.subr.bf16.mxu1 %v7754_v42  ;;  %v4515_v31 = vsel %vm1842_vm8, %v4505_v8, %v4514_v48  ;;  %v4656_v8 = vld [vmem:[#allocation2 + $0x10] sm:$0xf0] }
 0x291   : > { %7287 = vmatprep.mubr.bf16.mxu0 %v9516_v51  ;;  %7316 = vmatpush3.bf16.msra.mxu0 %v7752_v28  ;;  %v6759_v51 = vpop.f32.mrb[27].mxu1  ;;  %v2493_v28 = vsel %vm10610_vm6, %v9603_v16, 0  ;;  %v2619_v30 = vor.u32 %v2618_v20, %v2615_v3  ;;  %v2633_v5 = vrot.slane %v2631_v7, 4  ;;  %v7755_v7 = vld [vmem:[#allocation10 + $0x8] sm:$0xff]   ;;  %vm10627_vm6 = vmmov %vm10623_vm0 }
 0x292   : > { %7317 = vmatprep.subr.bf16.mxu0 %v7753_v14  ;;  %v9725_v46 = vadd.f32 %v6759_v51, %v6758_v15  ;;  %v4621_v18 = vsel %vm924_vm1, %v4618_v23, %v4620_v40  ;;  %v2622_v16 = vshrl.u32 %v2493_v28, 16  ;;  %7352 = vmatpush3.bf16.msra.mxu1 %v7754_v42  ;;  %v4623_v15 = vsel %vm924_vm1, %v4620_v40, %v4622_v63  ;;  %v4659_v42 = vld [vmem:[#allocation2 + $0x28] sm:$0xff] }
 0x293   : > { %v2620_v51 = vsel %vm10614_vm9, %v2610_v17, %v2619_v30  ;;  %vm10617_vm1 = vcmp.ne.s16.totalorder %v10572_v52, 0  ;;  %v2637_v20 = vor.u32 %v2636_v32, %v2633_v5  ;;  %v4675_v17 = vsel %vm10620_vm13, %v9640_v11, 0  ;;  %7353 = vmatprep.subr.bf16.mxu1 %v7755_v7  ;;  %v4661_v32 = vld [vmem:[#allocation2 + $0x38] sm:$0xff]  ;;  %vm10633_vm9 = vmmov %vm10623_vm0 }
 0x294   : > { %v2624_v36 = vrot.slane %v2622_v16, 4  ;;  %v4674_v40 = vsel %vm10617_vm1, %v9578_v19, 0  ;;  %vm10641_vm13 = vmmov %vm10623_vm0 }
 0x295   : > { %7318 = vmatpush3.bf16.msra.mxu0 %v7753_v14  ;;  %v6761_v23 = vpop.f32.mrb[28].mxu1  ;;  %v2625_v14 = vshll.u32 %v2493_v28, 16  ;;  %v4702_v60 = vshll.u32 %v4674_v40, 16 }
 0x296   : > { %5251 = vmatmul.mubr.bf16.gmra.mrb[132].mxu1 %v4506_v12  ;;  %v6762_v44 = vpop.f32.mrb[29].mxu1  ;;  %v10615_v12 = vld [vmem:[#allocation31_spill] sm:$0xff] }
 0x297   : > { %5258 = vmatprep.mubr.bf16.mxu1 %v4621_v18  ;;  %v6764_v10 = vpop.f32.mrb[30].mxu1  ;;  %v2627_v35 = vrot.slane %v2625_v14, 5  ;;  %vm10616_vm2 = vcmp.ne.s16.totalorder %v10615_v12, 0  ;;  %v4523_v18 = vor.u32 %v4522_v45, %v4519_v41  ;;  %7354 = vmatpush3.bf16.msra.mxu1 %v7755_v7  ;;  %v10629_v7 = vld [vmem:[#allocation29_spill] sm:$0xff] }
 0x298   : > { %7288 = vmatmul.mubr.bf16.gmra.mrb[32].mxu0 %v9523_v9  ;;  %v9740_v9 = vadd.f32 %v6762_v44, %v6761_v23  ;;  %v6765_v56 = vpop.f32.mrb[31].mxu1  ;;  %v2495_v43 = vsel %vm10616_vm2, %v2142_v2, 0  ;;  %v4699_v23 = vshrl.u32 %v4674_v40, 16  ;;  %vm10630_vm3 = vcmp.ne.s16.totalorder %v10629_v7, 0  ;;  %vm10634_vm2 = vmmov %vm10623_vm0 }
 0x299   : > { %7291 = vmatprep.mubr.bf16.mxu0 %v2602_v37  ;;  %v9742_v34 = vadd.f32 %v6765_v56, %v6764_v10  ;;  %v2628_v26 = vor.u32 %v2627_v35, %v2624_v36  ;;  %v2640_v29 = vshrl.u32 %v2495_v43, 16  ;;  %v2643_v28 = vshll.u32 %v2495_v43, 16 }
 0x29a   : > { %v4673_v37 = vsel %vm10618_vm4, %v4656_v8, 0  ;;  %v4524_v13 = vsel %vm1842_vm8, %v4514_v48, %v4523_v18  ;;  %v4701_v14 = vrot.slane %v4699_v23, 4  ;;  %v4704_v10 = vrot.slane %v4702_v60, 5 }
 0x29b   : > { %v4691_v52 = vshrl.u32 %v4673_v37, 16  ;;  %v4694_v19 = vshll.u32 %v4673_v37, 16  ;;  %v2629_v44 = vsel %vm10603_vm5, %v2619_v30, %v2628_v26  ;;  %v2642_v63 = vrot.slane %v2640_v29, 4  ;;  %v10625_v29 = vld [vmem:[#allocation28_spill] sm:$0xff]  ;;  %vm10639_vm5 = vmmov %vm10623_vm0 }
 0x29c   : > { %v2645_v16 = vrot.slane %v2643_v28, 5  ;;  %v2638_v62 = vsel %vm10619_vm15, %v2628_v26, %v2637_v20  ;;  %vm10621_vm8 = vcmp.ne.s16.totalorder %v10579_v39, 0  ;;  %v4711_v36 = vshll.u32 %v4675_v17, 16  ;;  %v4660_v39 = vld [vmem:[#allocation2 + $0x30] sm:$0xff]  ;;  %vm10640_vm15 = vmmov %vm10623_vm0 }
 0x29d   : > { %v4676_v48 = vsel %vm10621_vm8, %v4659_v42, 0  ;;  %v4696_v30 = vrot.slane %v4694_v19, 5  ;;  %v4677_v26 = vsel %vm10624_vm10, %v4660_v39, 0  ;;  %vm10626_vm14 = vcmp.ne.s16.totalorder %v10625_v29, 0  ;;  %vm10642_vm8 = vmmov %vm10623_vm0 }
 0x29e   : > { %5259 = vmatmul.mubr.bf16.gmra.mrb[136].mxu1 %v4515_v31  ;;  %v4693_v31 = vrot.slane %v4691_v52, 4  ;;  %v2646_v2 = vor.u32 %v2645_v16, %v2642_v63  ;;  %v4717_v6 = vshrl.u32 %v4676_v48, 16  ;;  %v4720_v11 = vshll.u32 %v4676_v48, 16  ;;  %v4663_v16 = vld [vmem:[#allocation2 + $0x48] sm:$0xff]  ;;  %vm10646_vm10 = vmmov %vm10634_vm2 }
 0x29f   : > { %5266 = vmatprep.mubr.bf16.mxu1 %v4623_v15  ;;  %v4708_v15 = vshrl.u32 %v4675_v17, 16  ;;  %v4678_v28 = vsel %vm10626_vm14, %v4661_v32, 0  ;;  %v4726_v60 = vshrl.u32 %v4677_v26, 16 }
 0x2a0   : > { %7292 = vmatmul.mubr.bf16.gmra.mrb[36].mxu0 %v2611_v25  ;;  %v6767_v24 = vpop.f32.mrb[32].mxu1  ;;  %v4705_v25 = vor.u32 %v4704_v10, %v4701_v14  ;;  %v4697_v5 = vor.u32 %v4696_v30, %v4693_v31  ;;  %v2647_v43 = vsel %vm10622_vm11, %v2637_v20, %v2646_v2  ;;  %v4719_v40 = vrot.slane %v4717_v6, 4  ;;  %v10631_v30 = vld [vmem:[#allocation30_spill] sm:$0xff]  ;;  %v7756_v2 = vld [vmem:[#allocation10 + $0x10] sm:$0xff]   ;;  %vm10643_vm11 = vmmov %vm10623_vm0 }
 0x2a1   : > { %7295 = vmatprep.mubr.bf16.mxu0 %v2620_v51  ;;  %v6768_v0 = vpop.f32.mrb[33].mxu1  ;;  %v4710_v8 = vrot.slane %v4708_v15, 4  ;;  %v4735_v42 = vshrl.u32 %v4678_v28, 16  ;;  %v4728_v14 = vrot.slane %v4726_v60, 4  ;;  %vm10632_vm12 = vcmp.ne.s16.totalorder %v10631_v30, 0  ;;  %7355 = vmatprep.subr.bf16.mxu1 %v7756_v2 }
 0x2a2   : > { %v9753_v57 = vadd.f32 %v6768_v0, %v6767_v24  ;;  %v6770_v49 = vpop.f32.mrb[34].mxu1  ;;  %v4713_v24 = vrot.slane %v4711_v36, 5  ;;  %v4706_v18 = vsel %vm10623_vm0, %v4697_v5, %v4705_v25  ;;  %v4722_v0 = vrot.slane %v4720_v11, 5  ;;  %7356 = vmatpush3.bf16.msra.mxu1 %v7756_v2 }
 0x2a3   : > { %v6771_v3 = vpop.f32.mrb[35].mxu1  ;;  %vm10645_vm0 = vcmp.ne.s16.totalorder %v10615_v12, 0  ;;  %v7759_v12 = vld [vmem:[#allocation10 + $0x28] sm:$0xff]  }
 0x2a4   : > { %v9757_v1 = vadd.f32 %v6771_v3, %v6770_v49  ;;  %v4714_v20 = vor.u32 %v4713_v24, %v4710_v8  ;;  %v4723_v19 = vor.u32 %v4722_v0, %v4719_v40  ;;  %v4664_v24 = vld [vmem:[#allocation2 + $0x50] sm:$0xff] }
 0x2a6   : > { %5267 = vmatmul.mubr.bf16.gmra.mrb[140].mxu1 %v4524_v13  ;;  %v4729_v13 = vshll.u32 %v4677_v26, 16  ;;  %v4724_v17 = vsel %vm10628_vm7, %v4714_v20, %v4723_v19 }
 0x2a8   : > { %7296 = vmatmul.mubr.bf16.gmra.mrb[40].mxu0 %v2629_v44  ;;  %v4738_v44 = vshll.u32 %v4678_v28, 16  ;;  %v4731_v10 = vrot.slane %v4729_v13, 5  ;;  %v10635_v28 = vld [vmem:[#allocation33_spill] sm:$0xff] }
 0x2a9   : > { %7299 = vmatprep.mubr.bf16.mxu0 %v2638_v62  ;;  %v6773_v56 = vpop.f32.mrb[36].mxu1  ;;  %v4715_v62 = vsel %vm10627_vm6, %v4705_v25, %v4714_v20  ;;  %vm10636_vm1 = vcmp.ne.s16.totalorder %v10635_v28, 0  ;;  %v10637_v20 = vld [vmem:[#allocation34_spill] sm:$0xff] }
 0x2aa   : > { %v6774_v33 = vpop.f32.mrb[37].mxu1  ;;  %v4740_v48 = vrot.slane %v4738_v44, 5  ;;  %v4732_v25 = vor.u32 %v4731_v10, %v4728_v14  ;;  %vm10638_vm4 = vcmp.ne.s16.totalorder %v10637_v20, 0 }
 0x2ab   : > { %v9767_v41 = vadd.f32 %v6774_v33, %v6773_v56  ;;  %v6776_v45 = vpop.f32.mrb[38].mxu1  ;;  %v4737_v56 = vrot.slane %v4735_v42, 4  ;;  %v4679_v33 = vsel %vm10630_vm3, %v4662_v55, 0  ;;  %v4682_v60 = vsel %vm10638_vm4, %v9538_v59, 0 }
 0x2ac   : > { %v6777_v35 = vpop.f32.mrb[39].mxu1  ;;  %v4744_v6 = vshrl.u32 %v4679_v33, 16  ;;  %v4747_v11 = vshll.u32 %v4679_v33, 16  ;;  %v4771_v14 = vshrl.u32 %v4682_v60, 16  ;;  %v4774_v10 = vshll.u32 %v4682_v60, 16 }
 0x2ad   : > { %v9769_v51 = vadd.f32 %v6777_v35, %v6776_v45  ;;  %v4680_v45 = vsel %vm10632_vm12, %v4663_v16, 0  ;;  %v4741_v5 = vor.u32 %v4740_v48, %v4737_v56 }
 0x2ae   : > { %v4753_v32 = vshrl.u32 %v4680_v45, 16  ;;  %v4746_v40 = vrot.slane %v4744_v6, 4  ;;  %v4749_v0 = vrot.slane %v4747_v11, 5  ;;  %v4773_v33 = vrot.slane %v4771_v14, 4 }
 0x2af   : > { %v4742_v26 = vsel %vm10634_vm2, %v4732_v25, %v4741_v5 }
 0x2b0   : > { %7300 = vmatmul.mubr.bf16.gmra.mrb[44].mxu0 %v2647_v43  ;;  %v4756_v43 = vshll.u32 %v4680_v45, 16  ;;  %v4750_v42 = vor.u32 %v4749_v0, %v4746_v40  ;;  %v7757_v45 = vld [vmem:[#allocation10 + $0x18] sm:$0xff]  }
 0x2b1   : > { %7319 = vmatprep.mubr.bf16.mxu0 %v4706_v18  ;;  %v6779_v49 = vpop.f32.mrb[40].mxu1  ;;  %v4733_v18 = vsel %vm10633_vm9, %v4723_v19, %v4732_v25  ;;  %7357 = vmatprep.subr.bf16.mxu1 %v7757_v45 }
 0x2b2   : > { %v6780_v37 = vpop.f32.mrb[41].mxu1  ;;  %v4758_v29 = vrot.slane %v4756_v43, 5  ;;  %v4751_v56 = vsel %vm10639_vm5, %v4741_v5, %v4750_v42  ;;  %7358 = vmatpush3.bf16.msra.mxu1 %v7757_v45 }
 0x2b3   : > { %v9777_v3 = vadd.f32 %v6780_v37, %v6779_v49  ;;  %v6782_v23 = vpop.f32.mrb[42].mxu1  ;;  %v4755_v49 = vrot.slane %v4753_v32, 4  ;;  %v4681_v37 = vsel %vm10636_vm1, %v4664_v24, 0 }
 0x2b4   : > { %v6783_v52 = vpop.f32.mrb[43].mxu1  ;;  %v4762_v44 = vshrl.u32 %v4681_v37, 16  ;;  %v4765_v55 = vshll.u32 %v4681_v37, 16 }
 0x2b5   : > { %v9779_v63 = vadd.f32 %v6783_v52, %v6782_v23 }
 0x2b6   : > { %v4764_v48 = vrot.slane %v4762_v44, 4  ;;  %v4767_v7 = vrot.slane %v4765_v55, 5  ;;  %v7758_v55 = vld [vmem:[#allocation10 + $0x20] sm:$0xff]  }
 0x2b7   : > { %7359 = vmatprep.subr.bf16.mxu1 %v7758_v55 }
 0x2b8   : > { %7320 = vmatmul.mubr.bf16.vlgmr.msra.gmra.mrb[16].mxu0 %v4715_v62  ;;  %v4759_v62 = vor.u32 %v4758_v29, %v4755_v49  ;;  %v4768_v6 = vor.u32 %v4767_v7, %v4764_v48  ;;  %7360 = vmatpush3.bf16.msra.mxu1 %v7758_v55 }
 0x2b9   : > { %7323 = vmatprep.mubr.bf16.mxu0 %v4724_v17  ;;  %v6785_v31 = vpop.f32.mrb[44].mxu1  ;;  %7361 = vmatprep.subr.bf16.mxu1 %v7759_v12 }
 0x2ba   : > { %v6786_v15 = vpop.f32.mrb[45].mxu1  ;;  %v4760_v59 = vsel %vm10640_vm15, %v4750_v42, %v4759_v62 }
 0x2bb   : > { %v9787_v36 = vadd.f32 %v6786_v15, %v6785_v31  ;;  %v6788_v35 = vpop.f32.mrb[46].mxu1  ;;  %v4776_v31 = vrot.slane %v4774_v10, 5 }
 0x2bc   : > { %v6789_v39 = vpop.f32.mrb[47].mxu1  ;;  %7362 = vmatpush3.bf16.msra.mxu1 %v7759_v12 }
 0x2bd   : > { %v9789_v8 = vadd.f32 %v6789_v39, %v6788_v35  ;;  %v4777_v5 = vor.u32 %v4776_v31, %v4773_v33 }
 0x2bf   : > { %v4778_v49 = vsel %vm10642_vm8, %v4768_v6, %v4777_v5  ;;  %v4787_v14 = vsel %vm10643_vm11, %v4777_v5, %v9628_v50  ;;  %v4672_v50 = vld [vmem:[#allocation2 + $0x90] sm:$0x1f] }
 0x2c0   : > { %7324 = vmatmul.mubr.bf16.gmra.mrb[20].mxu0 %v4733_v18 }
 0x2c1   : > { %7327 = vmatprep.mubr.bf16.mxu0 %v4742_v26  ;;  %v6791_v23 = vpop.f32.mrb[48].mxu1  ;;  %v4769_v26 = vsel %vm10641_vm13, %v4759_v62, %v4768_v6 }
 0x2c2   : > { %v6792_v13 = vpop.f32.mrb[49].mxu1 }
 0x2c3   : > { %v9798_v52 = vadd.f32 %v6792_v13, %v6791_v23  ;;  %v6794_v19 = vpop.f32.mrb[50].mxu1 }
 0x2c4   : > { %v6795_v16 = vpop.f32.mrb[51].mxu1 }
 0x2c5   : > { %v9800_v17 = vadd.f32 %v6795_v16, %v6794_v19 }
 0x2c8   : > { %7328 = vmatmul.mubr.bf16.gmra.mrb[24].mxu0 %v4751_v56  ;;  %v10644_v56 = vld [vmem:[#allocation32_spill] sm:$0xff] }
 0x2c9   : > { %7331 = vmatprep.mubr.bf16.mxu0 %v4760_v59  ;;  %v6797_v30 = vpop.f32.mrb[52].mxu1 }
 0x2ca   : > { %v6798_v2 = vpop.f32.mrb[53].mxu1 }
 0x2cb   : > { %v6879_v15 = vpop.f32.mrb[48].mxu0  ;;  %v9804_v35 = vadd.f32 %v6798_v2, %v6797_v30  ;;  %v6800_v25 = vpop.f32.mrb[54].mxu1 }
 0x2cc   : > { %v6880_v11 = vpop.f32.mrb[49].mxu0  ;;  %v6801_v39 = vpop.f32.mrb[55].mxu1 }
 0x2cd   : > { %v6881_v32 = vadd.f32 %v6880_v11, %v6879_v15  ;;  %v6882_v43 = vpop.f32.mrb[50].mxu0  ;;  %v9806_v24 = vadd.f32 %v6801_v39, %v6800_v25  ;;  %v4689_v11 = vsel %vm10645_vm0, %v4672_v50, 0 }
 0x2ce   : > { %v6883_v18 = vpop.f32.mrb[51].mxu0 }
 0x2cf   : > { %v9809_v40 = vadd.f32 %v6881_v32, %v9681_v47  ;;  %v6884_v0 = vadd.f32 %v6883_v18, %v6882_v43 }
 0x2d0   : > { %7332 = vmatmul.mubr.bf16.gmra.mrb[28].mxu0 %v4769_v26  ;;  %v4834_v26 = vshrl.u32 %v4689_v11, 16 }
 0x2d1   : > { %v9814_v29 = vadd.f32 %v6884_v0, %v9684_v58  ;;  %7335 = vmatprep.mubr.bf16.mxu0 %v4778_v49  ;;  %v6803_v28 = vpop.f32.mrb[56].mxu1 }
 0x2d2   : > { %v6804_v37 = vpop.f32.mrb[57].mxu1 }
 0x2d3   : > { %v6885_v23 = vpop.f32.mrb[52].mxu0  ;;  %v9816_v20 = vadd.f32 %v6804_v37, %v6803_v28  ;;  %v6806_v60 = vpop.f32.mrb[58].mxu1 }
 0x2d4   : > { %v6886_v13 = vpop.f32.mrb[53].mxu0  ;;  %v6807_v19 = vpop.f32.mrb[59].mxu1 }
 0x2d5   : > { %v6887_v47 = vadd.f32 %v6886_v13, %v6885_v23  ;;  %v6888_v42 = vpop.f32.mrb[54].mxu0  ;;  %v9818_v44 = vadd.f32 %v6807_v19, %v6806_v60  ;;  %v4836_v13 = vrot.slane %v4834_v26, 4 }
 0x2d6   : > { %v6889_v16 = vpop.f32.mrb[55].mxu0 }
 0x2d7   : > { %v9821_v62 = vadd.f32 %v6887_v47, %v9701_v22  ;;  %v6890_v58 = vadd.f32 %v6889_v16, %v6888_v42 }
 0x2d8   : > { %7336 = vmatmul.mubr.bf16.gmra.mrb[32].mxu0 %v4787_v14 }
 0x2d9   : > { %v9826_v10 = vadd.f32 %v6890_v58, %v9707_v54  ;;  %7339 = vmatprep.mubr.bf16.mxu0 %v10644_v56  ;;  %v6809_v48 = vpop.f32.mrb[60].mxu1 }
 0x2da   : > { %v6810_v7 = vpop.f32.mrb[61].mxu1 }
 0x2db   : > { %v6891_v59 = vpop.f32.mrb[56].mxu0  ;;  %v9829_v33 = vadd.f32 %v6810_v7, %v6809_v48  ;;  %v6812_v31 = vpop.f32.mrb[62].mxu1 }
 0x2dc   : > { %v6892_v22 = vpop.f32.mrb[57].mxu0  ;;  %v6813_v30 = vpop.f32.mrb[63].mxu1 }
 0x2dd   : > { %v6893_v45 = vadd.f32 %v6892_v22, %v6891_v59  ;;  %v6894_v2 = vpop.f32.mrb[58].mxu0  ;;  %v9831_v15 = vadd.f32 %v6813_v30, %v6812_v31 }
 0x2de   : > { %v6895_v25 = vpop.f32.mrb[59].mxu0 }
 0x2df   : > { %v9834_v6 = vadd.f32 %v6893_v45, %v9723_v61  ;;  %v6896_v54 = vadd.f32 %v6895_v25, %v6894_v2  ;;  %v4837_v61 = vshll.u32 %v4689_v11, 16 }
 0x2e0   : > { %7340 = vmatmul.mubr.bf16.gmra.mrb[36].mxu0 %v9646_v27 }
 0x2e1   : > { %v9840_v39 = vadd.f32 %v6896_v54, %v9725_v46  ;;  %7343 = vmatprep.mubr.bf16.mxu0 %v9649_v4  ;;  %v6815_v5 = vpop.f32.mrb[64].mxu1  ;;  %v4839_v19 = vrot.slane %v4837_v61, 5 }
 0x2e2   : > { %v6816_v32 = vpop.f32.mrb[65].mxu1 }
 0x2e3   : > { %v6897_v43 = vpop.f32.mrb[60].mxu0  ;;  %v9843_v18 = vadd.f32 %v6816_v32, %v6815_v5  ;;  %v6818_v0 = vpop.f32.mrb[66].mxu1 }
 0x2e4   : > { %v6898_v49 = vpop.f32.mrb[61].mxu0  ;;  %v6819_v28 = vpop.f32.mrb[67].mxu1 }
 0x2e5   : > { %v6899_v37 = vadd.f32 %v6898_v49, %v6897_v43  ;;  %v6900_v27 = vpop.f32.mrb[62].mxu0  ;;  %v9845_v23 = vadd.f32 %v6819_v28, %v6818_v0  ;;  %v7760_v0 = vld [vmem:[#allocation10 + $0x30] sm:$0xff]  }
 0x2e6   : > { %v6901_v60 = vpop.f32.mrb[63].mxu0  ;;  %7363 = vmatprep.subr.bf16.mxu1 %v7760_v0 }
 0x2e7   : > { %v9848_v46 = vadd.f32 %v6899_v37, %v9740_v9  ;;  %v6902_v4 = vadd.f32 %v6901_v60, %v6900_v27  ;;  %v4840_v9 = vor.u32 %v4839_v19, %v4836_v13  ;;  %7364 = vmatpush3.bf16.msra.mxu1 %v7760_v0 }
 0x2e8   : > { %7344 = vmatmul.mubr.bf16.gmra.mrb[40].mxu0 %v9661_v21 }
 0x2e9   : > { %v9852_v47 = vadd.f32 %v6902_v4, %v9742_v34  ;;  %7347 = vmatprep.mubr.bf16.mxu0 %v9665_v38  ;;  %v6821_v42 = vpop.f32.mrb[68].mxu1  ;;  %v4841_v38 = vsel %vm10646_vm10, %v9654_v53, %v4840_v9 }
 0x2ea   : > { %v6822_v55 = vpop.f32.mrb[69].mxu1 }
 0x2eb   : > { %v6903_v16 = vpop.f32.mrb[64].mxu0  ;;  %v9855_v58 = vadd.f32 %v6822_v55, %v6821_v42  ;;  %v6824_v14 = vpop.f32.mrb[70].mxu1 }
 0x2ec   : > { %v6904_v56 = vpop.f32.mrb[65].mxu0  ;;  %v6825_v48 = vpop.f32.mrb[71].mxu1 }
 0x2ed   : > { %v6905_v7 = vadd.f32 %v6904_v56, %v6903_v16  ;;  %v6906_v59 = vpop.f32.mrb[66].mxu0  ;;  %v9857_v31 = vadd.f32 %v6825_v48, %v6824_v14 }
 0x2ee   : > { %v6907_v21 = vpop.f32.mrb[67].mxu0 }
 0x2ef   : > { %v9860_v22 = vadd.f32 %v6905_v7, %v9753_v57  ;;  %v6908_v34 = vadd.f32 %v6907_v21, %v6906_v59 }
 0x2f0   : > { %7348 = vmatmul.mubr.bf16.gmra.mrb[44].mxu0 %v4841_v38 }
 0x2f1   : > { %v9865_v30 = vadd.f32 %v6908_v34, %v9757_v1  ;;  %v6827_v45 = vpop.f32.mrb[72].mxu1 }
 0x2f2   : > { %v6828_v2 = vpop.f32.mrb[73].mxu1 }
 0x2f3   : > { %v6909_v50 = vpop.f32.mrb[68].mxu0  ;;  %v9867_v25 = vadd.f32 %v6828_v2, %v6827_v45  ;;  %v6830_v54 = vpop.f32.mrb[74].mxu1 }
 0x2f4   : > { %v6910_v11 = vpop.f32.mrb[69].mxu0  ;;  %v6831_v5 = vpop.f32.mrb[75].mxu1 }
 0x2f5   : > { %v6911_v32 = vadd.f32 %v6910_v11, %v6909_v50  ;;  %v6912_v43 = vpop.f32.mrb[70].mxu0  ;;  %v9869_v57 = vadd.f32 %v6831_v5, %v6830_v54 }
 0x2f6   : > { %v6913_v26 = vpop.f32.mrb[71].mxu0 }
 0x2f7   : > { %v9872_v53 = vadd.f32 %v6911_v32, %v9767_v41  ;;  %v6914_v61 = vadd.f32 %v6913_v26, %v6912_v43  ;;  %v7761_v41 = vld [vmem:[#allocation10 + $0x38] sm:$0xff]  }
 0x2f8   : > { %7365 = vmatprep.subr.bf16.mxu1 %v7761_v41 }
 0x2f9   : > { %v9875_v1 = vadd.f32 %v6914_v61, %v9769_v51  ;;  %v6833_v49 = vpop.f32.mrb[76].mxu1  ;;  %7366 = vmatpush3.bf16.msra.mxu1 %v7761_v41 }
 0x2fa   : > { %v6834_v28 = vpop.f32.mrb[77].mxu1 }
 0x2fb   : > { %v6915_v37 = vpop.f32.mrb[72].mxu0  ;;  %v9877_v27 = vadd.f32 %v6834_v28, %v6833_v49  ;;  %v6836_v12 = vpop.f32.mrb[78].mxu1 }
 0x2fc   : > { %v6916_v60 = vpop.f32.mrb[73].mxu0  ;;  %v6837_v4 = vpop.f32.mrb[79].mxu1 }
 0x2fd   : > { %v6917_v13 = vadd.f32 %v6916_v60, %v6915_v37  ;;  %v6918_v19 = vpop.f32.mrb[74].mxu0  ;;  %v9879_v42 = vadd.f32 %v6837_v4, %v6836_v12 }
 0x2fe   : > { %v6919_v55 = vpop.f32.mrb[75].mxu0 }
 0x2ff   : > { %v9882_v16 = vadd.f32 %v6917_v13, %v9777_v3  ;;  %v6920_v14 = vadd.f32 %v6919_v55, %v6918_v19 }
 0x301   : > { %v9885_v51 = vadd.f32 %v6920_v14, %v9779_v63  ;;  %v7015_v9 = vpop.f32.mrb[80].mxu1 }
 0x302   : > { %v7016_v56 = vpop.f32.mrb[81].mxu1 }
 0x303   : > { %v6921_v48 = vpop.f32.mrb[76].mxu0  ;;  %v7017_v7 = vadd.f32 %v7016_v56, %v7015_v9  ;;  %v7018_v59 = vpop.f32.mrb[82].mxu1 }
 0x304   : > { %v6922_v21 = vpop.f32.mrb[77].mxu0  ;;  %v7019_v34 = vpop.f32.mrb[83].mxu1 }
 0x305   : > { %v6923_v38 = vadd.f32 %v6922_v21, %v6921_v48  ;;  %v6924_v45 = vpop.f32.mrb[78].mxu0  ;;  %v7020_v2 = vadd.f32 %v7019_v34, %v7018_v59  ;;  %v9903_v41 = vadd.f32 %v9809_v40, %v7017_v7 }
 0x306   : > { %v6925_v50 = vpop.f32.mrb[79].mxu0 }
 0x307   : > { %v9888_v3 = vadd.f32 %v6923_v38, %v9787_v36  ;;  %v6926_v54 = vadd.f32 %v6925_v50, %v6924_v45 }
 0x309   : > { %v9891_v11 = vadd.f32 %v6926_v54, %v9789_v8  ;;  %v7021_v63 = vpop.f32.mrb[84].mxu1 }
 0x30a   : > { %v7022_v5 = vpop.f32.mrb[85].mxu1 }
 0x30b   : > { %v6927_v32 = vpop.f32.mrb[80].mxu0  ;;  %v7023_v43 = vadd.f32 %v7022_v5, %v7021_v63  ;;  %v7024_v0 = vpop.f32.mrb[86].mxu1 }
 0x30c   : > { %v6928_v26 = vpop.f32.mrb[81].mxu0  ;;  %v7025_v61 = vpop.f32.mrb[87].mxu1 }
 0x30d   : > { %v6929_v49 = vadd.f32 %v6928_v26, %v6927_v32  ;;  %v6930_v28 = vpop.f32.mrb[82].mxu0  ;;  %v7026_v37 = vadd.f32 %v7025_v61, %v7024_v0  ;;  %v9894_v12 = vadd.f32 %v9821_v62, %v7023_v43 }
 0x30e   : > { %v6931_v60 = vpop.f32.mrb[83].mxu0 }
 0x30f   : > { %v9897_v36 = vadd.f32 %v6929_v49, %v9798_v52  ;;  %v6932_v4 = vadd.f32 %v6931_v60, %v6930_v28  ;;  %v9906_v56 = vadd.f32 %v9826_v10, %v7026_v37 }
 0x311   : > { %v9900_v8 = vadd.f32 %v6932_v4, %v9800_v17  ;;  %v7027_v13 = vpop.f32.mrb[88].mxu1  ;;  %v9909_v17 = vadd.f32 %v9814_v29, %v7020_v2 }
 0x312   : > { %v7028_v19 = vpop.f32.mrb[89].mxu1 }
 0x313   : > { %v6933_v55 = vpop.f32.mrb[84].mxu0  ;;  %v7029_v14 = vadd.f32 %v7028_v19, %v7027_v13  ;;  %v7030_v9 = vpop.f32.mrb[90].mxu1 }
 0x314   : > { %v6934_v62 = vpop.f32.mrb[85].mxu0  ;;  %v7031_v48 = vpop.f32.mrb[91].mxu1 }
 0x315   : > { %v6935_v59 = vadd.f32 %v6934_v62, %v6933_v55  ;;  %v6936_v52 = vpop.f32.mrb[86].mxu0  ;;  %v7032_v21 = vadd.f32 %v7031_v48, %v7030_v9  ;;  %v9918_v10 = vadd.f32 %v9834_v6, %v7029_v14 }
 0x316   : > { %v6937_v34 = vpop.f32.mrb[87].mxu0 }
 0x317   : > { %v9912_v38 = vadd.f32 %v6935_v59, %v9804_v35  ;;  %v6938_v40 = vadd.f32 %v6937_v34, %v6936_v52  ;;  %v9921_v29 = vadd.f32 %v9840_v39, %v7032_v21 }
 0x319   : > { %v9915_v7 = vadd.f32 %v6938_v40, %v9806_v24  ;;  %v7033_v45 = vpop.f32.mrb[92].mxu1 }
 0x31a   : > { %v7034_v50 = vpop.f32.mrb[93].mxu1 }
 0x31b   : > { %v6939_v54 = vpop.f32.mrb[88].mxu0  ;;  %v7035_v63 = vadd.f32 %v7034_v50, %v7033_v45  ;;  %v7036_v5 = vpop.f32.mrb[94].mxu1 }
 0x31c   : > { %v6940_v32 = vpop.f32.mrb[89].mxu0  ;;  %v7037_v43 = vpop.f32.mrb[95].mxu1 }
 0x31d   : > { %v6941_v2 = vadd.f32 %v6940_v32, %v6939_v54  ;;  %v6942_v35 = vpop.f32.mrb[90].mxu0  ;;  %v7038_v0 = vadd.f32 %v7037_v43, %v7036_v5  ;;  %v9924_v26 = vadd.f32 %v9848_v46, %v7035_v63 }
 0x31e   : > { %v6943_v24 = vpop.f32.mrb[91].mxu0 }
 0x31f   : > { %v9927_v61 = vadd.f32 %v6941_v2, %v9816_v20  ;;  %v6944_v6 = vadd.f32 %v6943_v24, %v6942_v35  ;;  %v9930_v49 = vadd.f32 %v9852_v47, %v7038_v0 }
 0x321   : > { %v9933_v28 = vadd.f32 %v6944_v6, %v9818_v44  ;;  %v7039_v37 = vpop.f32.mrb[96].mxu1 }
 0x322   : > { %v7040_v39 = vpop.f32.mrb[97].mxu1 }
 0x323   : > { %v6945_v60 = vpop.f32.mrb[92].mxu0  ;;  %v7041_v4 = vadd.f32 %v7040_v39, %v7039_v37  ;;  %v7042_v13 = vpop.f32.mrb[98].mxu1 }
 0x324   : > { %v6946_v19 = vpop.f32.mrb[93].mxu0  ;;  %v7043_v55 = vpop.f32.mrb[99].mxu1 }
 0x325   : > { %v6947_v46 = vadd.f32 %v6946_v19, %v6945_v60  ;;  %v6948_v14 = vpop.f32.mrb[94].mxu0  ;;  %v7044_v9 = vadd.f32 %v7043_v55, %v7042_v13  ;;  %v9936_v20 = vadd.f32 %v9860_v22, %v7041_v4 }
 0x326   : > { %v6949_v62 = vpop.f32.mrb[95].mxu0 }
 0x327   : > { %v9939_v47 = vadd.f32 %v6947_v46, %v9829_v33  ;;  %v6950_v48 = vadd.f32 %v6949_v62, %v6948_v14  ;;  %v9942_v44 = vadd.f32 %v9865_v30, %v7044_v9 }
 0x329   : > { %v9945_v59 = vadd.f32 %v6950_v48, %v9831_v15  ;;  %v7045_v52 = vpop.f32.mrb[100].mxu1 }
 0x32a   : > { %v7046_v21 = vpop.f32.mrb[101].mxu1 }
 0x32b   : > { %v6951_v34 = vpop.f32.mrb[96].mxu0  ;;  %v7047_v40 = vadd.f32 %v7046_v21, %v7045_v52  ;;  %v7048_v45 = vpop.f32.mrb[102].mxu1 }
 0x32c   : > { %v6952_v50 = vpop.f32.mrb[97].mxu0  ;;  %v7049_v54 = vpop.f32.mrb[103].mxu1 }
 0x32d   : > { %v6953_v22 = vadd.f32 %v6952_v50, %v6951_v34  ;;  %v6954_v63 = vpop.f32.mrb[98].mxu0  ;;  %v7050_v5 = vadd.f32 %v7049_v54, %v7048_v45  ;;  %v9948_v33 = vadd.f32 %v9872_v53, %v7047_v40 }
 0x32e   : > { %v6955_v32 = vpop.f32.mrb[99].mxu0 }
 0x32f   : > { %v9951_v30 = vadd.f32 %v6953_v22, %v9843_v18  ;;  %v6956_v43 = vadd.f32 %v6955_v32, %v6954_v63  ;;  %v9954_v15 = vadd.f32 %v9875_v1, %v7050_v5 }
 0x331   : > { %v9957_v2 = vadd.f32 %v6956_v43, %v9845_v23  ;;  %v7051_v35 = vpop.f32.mrb[104].mxu1 }
 0x332   : > { %v7052_v0 = vpop.f32.mrb[105].mxu1 }
 0x333   : > { %v6957_v24 = vpop.f32.mrb[100].mxu0  ;;  %v7053_v6 = vadd.f32 %v7052_v0, %v7051_v35  ;;  %v7054_v37 = vpop.f32.mrb[106].mxu1 }
 0x334   : > { %v6958_v39 = vpop.f32.mrb[101].mxu0  ;;  %v7055_v60 = vpop.f32.mrb[107].mxu1 }
 0x335   : > { %v6959_v53 = vadd.f32 %v6958_v39, %v6957_v24  ;;  %v6960_v4 = vpop.f32.mrb[102].mxu0  ;;  %v7056_v13 = vadd.f32 %v7055_v60, %v7054_v37  ;;  %v9960_v18 = vadd.f32 %v9882_v16, %v7053_v6 }
 0x336   : > { %v6961_v19 = vpop.f32.mrb[103].mxu0 }
 0x337   : > { %v9963_v1 = vadd.f32 %v6959_v53, %v9855_v58  ;;  %v6962_v55 = vadd.f32 %v6961_v19, %v6960_v4  ;;  %v9966_v23 = vadd.f32 %v9885_v51, %v7056_v13 }
 0x339   : > { %v9969_v46 = vadd.f32 %v6962_v55, %v9857_v31  ;;  %v7057_v14 = vpop.f32.mrb[108].mxu1 }
 0x33a   : > { %v7058_v9 = vpop.f32.mrb[109].mxu1 }
 0x33b   : > { %v6963_v62 = vpop.f32.mrb[104].mxu0  ;;  %v7059_v48 = vadd.f32 %v7058_v9, %v7057_v14  ;;  %v7060_v52 = vpop.f32.mrb[110].mxu1 }
 0x33c   : > { %v6964_v21 = vpop.f32.mrb[105].mxu0  ;;  %v7061_v34 = vpop.f32.mrb[111].mxu1 }
 0x33d   : > { %v6965_v16 = vadd.f32 %v6964_v21, %v6963_v62  ;;  %v6966_v40 = vpop.f32.mrb[106].mxu0  ;;  %v7062_v45 = vadd.f32 %v7061_v34, %v7060_v52  ;;  %v9972_v58 = vadd.f32 %v9888_v3, %v7059_v48 }
 0x33e   : > { %v6967_v50 = vpop.f32.mrb[107].mxu0 }
 0x33f   : > { %v9975_v51 = vadd.f32 %v6965_v16, %v9867_v25  ;;  %v6968_v54 = vadd.f32 %v6967_v50, %v6966_v40  ;;  %v9978_v31 = vadd.f32 %v9891_v11, %v7062_v45 }
 0x341   : > { %v9981_v22 = vadd.f32 %v6968_v54, %v9869_v57  ;;  %v7063_v63 = vpop.f32.mrb[112].mxu1 }
 0x342   : > { %v7064_v5 = vpop.f32.mrb[113].mxu1 }
 0x343   : > { %v6969_v32 = vpop.f32.mrb[108].mxu0  ;;  %v7065_v43 = vadd.f32 %v7064_v5, %v7063_v63  ;;  %v7066_v35 = vpop.f32.mrb[114].mxu1 }
 0x344   : > { %v6970_v0 = vpop.f32.mrb[109].mxu0  ;;  %v7067_v24 = vpop.f32.mrb[115].mxu1 }
 0x345   : > { %v6971_v3 = vadd.f32 %v6970_v0, %v6969_v32  ;;  %v6972_v6 = vpop.f32.mrb[110].mxu0  ;;  %v7068_v37 = vadd.f32 %v7067_v24, %v7066_v35  ;;  %v9984_v25 = vadd.f32 %v9897_v36, %v7065_v43 }
 0x346   : > { %v6973_v39 = vpop.f32.mrb[111].mxu0 }
 0x347   : > { %v7499_v11 = vadd.f32 %v6971_v3, %v9877_v27  ;;  %v6974_v60 = vadd.f32 %v6973_v39, %v6972_v6  ;;  %v9988_v57 = vadd.f32 %v9900_v8, %v7068_v37 }
 0x349   : > { %v7505_v53 = vadd.f32 %v6974_v60, %v9879_v42  ;;  %v7069_v4 = vpop.f32.mrb[116].mxu1 }
 0x34a   : > { %v7070_v13 = vpop.f32.mrb[117].mxu1 }
 0x34b   : > { %v7071_v19 = vadd.f32 %v7070_v13, %v7069_v4  ;;  %v7072_v55 = vpop.f32.mrb[118].mxu1 }
 0x34c   : > { %v7073_v14 = vpop.f32.mrb[119].mxu1 }
 0x34d   : > { %v7074_v9 = vadd.f32 %v7073_v14, %v7072_v55  ;;  %v9992_v62 = vadd.f32 %v9912_v38, %v7071_v19 }
 0x34f   : > { %v9995_v36 = vadd.f32 %v9915_v7, %v7074_v9 }
 0x351   : > { %v7075_v48 = vpop.f32.mrb[120].mxu1 }
 0x352   : > { %v7076_v27 = vpop.f32.mrb[121].mxu1 }
 0x353   : > { %v7077_v52 = vadd.f32 %v7076_v27, %v7075_v48  ;;  %v7078_v21 = vpop.f32.mrb[122].mxu1 }
 0x354   : > { %v7079_v8 = vpop.f32.mrb[123].mxu1 }
 0x355   : > { %v7080_v34 = vadd.f32 %v7079_v8, %v7078_v21  ;;  %v9998_v42 = vadd.f32 %v9927_v61, %v7077_v52 }
 0x357   : > { %v10001_v16 = vadd.f32 %v9933_v28, %v7080_v34 }
 0x359   : > { %v7081_v40 = vpop.f32.mrb[124].mxu1 }
 0x35a   : > { %v7082_v45 = vpop.f32.mrb[125].mxu1 }
 0x35b   : > { %v7083_v50 = vadd.f32 %v7082_v45, %v7081_v40  ;;  %v7084_v38 = vpop.f32.mrb[126].mxu1 }
 0x35c   : > { %v7085_v54 = vpop.f32.mrb[127].mxu1 }
 0x35d   : > { %v7086_v63 = vadd.f32 %v7085_v54, %v7084_v38  ;;  %v10004_v7 = vadd.f32 %v9939_v47, %v7083_v50  ;;  %v10034_v38 = vld [vmem:[%s10303_s5] ss:$0 sm:$0xff] }
 0x35e   : > { %v10040_v54 = vld [vmem:[%s10304_s6] ss:$0 sm:$0xff] }
 0x35f   : > { %v10007_v5 = vadd.f32 %v9945_v59, %v7086_v63 }
 0x361   : > { %v7087_v32 = vpop.f32.mrb[128].mxu1 }
 0x362   : > { %v7088_v43 = vpop.f32.mrb[129].mxu1 }
 0x363   : > { %v7089_v35 = vadd.f32 %v7088_v43, %v7087_v32  ;;  %v7090_v61 = vpop.f32.mrb[130].mxu1 }
 0x364   : > { %v7091_v0 = vpop.f32.mrb[131].mxu1 }
 0x365   : > { %v7092_v24 = vadd.f32 %v7091_v0, %v7090_v61  ;;  %v10010_v28 = vadd.f32 %v9951_v30, %v7089_v35 }
 0x367   : > { %v10013_v3 = vadd.f32 %v9957_v2, %v7092_v24 }
 0x369   : > { %v7093_v6 = vpop.f32.mrb[132].mxu1 }
 0x36a   : > { %v7094_v37 = vpop.f32.mrb[133].mxu1 }
 0x36b   : > { %v7095_v39 = vadd.f32 %v7094_v37, %v7093_v6  ;;  %v7096_v47 = vpop.f32.mrb[134].mxu1 }
 0x36c   : > { %v7097_v60 = vpop.f32.mrb[135].mxu1 }
 0x36d   : > { %v7098_v4 = vadd.f32 %v7097_v60, %v7096_v47  ;;  %v10016_v59 = vadd.f32 %v9963_v1, %v7095_v39 }
 0x36f   : > { %v10019_v13 = vadd.f32 %v9969_v46, %v7098_v4 }
 0x371   : > { %v7099_v19 = vpop.f32.mrb[136].mxu1 }
 0x372   : > { %v7100_v55 = vpop.f32.mrb[137].mxu1 }
 0x373   : > { %v7101_v14 = vadd.f32 %v7100_v55, %v7099_v19  ;;  %v7102_v30 = vpop.f32.mrb[138].mxu1 }
 0x374   : > { %v7103_v9 = vpop.f32.mrb[139].mxu1 }
 0x375   : > { %v7104_v48 = vadd.f32 %v7103_v9, %v7102_v30  ;;  %v10022_v2 = vadd.f32 %v9975_v51, %v7101_v14 }
 0x377   : > { %v10025_v27 = vadd.f32 %v9981_v22, %v7104_v48 }
 0x379   : > { %v7105_v52 = vpop.f32.mrb[140].mxu1 }
 0x37a   : > { %v7106_v21 = vpop.f32.mrb[141].mxu1 }
 0x37b   : > { %v7107_v8 = vadd.f32 %v7106_v21, %v7105_v52  ;;  %v7108_v1 = vpop.f32.mrb[142].mxu1 }
 0x37c   : > { %v7109_v34 = vpop.f32.mrb[143].mxu1 }
 0x37d   : > { %v7110_v40 = vadd.f32 %v7109_v34, %v7108_v1  ;;  %v10027_v46 = vadd.f32 %v7499_v11, %v7107_v8 }
 0x37f   : > { %v10029_v45 = vadd.f32 %v7505_v53, %v7110_v40 }
 0x38b   : > { %v7321_v50 = vpop.f32.mrb[16].mxu0 }
 0x38c   : > { %v7417_v51 = vadd.f32 %v9894_v12, %v7321_v50  ;;  %v5309_v22 = vpop.f32.mrb[17].mxu0 }
 0x38d   : > { %v7420_v63 = vadd.f32 %v9903_v41, %v5309_v22  ;;  %v7322_v11 = vpop.f32.mrb[18].mxu0 }
 0x38e   : > { %v5477_v53 = vmul.f32 %v7417_v51, %v10034_v38  ;;  %v7423_v32 = vadd.f32 %v9906_v56, %v7322_v11  ;;  %v5312_v43 = vpop.f32.mrb[19].mxu0 }
 0x38f   : > { %v5475_v35 = vmul.f32 %v7420_v63, %v10034_v38  ;;  %v7426_v61 = vadd.f32 %v9909_v17, %v5312_v43 }
 0x390   : > { %v5516_v12 = vadd.f32 %v10040_v54, %v5477_v53  ;;  %v5478_v0 = vmul.f32 %v7423_v32, %v10034_v38 }
 0x391   : > { %v5514_v24 = vadd.f32 %v10040_v54, %v5475_v35  ;;  %v5476_v6 = vmul.f32 %v7426_v61, %v10034_v38 }
 0x392   : > { %v5517_v41 = vadd.f32 %v10040_v54, %v5478_v0  ;;  %v5548_v47 = vmax.f32 %v5516_v12, 0.0 }
 0x393   : > { %v5515_v37 = vadd.f32 %v10040_v54, %v5476_v6  ;;  %v7325_v39 = vpop.f32.mrb[20].mxu0  ;;  %v5546_v19 = vmax.f32 %v5514_v24, 0.0 }
 0x394   : > { %v5549_v56 = vmax.f32 %v5517_v41, 0.0  ;;  %v7429_v60 = vadd.f32 %v9924_v26, %v7325_v39  ;;  %v5325_v4 = vpop.f32.mrb[21].mxu0 }
 0x395   : > { %v5547_v17 = vmax.f32 %v5515_v37, 0.0  ;;  %v7432_v55 = vadd.f32 %v9918_v10, %v5325_v4  ;;  %v7326_v14 = vpop.f32.mrb[22].mxu0 }
 0x396   : > { %v5579_v30 = vpack.c.bf16 %v5549_v56, %v5548_v47  ;;  %v5481_v9 = vmul.f32 %v7429_v60, %v10034_v38  ;;  %v7435_v48 = vadd.f32 %v9930_v49, %v7326_v14  ;;  %v5328_v52 = vpop.f32.mrb[23].mxu0 }
 0x397   : > { %v5479_v21 = vmul.f32 %v7432_v55, %v10034_v38  ;;  %v7438_v8 = vadd.f32 %v9921_v29, %v5328_v52  ;;  %v5578_v1 = vpack.c.bf16 %v5547_v17, %v5546_v19 }
 0x398   : > { %v5520_v34 = vadd.f32 %v10040_v54, %v5481_v9  ;;  %v5482_v26 = vmul.f32 %v7435_v48, %v10034_v38 }
 0x399   : > { %v5518_v40 = vadd.f32 %v10040_v54, %v5479_v21  ;;  %v5480_v10 = vmul.f32 %v7438_v8, %v10034_v38  ;;  %7367 = vmatprep.mubr.bf16.mxu1 %v5578_v1 }
 0x39a   : > { %v5521_v50 = vadd.f32 %v10040_v54, %v5482_v26  ;;  %7368 = vmatmul.mubr.bf16.vlgmr.msra.gmra.mrb[144].mxu1 %v5579_v30  ;;  %v5552_v22 = vmax.f32 %v5520_v34, 0.0 }
 0x39b   : > { %v5519_v49 = vadd.f32 %v10040_v54, %v5480_v10  ;;  %v7329_v51 = vpop.f32.mrb[24].mxu0  ;;  %v5550_v53 = vmax.f32 %v5518_v40, 0.0 }
 0x39c   : > { %v5553_v63 = vmax.f32 %v5521_v50, 0.0  ;;  %v7441_v29 = vadd.f32 %v9948_v33, %v7329_v51  ;;  %v5341_v11 = vpop.f32.mrb[25].mxu0 }
 0x39d   : > { %v5551_v32 = vmax.f32 %v5519_v49, 0.0  ;;  %v7444_v43 = vadd.f32 %v9936_v20, %v5341_v11  ;;  %v7330_v35 = vpop.f32.mrb[26].mxu0 }
 0x39e   : > { %v5485_v61 = vmul.f32 %v7441_v29, %v10034_v38  ;;  %v7447_v12 = vadd.f32 %v9954_v15, %v7330_v35  ;;  %v5344_v0 = vpop.f32.mrb[27].mxu0  ;;  %v5581_v24 = vpack.c.bf16 %v5553_v63, %v5552_v22 }
 0x39f   : > { %v5483_v6 = vmul.f32 %v7444_v43, %v10034_v38  ;;  %v7450_v41 = vadd.f32 %v9942_v44, %v5344_v0  ;;  %v5580_v37 = vpack.c.bf16 %v5551_v32, %v5550_v53 }
 0x3a0   : > { %v5524_v39 = vadd.f32 %v10040_v54, %v5485_v61  ;;  %v5486_v33 = vmul.f32 %v7447_v12, %v10034_v38 }
 0x3a1   : > { %v5522_v47 = vadd.f32 %v10040_v54, %v5483_v6  ;;  %v5484_v20 = vmul.f32 %v7450_v41, %v10034_v38  ;;  %7371 = vmatprep.mubr.bf16.mxu1 %v5580_v37 }
 0x3a2   : > { %v5525_v56 = vadd.f32 %v10040_v54, %v5486_v33  ;;  %7372 = vmatmul.mubr.bf16.gmra.mrb[148].mxu1 %v5581_v24  ;;  %v5556_v4 = vmax.f32 %v5524_v39, 0.0 }
 0x3a3   : > { %v5523_v15 = vadd.f32 %v10040_v54, %v5484_v20  ;;  %v7333_v60 = vpop.f32.mrb[28].mxu0  ;;  %v5554_v55 = vmax.f32 %v5522_v47, 0.0 }
 0x3a4   : > { %v5557_v19 = vmax.f32 %v5525_v56, 0.0  ;;  %v7453_v44 = vadd.f32 %v9972_v58, %v7333_v60  ;;  %v5357_v17 = vpop.f32.mrb[29].mxu0 }
 0x3a5   : > { %v5555_v14 = vmax.f32 %v5523_v15, 0.0  ;;  %v7456_v30 = vadd.f32 %v9960_v18, %v5357_v17  ;;  %v7334_v9 = vpop.f32.mrb[30].mxu0 }
 0x3a6   : > { %v5489_v48 = vmul.f32 %v7453_v44, %v10034_v38  ;;  %v7459_v52 = vadd.f32 %v9978_v31, %v7334_v9  ;;  %v5360_v21 = vpop.f32.mrb[31].mxu0  ;;  %v5583_v8 = vpack.c.bf16 %v5557_v19, %v5556_v4 }
 0x3a7   : > { %v5487_v1 = vmul.f32 %v7456_v30, %v10034_v38  ;;  %v7462_v34 = vadd.f32 %v9966_v23, %v5360_v21  ;;  %v5582_v26 = vpack.c.bf16 %v5555_v14, %v5554_v55 }
 0x3a8   : > { %v5528_v40 = vadd.f32 %v10040_v54, %v5489_v48  ;;  %v5490_v58 = vmul.f32 %v7459_v52, %v10034_v38 }
 0x3a9   : > { %v5526_v10 = vadd.f32 %v10040_v54, %v5487_v1  ;;  %v5488_v18 = vmul.f32 %v7462_v34, %v10034_v38  ;;  %7375 = vmatprep.mubr.bf16.mxu1 %v5582_v26 }
 0x3aa   : > { %v5529_v50 = vadd.f32 %v10040_v54, %v5490_v58  ;;  %7376 = vmatmul.mubr.bf16.gmra.mrb[152].mxu1 %v5583_v8  ;;  %v5560_v51 = vmax.f32 %v5528_v40, 0.0 }
 0x3ab   : > { %v5527_v31 = vadd.f32 %v10040_v54, %v5488_v18  ;;  %v7337_v49 = vpop.f32.mrb[32].mxu0  ;;  %v5558_v29 = vmax.f32 %v5526_v10, 0.0 }
 0x3ac   : > { %v5561_v22 = vmax.f32 %v5529_v50, 0.0  ;;  %v7465_v23 = vadd.f32 %v9992_v62, %v7337_v49  ;;  %v5373_v63 = vpop.f32.mrb[33].mxu0 }
 0x3ad   : > { %v5559_v11 = vmax.f32 %v5527_v31, 0.0  ;;  %v7468_v53 = vadd.f32 %v9984_v25, %v5373_v63  ;;  %v7338_v32 = vpop.f32.mrb[34].mxu0 }
 0x3ae   : > { %v5493_v43 = vmul.f32 %v7465_v23, %v10034_v38  ;;  %v7471_v35 = vadd.f32 %v9995_v36, %v7338_v32  ;;  %v5376_v61 = vpop.f32.mrb[35].mxu0  ;;  %v5585_v12 = vpack.c.bf16 %v5561_v22, %v5560_v51 }
 0x3af   : > { %v5491_v0 = vmul.f32 %v7468_v53, %v10034_v38  ;;  %v7474_v24 = vadd.f32 %v9988_v57, %v5376_v61  ;;  %v5584_v6 = vpack.c.bf16 %v5559_v11, %v5558_v29 }
 0x3b0   : > { %v5532_v41 = vadd.f32 %v10040_v54, %v5493_v43  ;;  %v5494_v62 = vmul.f32 %v7471_v35, %v10034_v38 }
 0x3b1   : > { %v5530_v37 = vadd.f32 %v10040_v54, %v5491_v0  ;;  %v5492_v25 = vmul.f32 %v7474_v24, %v10034_v38  ;;  %7379 = vmatprep.mubr.bf16.mxu1 %v5584_v6 }
 0x3b2   : > { %v5533_v39 = vadd.f32 %v10040_v54, %v5494_v62  ;;  %7380 = vmatmul.mubr.bf16.gmra.mrb[156].mxu1 %v5585_v12  ;;  %v5564_v47 = vmax.f32 %v5532_v41, 0.0 }
 0x3b3   : > { %v5531_v36 = vadd.f32 %v10040_v54, %v5492_v25  ;;  %v7341_v33 = vpop.f32.mrb[36].mxu0  ;;  %v5562_v15 = vmax.f32 %v5530_v37, 0.0 }
 0x3b4   : > { %v5565_v20 = vmax.f32 %v5533_v39, 0.0  ;;  %v7477_v57 = vadd.f32 %v10004_v7, %v7341_v33  ;;  %v5389_v56 = vpop.f32.mrb[37].mxu0 }
 0x3b5   : > { %v5563_v60 = vmax.f32 %v5531_v36, 0.0  ;;  %v7480_v4 = vadd.f32 %v9998_v42, %v5389_v56  ;;  %v7342_v19 = vpop.f32.mrb[38].mxu0 }
 0x3b6   : > { %v5497_v44 = vmul.f32 %v7477_v57, %v10034_v38  ;;  %v7483_v17 = vadd.f32 %v10007_v5, %v7342_v19  ;;  %v5392_v55 = vpop.f32.mrb[39].mxu0  ;;  %v5587_v14 = vpack.c.bf16 %v5565_v20, %v5564_v47 }
 0x3b7   : > { %v5495_v30 = vmul.f32 %v7480_v4, %v10034_v38  ;;  %v7486_v9 = vadd.f32 %v10001_v16, %v5392_v55  ;;  %v5586_v48 = vpack.c.bf16 %v5563_v60, %v5562_v15  ;;  %v6530_v55 = vld [vmem:[%s8230_s9] sm:$0xff]  }
 0x3b8   : > { %v5536_v52 = vadd.f32 %v10040_v54, %v5497_v44  ;;  %v5498_v7 = vmul.f32 %v7483_v17, %v10034_v38  ;;  %v10140_v17 = vld [vmem:[%s10306_s8] ss:$0 sm:$0xff] }
 0x3b9   : > { %v5534_v21 = vadd.f32 %v10040_v54, %v5495_v30  ;;  %v5496_v42 = vmul.f32 %v7486_v9, %v10034_v38  ;;  %7383 = vmatprep.mubr.bf16.mxu1 %v5586_v48 }
 0x3ba   : > { %v5537_v8 = vadd.f32 %v10040_v54, %v5498_v7  ;;  %7384 = vmatmul.mubr.bf16.gmra.mrb[160].mxu1 %v5587_v14  ;;  %v5568_v34 = vmax.f32 %v5536_v52, 0.0  ;;  %v6531_v7 = vunpack.c.l.bf16 %v6530_v55 }
 0x3bb   : > { %v5535_v5 = vadd.f32 %v10040_v54, %v5496_v42  ;;  %v7345_v1 = vpop.f32.mrb[40].mxu0  ;;  %v5566_v58 = vmax.f32 %v5534_v21, 0.0 }
 0x3bc   : > { %v5569_v26 = vmax.f32 %v5537_v8, 0.0  ;;  %v7489_v16 = vadd.f32 %v10016_v59, %v7345_v1  ;;  %v5405_v40 = vpop.f32.mrb[41].mxu0 }
 0x3bd   : > { %v5567_v10 = vmax.f32 %v5535_v5, 0.0  ;;  %v7492_v18 = vadd.f32 %v10010_v28, %v5405_v40  ;;  %v7346_v50 = vpop.f32.mrb[42].mxu0 }
 0x3be   : > { %v5501_v31 = vmul.f32 %v7489_v16, %v10034_v38  ;;  %v7495_v49 = vadd.f32 %v10019_v13, %v7346_v50  ;;  %v5408_v51 = vpop.f32.mrb[43].mxu0  ;;  %v5589_v22 = vpack.c.bf16 %v5569_v26, %v5568_v34  ;;  %v6532_v16 = vunpack.c.h.bf16 %v6530_v55  ;;  %v6675_v50 = vld [vmem:[%s8230_s9 + $0x18] sm:$0xff]  }
 0x3bf   : > { %v5499_v23 = vmul.f32 %v7492_v18, %v10034_v38  ;;  %v7498_v63 = vadd.f32 %v10013_v3, %v5408_v51  ;;  %v5588_v29 = vpack.c.bf16 %v5567_v10, %v5566_v58 }
 0x3c0   : > { %v5540_v11 = vadd.f32 %v10040_v54, %v5501_v31  ;;  %v5502_v59 = vmul.f32 %v7495_v49, %v10034_v38  ;;  %v6674_v49 = vld [vmem:[%s8230_s9 + $0x10] sm:$0xff]  }
 0x3c1   : > { %v5538_v53 = vadd.f32 %v10040_v54, %v5499_v23  ;;  %v5500_v28 = vmul.f32 %v7498_v63, %v10034_v38  ;;  %7387 = vmatprep.mubr.bf16.mxu1 %v5588_v29 }
 0x3c2   : > { %v5541_v32 = vadd.f32 %v10040_v54, %v5502_v59  ;;  %7388 = vmatmul.mubr.bf16.gmra.mrb[164].mxu1 %v5589_v22  ;;  %v5572_v35 = vmax.f32 %v5540_v11, 0.0  ;;  %v6543_v11 = vunpack.c.l.bf16 %v6675_v50 }
 0x3c3   : > { %v5539_v13 = vadd.f32 %v10040_v54, %v5500_v28  ;;  %v7349_v43 = vpop.f32.mrb[44].mxu0  ;;  %v5570_v0 = vmax.f32 %v5538_v53, 0.0 }
 0x3c4   : > { %v5573_v61 = vmax.f32 %v5541_v32, 0.0  ;;  %v7501_v3 = vadd.f32 %v10027_v46, %v7349_v43  ;;  %v5421_v12 = vpop.f32.mrb[45].mxu0 }
 0x3c5   : > { %v5571_v24 = vmax.f32 %v5539_v13, 0.0  ;;  %v7504_v6 = vadd.f32 %v10022_v2, %v5421_v12  ;;  %v7350_v41 = vpop.f32.mrb[46].mxu0  ;;  %v6539_v13 = vunpack.c.l.bf16 %v6674_v49  ;;  %v6544_v12 = vunpack.c.h.bf16 %v6675_v50 }
 0x3c6   : > { %v5505_v62 = vmul.f32 %v7501_v3, %v10034_v38  ;;  %v7507_v37 = vadd.f32 %v10029_v45, %v7350_v41  ;;  %v5424_v25 = vpop.f32.mrb[47].mxu0  ;;  %v5591_v39 = vpack.c.bf16 %v5573_v61, %v5572_v35 }
 0x3c7   : > { %v5503_v36 = vmul.f32 %v7504_v6, %v10034_v38  ;;  %v7510_v33 = vadd.f32 %v10025_v27, %v5424_v25  ;;  %v5590_v47 = vpack.c.bf16 %v5571_v24, %v5570_v0 }
 0x3c8   : > { %v5544_v20 = vadd.f32 %v10040_v54, %v5505_v62  ;;  %v5506_v46 = vmul.f32 %v7507_v37, %v10034_v38  ;;  %v6540_v62 = vunpack.c.h.bf16 %v6674_v49 }
 0x3c9   : > { %v5542_v57 = vadd.f32 %v10040_v54, %v5503_v36  ;;  %v5504_v2 = vmul.f32 %v7510_v33, %v10034_v38  ;;  %7391 = vmatprep.mubr.bf16.mxu1 %v5590_v47  ;;  %v6673_v38 = vld [vmem:[%s8230_s9 + $0x8] sm:$0xff]  }
 0x3ca   : > { %v5545_v45 = vadd.f32 %v10040_v54, %v5506_v46  ;;  %7392 = vmatmul.mubr.bf16.gmra.mrb[168].mxu1 %v5591_v39  ;;  %v5576_v15 = vmax.f32 %v5544_v20, 0.0  ;;  %v6535_v9 = vunpack.c.l.bf16 %v6673_v38  ;;  %v6536_v5 = vunpack.c.h.bf16 %v6673_v38  ;;  %v6677_v33 = vld [vmem:[%s8230_s9 + $0x28] sm:$0xff]   ;;  %v6676_v20 = vld [vmem:[%s8230_s9 + $0x20] sm:$0xff]  }
 0x3cb   : > { %v5543_v56 = vadd.f32 %v10040_v54, %v5504_v2  ;;  %v5574_v27 = vmax.f32 %v5542_v57, 0.0  ;;  %v10147_v54 = vld [vmem:[%s10647_s19] ss:$0 sm:$0xff] }
 0x3cc   : > { %v5577_v60 = vmax.f32 %v5545_v45, 0.0 }
 0x3cd   : > { %v5575_v4 = vmax.f32 %v5543_v56, 0.0 }
 0x3ce   : > { %v5593_v19 = vpack.c.bf16 %v5577_v60, %v5576_v15  ;;  %v6551_v15 = vunpack.c.l.bf16 %v6677_v33 }
 0x3cf   : > { %v5592_v44 = vpack.c.bf16 %v5575_v4, %v5574_v27 }
 0x3d1   : > { %7395 = vmatprep.mubr.bf16.mxu1 %v5592_v44  ;;  %v6547_v44 = vunpack.c.l.bf16 %v6676_v20 }
 0x3d2   : > { %7396 = vmatmul.mubr.bf16.gmra.mrb[172].mxu1 %v5593_v19 }
 0x46d   : > { %v7369_v14 = vpop.f32.mrb[144].mxu1 }
 0x46e   : > { %v5828_v30 = vmul.f32 %v7369_v14, %v10140_v17  ;;  %v5692_v48 = vpop.f32.mrb[145].mxu1 }
 0x46f   : > { %v5826_v52 = vmul.f32 %v10140_v17, %v5692_v48  ;;  %v7370_v21 = vpop.f32.mrb[146].mxu1 }
 0x470   : > { %v5867_v42 = vadd.f32 %v10147_v54, %v5828_v30  ;;  %v5829_v8 = vmul.f32 %v7370_v21, %v10140_v17  ;;  %v5695_v1 = vpop.f32.mrb[147].mxu1 }
 0x471   : > { %v5865_v34 = vadd.f32 %v10147_v54, %v5826_v52  ;;  %v5827_v26 = vmul.f32 %v10140_v17, %v5695_v1 }
 0x472   : > { %v5963_v40 = vadd.f32 %v6535_v9, %v5867_v42  ;;  %v5868_v58 = vadd.f32 %v10147_v54, %v5829_v8  ;;  %v6552_v9 = vunpack.c.h.bf16 %v6677_v33  ;;  %v6548_v42 = vunpack.c.h.bf16 %v6676_v20 }
 0x473   : > { %v5961_v10 = vadd.f32 %v6531_v7, %v5865_v34  ;;  %v5866_v18 = vadd.f32 %v10147_v54, %v5827_v26  ;;  %v6679_v26 = vld [vmem:[%s8230_s9 + $0x38] sm:$0xff]  }
 0x474   : > { %v5964_v31 = vadd.f32 %v6536_v5, %v5868_v58  ;;  %v5995_v23 = vmax.f32 %v5963_v40, 0.0  ;;  %v6678_v40 = vld [vmem:[%s8230_s9 + $0x30] sm:$0xff]   ;;  %v6559_v49 = vunpack.c.l.bf16 %v6679_v26 }
 0x475   : > { %v5962_v51 = vadd.f32 %v6532_v16, %v5866_v18  ;;  %v7373_v22 = vpop.f32.mrb[148].mxu1  ;;  %v5993_v53 = vmax.f32 %v5961_v10, 0.0 }
 0x476   : > { %v5996_v63 = vmax.f32 %v5964_v31, 0.0  ;;  %v5832_v29 = vmul.f32 %v7373_v22, %v10140_v17  ;;  %v5708_v59 = vpop.f32.mrb[149].mxu1 }
 0x477   : > { %v5994_v28 = vmax.f32 %v5962_v51, 0.0  ;;  %v5830_v32 = vmul.f32 %v10140_v17, %v5708_v59  ;;  %v7374_v43 = vpop.f32.mrb[150].mxu1 }
 0x478   : > { %v6601_v35 = vpack.c.bf16 %v5996_v63, %v5995_v23  ;;  %v5871_v61 = vadd.f32 %v10147_v54, %v5832_v29  ;;  %v5833_v3 = vmul.f32 %v7374_v43, %v10140_v17  ;;  %v5711_v0 = vpop.f32.mrb[151].mxu1  ;;  %v6555_v29 = vunpack.c.l.bf16 %v6678_v40 }
 0x479   : > { %v6596_v24 = vpack.c.bf16 %v5994_v28, %v5993_v53  ;;  %v5869_v6 = vadd.f32 %v10147_v54, %v5830_v32  ;;  %v5831_v41 = vmul.f32 %v10140_v17, %v5711_v0  ;;  %v6560_v32 = vunpack.c.h.bf16 %v6679_v26 }
 0x47a   : > { %6688 = vst [vmem:[%s10167_s21 + $0x8] sm:$0xff] %v6601_v35   ;;  %v5967_v37 = vadd.f32 %v6543_v11, %v5871_v61  ;;  %v5872_v25 = vadd.f32 %v10147_v54, %v5833_v3  ;;  %v6556_v3 = vunpack.c.h.bf16 %v6678_v40 }
 0x47b   : > { %6597 = vst [vmem:[%s10167_s21] sm:$0xff] %v6596_v24   ;;  %v5965_v39 = vadd.f32 %v6539_v13, %v5869_v6  ;;  %v5870_v36 = vadd.f32 %v10147_v54, %v5831_v41  ;;  %v6681_v41 = vld [vmem:[%s8230_s9 + $0x48] sm:$0xff]  }
 0x47c   : > { %v5968_v47 = vadd.f32 %v6544_v12, %v5872_v25  ;;  %v5999_v2 = vmax.f32 %v5967_v37, 0.0  ;;  %v6680_v37 = vld [vmem:[%s8230_s9 + $0x40] sm:$0xff]   ;;  %v6567_v20 = vunpack.c.l.bf16 %v6681_v41 }
 0x47d   : > { %v5966_v46 = vadd.f32 %v6540_v62, %v5870_v36  ;;  %v7377_v57 = vpop.f32.mrb[152].mxu1  ;;  %v5997_v27 = vmax.f32 %v5965_v39, 0.0 }
 0x47e   : > { %v6000_v45 = vmax.f32 %v5968_v47, 0.0  ;;  %v5836_v56 = vmul.f32 %v7377_v57, %v10140_v17  ;;  %v5724_v60 = vpop.f32.mrb[153].mxu1 }
 0x47f   : > { %v5998_v4 = vmax.f32 %v5966_v46, 0.0  ;;  %v5834_v19 = vmul.f32 %v10140_v17, %v5724_v60  ;;  %v7378_v38 = vpop.f32.mrb[154].mxu1 }
 0x480   : > { %v6611_v55 = vpack.c.bf16 %v6000_v45, %v5999_v2  ;;  %v5875_v14 = vadd.f32 %v10147_v54, %v5836_v56  ;;  %v5837_v30 = vmul.f32 %v7378_v38, %v10140_v17  ;;  %v5727_v48 = vpop.f32.mrb[155].mxu1  ;;  %v6563_v56 = vunpack.c.l.bf16 %v6680_v37 }
 0x481   : > { %v6606_v52 = vpack.c.bf16 %v5998_v4, %v5997_v27  ;;  %v5873_v7 = vadd.f32 %v10147_v54, %v5834_v19  ;;  %v5835_v21 = vmul.f32 %v10140_v17, %v5727_v48  ;;  %v6568_v19 = vunpack.c.h.bf16 %v6681_v41 }
 0x482   : > { %6690 = vst [vmem:[%s10167_s21 + $0x18] sm:$0xff] %v6611_v55   ;;  %v5971_v8 = vadd.f32 %v6551_v15, %v5875_v14  ;;  %v5876_v5 = vadd.f32 %v10147_v54, %v5837_v30  ;;  %v6564_v30 = vunpack.c.h.bf16 %v6680_v37 }
 0x483   : > { %6689 = vst [vmem:[%s10167_s21 + $0x10] sm:$0xff] %v6606_v52   ;;  %v5969_v1 = vadd.f32 %v6547_v44, %v5873_v7  ;;  %v5874_v34 = vadd.f32 %v10147_v54, %v5835_v21  ;;  %v6683_v21 = vld [vmem:[%s8230_s9 + $0x58] sm:$0xff]  }
 0x484   : > { %v5972_v16 = vadd.f32 %v6552_v9, %v5876_v5  ;;  %v6003_v18 = vmax.f32 %v5971_v8, 0.0  ;;  %v6682_v8 = vld [vmem:[%s8230_s9 + $0x50] sm:$0xff]   ;;  %v6575_v40 = vunpack.c.l.bf16 %v6683_v21 }
 0x485   : > { %v5970_v58 = vadd.f32 %v6548_v42, %v5874_v34  ;;  %v7381_v10 = vpop.f32.mrb[156].mxu1  ;;  %v6001_v22 = vmax.f32 %v5969_v1, 0.0 }
 0x486   : > { %v6004_v50 = vmax.f32 %v5972_v16, 0.0  ;;  %v5840_v31 = vmul.f32 %v7381_v10, %v10140_v17  ;;  %v5740_v51 = vpop.f32.mrb[157].mxu1 }
 0x487   : > { %v6002_v23 = vmax.f32 %v5970_v58, 0.0  ;;  %v5838_v63 = vmul.f32 %v10140_v17, %v5740_v51  ;;  %v7382_v11 = vpop.f32.mrb[158].mxu1 }
 0x488   : > { %v6621_v59 = vpack.c.bf16 %v6004_v50, %v6003_v18  ;;  %v5879_v53 = vadd.f32 %v10147_v54, %v5840_v31  ;;  %v5841_v28 = vmul.f32 %v7382_v11, %v10140_v17  ;;  %v5743_v13 = vpop.f32.mrb[159].mxu1  ;;  %v6571_v31 = vunpack.c.l.bf16 %v6682_v8 }
 0x489   : > { %v6616_v43 = vpack.c.bf16 %v6002_v23, %v6001_v22  ;;  %v5877_v35 = vadd.f32 %v10147_v54, %v5838_v63  ;;  %v5839_v61 = vmul.f32 %v10140_v17, %v5743_v13  ;;  %v6576_v63 = vunpack.c.h.bf16 %v6683_v21 }
 0x48a   : > { %6692 = vst [vmem:[%s10167_s21 + $0x28] sm:$0xff] %v6621_v59   ;;  %v5975_v12 = vadd.f32 %v6559_v49, %v5879_v53  ;;  %v5880_v0 = vadd.f32 %v10147_v54, %v5841_v28  ;;  %v6572_v28 = vunpack.c.h.bf16 %v6682_v8 }
 0x48b   : > { %6691 = vst [vmem:[%s10167_s21 + $0x20] sm:$0xff] %v6616_v43   ;;  %v5973_v24 = vadd.f32 %v6555_v29, %v5877_v35  ;;  %v5878_v6 = vadd.f32 %v10147_v54, %v5839_v61  ;;  %v6685_v61 = vld [vmem:[%s8230_s9 + $0x68] sm:$0xff]  }
 0x48c   : > { %v5976_v62 = vadd.f32 %v6560_v32, %v5880_v0  ;;  %v6007_v36 = vmax.f32 %v5975_v12, 0.0  ;;  %v6684_v12 = vld [vmem:[%s8230_s9 + $0x60] sm:$0xff]   ;;  %v6583_v37 = vunpack.c.l.bf16 %v6685_v61 }
 0x48d   : > { %v5974_v25 = vadd.f32 %v6556_v3, %v5878_v6  ;;  %v7385_v39 = vpop.f32.mrb[160].mxu1  ;;  %v6005_v57 = vmax.f32 %v5973_v24, 0.0 }
 0x48e   : > { %v6008_v33 = vmax.f32 %v5976_v62, 0.0  ;;  %v5844_v47 = vmul.f32 %v7385_v39, %v10140_v17  ;;  %v5756_v46 = vpop.f32.mrb[161].mxu1 }
 0x48f   : > { %v6006_v2 = vmax.f32 %v5974_v25, 0.0  ;;  %v5842_v45 = vmul.f32 %v10140_v17, %v5756_v46  ;;  %v7386_v15 = vpop.f32.mrb[162].mxu1 }
 0x490   : > { %v6631_v60 = vpack.c.bf16 %v6008_v33, %v6007_v36  ;;  %v5883_v27 = vadd.f32 %v10147_v54, %v5844_v47  ;;  %v5845_v4 = vmul.f32 %v7386_v15, %v10140_v17  ;;  %v5759_v44 = vpop.f32.mrb[163].mxu1  ;;  %v6579_v47 = vunpack.c.l.bf16 %v6684_v12 }
 0x491   : > { %v6626_v38 = vpack.c.bf16 %v6006_v2, %v6005_v57  ;;  %v5881_v55 = vadd.f32 %v10147_v54, %v5842_v45  ;;  %v5843_v14 = vmul.f32 %v10140_v17, %v5759_v44  ;;  %v6584_v45 = vunpack.c.h.bf16 %v6685_v61 }
 0x492   : > { %6694 = vst [vmem:[%s10167_s21 + $0x38] sm:$0xff] %v6631_v60   ;;  %v5979_v9 = vadd.f32 %v6567_v20, %v5883_v27  ;;  %v5884_v48 = vadd.f32 %v10147_v54, %v5845_v4  ;;  %v6580_v4 = vunpack.c.h.bf16 %v6684_v12 }
 0x493   : > { %6693 = vst [vmem:[%s10167_s21 + $0x30] sm:$0xff] %v6626_v38   ;;  %v5977_v52 = vadd.f32 %v6563_v56, %v5881_v55  ;;  %v5882_v7 = vadd.f32 %v10147_v54, %v5843_v14  ;;  %v6687_v14 = vld [vmem:[%s8230_s9 + $0x78] sm:$0xff]  }
 0x494   : > { %v5980_v42 = vadd.f32 %v6568_v19, %v5884_v48  ;;  %v6011_v34 = vmax.f32 %v5979_v9, 0.0  ;;  %v6686_v9 = vld [vmem:[%s8230_s9 + $0x70] sm:$0xff]   ;;  %v6591_v8 = vunpack.c.l.bf16 %v6687_v14  ;;  %s6199_s9 = sshll.u32 %s10167_s21, 4  ;;  %s10252_s9 = int_to_ptr.vmem [resolvable:$true] %s6199_s9 }
 0x495   : > { %v5978_v5 = vadd.f32 %v6564_v30, %v5882_v7  ;;  %v7389_v1 = vpop.f32.mrb[164].mxu1  ;;  %v6009_v10 = vmax.f32 %v5977_v52, 0.0  ;;  %s7877_s24 = scalar_lea.vmem %s10252_s9, 2048  ;;  %p7884_p12 = scmp.lt.s32.totalorder %s10252_s9, %s7882_s18 }
 0x496   : > { %v6012_v26 = vmax.f32 %v5980_v42, 0.0  ;;  %v5848_v16 = vmul.f32 %v7389_v1, %v10140_v17  ;;  %v5772_v58 = vpop.f32.mrb[165].mxu1  ;;  %p7878_p10 = scmp.ne.s32.totalorder %s10252_s9, %s7877_s24  ;;  %p7885_p1 = scmp.lt.s32.totalorder %s7883_s28, %s7877_s24 }
 0x497   : > { %v6010_v18 = vmax.f32 %v5978_v5, 0.0  ;;  %v5846_v50 = vmul.f32 %v10140_v17, %v5772_v58  ;;  %v7390_v49 = vpop.f32.mrb[166].mxu1 }
 0x498   : > { %v6641_v51 = vpack.c.bf16 %v6012_v26, %v6011_v34  ;;  %v5887_v22 = vadd.f32 %v10147_v54, %v5848_v16  ;;  %v5849_v23 = vmul.f32 %v7390_v49, %v10140_v17  ;;  %v5775_v29 = vpop.f32.mrb[167].mxu1  ;;  %v6587_v16 = vunpack.c.l.bf16 %v6686_v9  ;;  %p7879_p3 = pnand %p7878_p10, %p8173_p5  ;;  %p7886_p2 = por %p7885_p1, %p7884_p12 }
 0x499   : > { %v6636_v11 = vpack.c.bf16 %v6010_v18, %v6009_v10  ;;  %v5885_v59 = vadd.f32 %v10147_v54, %v5846_v50  ;;  %v5847_v53 = vmul.f32 %v10140_v17, %v5775_v29  ;;  %v6592_v50 = vunpack.c.h.bf16 %v6687_v14 }
 0x49a   : > { %6696 = vst [vmem:[%s10167_s21 + $0x48] sm:$0xff] %v6641_v51   ;;  %v5983_v32 = vadd.f32 %v6575_v40, %v5887_v22  ;;  %v5888_v13 = vadd.f32 %v10147_v54, %v5849_v23  ;;  %v6588_v23 = vunpack.c.h.bf16 %v6686_v9  ;;  %p7880_p7 = pneg %p7879_p3 }
 0x49b   : > { %6695 = vst [vmem:[%s10167_s21 + $0x40] sm:$0xff] %v6636_v11   ;;  %v5981_v43 = vadd.f32 %v6571_v31, %v5885_v59  ;;  %v5886_v35 = vadd.f32 %v10147_v54, %v5847_v53 }
 0x49c   : > { %v5984_v3 = vadd.f32 %v6576_v63, %v5888_v13  ;;  %v6015_v6 = vmax.f32 %v5983_v32, 0.0  ;;  %p7887_p4 = pnand %p7886_p2, %p7880_p7 }
 0x49d   : > { %v5982_v0 = vadd.f32 %v6572_v28, %v5886_v35  ;;  %v7393_v24 = vpop.f32.mrb[168].mxu1  ;;  %v6013_v39 = vmax.f32 %v5981_v43, 0.0 }
 0x49e   : > { %v6016_v41 = vmax.f32 %v5984_v3, 0.0  ;;  %v5852_v62 = vmul.f32 %v7393_v24, %v10140_v17  ;;  %v5788_v25 = vpop.f32.mrb[169].mxu1 }
 0x49f   : > { %v6014_v36 = vmax.f32 %v5982_v0, 0.0  ;;  %v5850_v33 = vmul.f32 %v10140_v17, %v5788_v25  ;;  %v7394_v20 = vpop.f32.mrb[170].mxu1 }
 0x4a0   : > { %v6651_v46 = vpack.c.bf16 %v6016_v41, %v6015_v6  ;;  %v5891_v57 = vadd.f32 %v10147_v54, %v5852_v62  ;;  %v5853_v2 = vmul.f32 %v7394_v20, %v10140_v17  ;;  %v5791_v56 = vpop.f32.mrb[171].mxu1 }
 0x4a1   : > { %v6646_v15 = vpack.c.bf16 %v6014_v36, %v6013_v39  ;;  %v5889_v60 = vadd.f32 %v10147_v54, %v5850_v33  ;;  %v5851_v27 = vmul.f32 %v10140_v17, %v5791_v56 }
 0x4a2   : > { %6698 = vst [vmem:[%s10167_s21 + $0x58] sm:$0xff] %v6651_v46   ;;  %v5987_v19 = vadd.f32 %v6583_v37, %v5891_v57  ;;  %v5892_v44 = vadd.f32 %v10147_v54, %v5853_v2 }
 0x4a3   : > { %6697 = vst [vmem:[%s10167_s21 + $0x50] sm:$0xff] %v6646_v15   ;;  %v5985_v38 = vadd.f32 %v6579_v47, %v5889_v60  ;;  %v5890_v55 = vadd.f32 %v10147_v54, %v5851_v27 }
 0x4a4   : > { %v5988_v30 = vadd.f32 %v6584_v45, %v5892_v44  ;;  %v6019_v7 = vmax.f32 %v5987_v19, 0.0 }
 0x4a5   : > { %v5986_v48 = vadd.f32 %v6580_v4, %v5890_v55  ;;  %v7397_v52 = vpop.f32.mrb[172].mxu1  ;;  %v6017_v1 = vmax.f32 %v5985_v38, 0.0 }
 0x4a6   : > { %v6020_v21 = vmax.f32 %v5988_v30, 0.0  ;;  %v5856_v42 = vmul.f32 %v7397_v52, %v10140_v17  ;;  %v5804_v5 = vpop.f32.mrb[173].mxu1 }
 0x4a7   : > { %v6018_v34 = vmax.f32 %v5986_v48, 0.0  ;;  %v5854_v26 = vmul.f32 %v10140_v17, %v5804_v5  ;;  %v7398_v40 = vpop.f32.mrb[174].mxu1 }
 0x4a8   : > { %v6661_v58 = vpack.c.bf16 %v6020_v21, %v6019_v7  ;;  %v5895_v10 = vadd.f32 %v10147_v54, %v5856_v42  ;;  %v5857_v18 = vmul.f32 %v7398_v40, %v10140_v17  ;;  %v5807_v31 = vpop.f32.mrb[175].mxu1 }
 0x4a9   : > { %v6656_v49 = vpack.c.bf16 %v6018_v34, %v6017_v1  ;;  %v5893_v51 = vadd.f32 %v10147_v54, %v5854_v26  ;;  %v5855_v22 = vmul.f32 %v10140_v17, %v5807_v31 }
 0x4aa   : > { %6700 = vst [vmem:[%s10167_s21 + $0x68] sm:$0xff] %v6661_v58   ;;  %v5991_v63 = vadd.f32 %v6591_v8, %v5895_v10  ;;  %v5896_v29 = vadd.f32 %v10147_v54, %v5857_v18 }
 0x4ab   : > { %6699 = vst [vmem:[%s10167_s21 + $0x60] sm:$0xff] %v6656_v49   ;;  %v5989_v11 = vadd.f32 %v6587_v16, %v5893_v51  ;;  %v5894_v59 = vadd.f32 %v10147_v54, %v5855_v22 }
 0x4ac   : > { %v5992_v53 = vadd.f32 %v6592_v50, %v5896_v29  ;;  %v6023_v32 = vmax.f32 %v5991_v63, 0.0 }
 0x4ad   : > { %v5990_v28 = vadd.f32 %v6588_v23, %v5894_v59  ;;  %v6021_v17 = vmax.f32 %v5989_v11, 0.0 }
 0x4ae   : > { %v6024_v13 = vmax.f32 %v5992_v53, 0.0 }
 0x4af   : > { %v6022_v43 = vmax.f32 %v5990_v28, 0.0 }
 0x4b0   : > { %v6671_v35 = vpack.c.bf16 %v6024_v13, %v6023_v32 }
 0x4b1   : > { %v6666_v54 = vpack.c.bf16 %v6022_v43, %v6021_v17 }
 0x4b2   : > { %6702 = vst [vmem:[%s10167_s21 + $0x78] sm:$0xff] %v6671_v35  }
 0x4b3   : > { %6701 = vst [vmem:[%s10167_s21 + $0x70] sm:$0xff] %v6666_v54  }
 0x4b4   : > { %7890 = shalt.err (!%p7887_p4)
}
 0x4b5   : > { %s7891_s27 = scalar_lea.hbm %s10250_s26, 2048  ;;  %s7895_s21 = scalar_lea.hbm %s10648_s29, 4096 }
 0x4b6   : > { %p7892_p9 = scmp.ne.s32.totalorder %s10250_s26, %s7891_s27  ;;  %p7896_p8 = scmp.lt.u32.totalorder %s10250_s26, %s10648_s29 }
 0x4b7   : > { %p7897_p13 = scmp.lt.u32.totalorder %s7895_s21, %s7891_s27  ;;  %p7899_p10 = scmp.lt.u32.totalorder %s7891_s27, %s10250_s26 }
 0x4b8   : > { %p7893_p0 = pnand %p7892_p9, %p8173_p5 }
 0x4b9   : > { %p7898_p6 = por %p7897_p13, %p7896_p8 }
 0x4ba   : > { %p7894_p11 = pneg %p7893_p0 }
 0x4bb   : > { %p7900_p3 = por %p7899_p10, %p7898_p6 }
 0x4bd   : > { %p7901_p7 = pnand %p7900_p3, %p7894_p11 }
 0x4bf   : > { %7904 = shalt.err (!%p7901_p7)
}
 0x4c0   : > { %s7962_s11 = smov 64   ;;  %s7963_s24 = smov 4  }
 0x4c1   : > { %7589 = dma.vmem_to_hbm [thread:$0]  (%p8173_p5), %s10252_s9, 2048, %s10250_s26, %s6186_s17, %s7962_s11, %s7962_s11, %s7963_s24  }
 0x4c2 PF: > { %s10649_s12 = sld [smem:[#allocation17_spill]]  ;;  %s10650_s18 = sld [smem:[#allocation18_spill]] }
 0x4c3   : > { %p10652_p1 = scmp.ge.s32.totalorder %s7951_s16, 2 }
 0x4c8   : > { %s6214_s28 = sand.u32 1, %s10649_s12   ;;  %p10651_p12 = scmp.ne.s32.totalorder %s10650_s18, 0 }
 0x4c9   : > { %s6215_s27 = scalar_lea.sflag [#allocation6], %s6214_s28 }
 0x4ca   : > { %p7606_p2 = pnand %p10652_p1, %p10651_p12 }
 0x4cc   : > { %7934 = dma.done.wait (!%p7606_p2), %s6215_s27, 2048  }
 0x4cd   : > { %7936 = vsyncadd (!%p7606_p2), %s6215_s27, 4294965248  ;;  %s10653_s23 = smov %s8169_s13  ;;  %p25_p4 = scmp.ge.s32.totalorder %s8159_s22, 4  }
 0x4ce   : > { %s10654_s13 = smov %s7943_s14  ;;  %s10655_s14 = smov %s7947_s15 }
 0x4cf   : > { %s10656_s15 = smov %s10653_s23  ;;  %s10657_s16 = smov %s8159_s22 }
 0x4d0   :  { %27 = sbr.rel (!%p25_p4) target bundleno = 10 (0xa), region = 117 }
 0x4d7   :  { %6220 = vsyncpa [#allocation5], 1 }
 0x4d8   :  { %6222 = vsyncpa [#allocation5 + $0x1], 1 }
 0x4d9   :  { %6223 = vsyncpa [#allocation8], 1 }
 0x4da   :  { %6224 = vsyncpa [#allocation11], 1 }
 0x4db   :  { %6225 = vsyncpa [#allocation6], 1 }
 0x4dc   :  { %6227 = vsyncpa [#allocation6 + $0x1], 1 }

</bundles_post_ra>
